<compile_context>
chip_gen: v7x
topology: tpu7x:2x2x1
jax: 0.10.0
libtpu: 0.0.40
codegen_flags: <defaults>
</compile_context>

<pallas_src>
import math
import functools

import jax
import jax.numpy as jnp
from jax.experimental import pallas as pl
from jax.experimental.pallas import tpu as pltpu


def _round_up(x, m):
    return ((x + m - 1) // m) * m


# ---------------------------------------------------------------------------
# Fused LSTM forward kernel (embedding gather + all layers + all steps + fc)
# ---------------------------------------------------------------------------
def _lstm_fused_kernel(src_ref, emb_ref, *args, n_layers, hidden_pad):
    # src_ref : SMEM (B, S) int32            (scalar-prefetched token ids)
    # emb_ref : VMEM (vocab, 4*Hp)           (emb @ W_ih0^T + b_ih0 + b_hh0, gate padded)
    # args    : w_hh0 (Hp,4Hp),
    #           per layer l>=1: w_ih_l (Hp,4Hp), w_hh_l (Hp,4Hp), bias_l (1,4Hp),
    #           fc_w (Hp,O_pad), fc_b (1,O_pad), o_ref (B*S, O_pad)
    Hp = hidden_pad
    n_rest = 3 * (n_layers - 1)
    w_hh0_ref = args[0]
    layer_refs = args[1:1 + n_rest]
    fc_w_ref = args[1 + n_rest]
    fc_b_ref = args[2 + n_rest]
    o_ref = args[3 + n_rest]

    B, S = src_ref.shape

    def gates_to_hc(g, c_prev):
        # PyTorch gate order i, f, g(cell), o — each a full 128-lane aligned group.
        i_g = jax.nn.sigmoid(g[:, 0 * Hp:1 * Hp])
        f_g = jax.nn.sigmoid(g[:, 1 * Hp:2 * Hp])
        c_g = jnp.tanh(g[:, 2 * Hp:3 * Hp])
        o_g = jax.nn.sigmoid(g[:, 3 * Hp:4 * Hp])
        c_new = i_g * c_g if c_prev is None else f_g * c_prev + i_g * c_g
        h_new = o_g * jnp.tanh(c_new)
        return h_new, c_new

    h = [None] * n_layers
    c = [None] * n_layers
    outs = []  # top-layer output per timestep, each (B, Hp), kept in registers

    # Time-major wavefront: layer l at step t follows layer l-1 at step t, so the
    # per-layer recurrence chains overlap (critical path ~ S + n_layers instead of
    # n_layers * S serialized steps).
    for t in range(S):
        # ----- layer 0: input gates come pre-projected from the fused embedding
        #       table (includes bias); gather one row per batch element.
        gx = jnp.concatenate(
            [emb_ref[pl.ds(src_ref[bb, t], 1), :] for bb in range(B)], axis=0)
        if t == 0:
            g = gx  # h_{-1} = c_{-1} = 0 -> skip the recurrent matmul
        else:
            g = gx + jnp.dot(h[0], w_hh0_ref[...],
                             preferred_element_type=jnp.float32)
        h[0], c[0] = gates_to_hc(g, c[0])
        x = h[0]

        # ----- layers >= 1
        for l in range(1, n_layers):
            w_ih_ref = layer_refs[3 * (l - 1) + 0]
            w_hh_ref = layer_refs[3 * (l - 1) + 1]
            b_ref = layer_refs[3 * (l - 1) + 2]
            gx = jnp.dot(x, w_ih_ref[...],
                         preferred_element_type=jnp.float32) + b_ref[...]
            if t == 0:
                g = gx
            else:
                g = gx + jnp.dot(h[l], w_hh_ref[...],
                                 preferred_element_type=jnp.float32)
            h[l], c[l] = gates_to_hc(g, c[l])
            x = h[l]
        outs.append(x)
        # TODO(synk): inter-layer nn.LSTM dropout is identity (eval / inference).

    # Assemble the (B*S, Hp) slab in batch-major row order, single fc matmul,
    # one unmasked lane-dense store (O_pad = 128).
    seq = jnp.concatenate(
        [jnp.concatenate([outs[t][bb:bb + 1, :] for t in range(S)], axis=0)
         for bb in range(B)], axis=0)
    logits = (jnp.dot(seq, fc_w_ref[...], preferred_element_type=jnp.float32)
              + fc_b_ref[...])
    o_ref[...] = logits


def _full_spec(shape):
    nd = len(shape)
    # index_map receives (grid idx, scalar-prefetch ref) -> whole-array block.
    return pl.BlockSpec(shape, lambda i, src, nd=nd: (0,) * nd)


# ---------------------------------------------------------------------------
# One-time parameter preparation (hoisted out of the per-call path)
# ---------------------------------------------------------------------------
def prepare_params(params):
    layers = params["layers"]
    n_layers = len(layers)
    H = layers[0]["w_hh"].shape[1]
    Hp = _round_up(H, 128)
    O = params["fc_w"].shape[0]
    O_pad = _round_up(O, 128)

    def pad_gate_cols(m):  # (rows, 4H) -> (rows, 4*Hp), one 128-lane group per gate
        rows = m.shape[0]
        out = jnp.zeros((rows, 4 * Hp), jnp.float32)
        for k in range(4):
            out = out.at[:, k * Hp:k * Hp + H].set(m[:, k * H:(k + 1) * H])
        return out

    def pad_rows(m, rows_to):
        return jnp.zeros((rows_to, m.shape[1]), jnp.float32).at[:m.shape[0], :].set(m)

    l0 = layers[0]
    # Fused embedding table: layer-0 input projection + bias, per token id.
    # TODO(synk): nn.Dropout after the embedding is identity (eval mode), so the
    # projection can be folded into the table.
    raw0 = (jnp.dot(params["embedding"], l0["w_ih"].T,
                    precision=jax.lax.Precision.HIGHEST)
            + l0["b_ih"] + l0["b_hh"])                        # (vocab, 4H)
    emb_fused = pad_gate_cols(raw0)                            # (vocab, 4Hp)
    w_hh0 = pad_rows(pad_gate_cols(l0["w_hh"].T), Hp)          # (Hp, 4Hp)

    rest = []
    for lp in layers[1:]:
        rest.append(pad_rows(pad_gate_cols(lp["w_ih"].T), Hp))            # (Hp, 4Hp)
        rest.append(pad_rows(pad_gate_cols(lp["w_hh"].T), Hp))            # (Hp, 4Hp)
        rest.append(pad_gate_cols((lp["b_ih"] + lp["b_hh"])[None, :]))    # (1, 4Hp)

    fc_w = jnp.zeros((Hp, O_pad), jnp.float32).at[:H, :O].set(params["fc_w"].T)
    fc_b = jnp.zeros((1, O_pad), jnp.float32).at[0, :O].set(params["fc_b"])

    return {
        "n_layers": n_layers, "hidden_pad": Hp, "out_dim": O, "out_pad": O_pad,
        "ops": tuple([emb_fused, w_hh0] + rest + [fc_w, fc_b]),
    }


# ---------------------------------------------------------------------------
# Forward wrapper: single fused pallas_call (+ reshape / slice of the output)
# ---------------------------------------------------------------------------
@functools.partial(jax.jit,
                   static_argnames=("n_layers", "hidden_pad", "out_dim", "out_pad"))
def _forward_jit(src, ops, *, n_layers, hidden_pad, out_dim, out_pad):
    B, S = src.shape
    kernel = functools.partial(_lstm_fused_kernel,
                               n_layers=n_layers, hidden_pad=hidden_pad)
    grid_spec = pltpu.PrefetchScalarGridSpec(
        num_scalar_prefetch=1,                      # src -> SMEM
        grid=(1,),
        in_specs=[_full_spec(o.shape) for o in ops],
        out_specs=_full_spec((B * S, out_pad)),
    )
    out = pl.pallas_call(
        kernel,
        out_shape=jax.ShapeDtypeStruct((B * S, out_pad), jnp.float32),
        grid_spec=grid_spec,
        compiler_params=pltpu.CompilerParams(
            dimension_semantics=("arbitrary",)),
    )(src, *ops)
    return out.reshape(B, S, out_pad)[..., :out_dim]


def lstm_forward(src, prepared):
    return _forward_jit(src.astype(jnp.int32), prepared["ops"],
                        n_layers=prepared["n_layers"],
                        hidden_pad=prepared["hidden_pad"],
                        out_dim=prepared["out_dim"],
                        out_pad=prepared["out_pad"])


# ---------------------------------------------------------------------------
# Parameter construction (PyTorch-style layouts) and pure-JAX reference
# ---------------------------------------------------------------------------
def init_params(key, input_dim, emb_dim, hidden_dim, output_dim, n_layers):
    keys = jax.random.split(key, 3 + n_layers)
    k = 1.0 / math.sqrt(hidden_dim)
    params = {
        "embedding": jax.random.normal(keys[0], (input_dim, emb_dim), jnp.float32),
        "fc_w": jax.random.uniform(keys[1], (output_dim, hidden_dim), jnp.float32, -k, k),
        "fc_b": jax.random.uniform(keys[2], (output_dim,), jnp.float32, -k, k),
        "layers": [],
    }
    for li in range(n_layers):
        in_dim = emb_dim if li == 0 else hidden_dim
        lk = jax.random.split(keys[3 + li], 4)
        params["layers"].append({
            "w_ih": jax.random.uniform(lk[0], (4 * hidden_dim, in_dim), jnp.float32, -k, k),
            "w_hh": jax.random.uniform(lk[1], (4 * hidden_dim, hidden_dim), jnp.float32, -k, k),
            "b_ih": jax.random.uniform(lk[2], (4 * hidden_dim,), jnp.float32, -k, k),
            "b_hh": jax.random.uniform(lk[3], (4 * hidden_dim,), jnp.float32, -k, k),
        })
    return params


def lstm_reference(src, params):
    x = jnp.take(params["embedding"], src, axis=0)
    H = params["layers"][0]["w_hh"].shape[1]
    B, S, _ = x.shape
    for lp in params["layers"]:
        h = jnp.zeros((B, H), jnp.float32)
        c = jnp.zeros((B, H), jnp.float32)
        outs = []
        for t in range(S):
            g = (x[:, t, :] @ lp["w_ih"].T + lp["b_ih"]
                 + h @ lp["w_hh"].T + lp["b_hh"])
            i = jax.nn.sigmoid(g[:, 0 * H:1 * H])
            f = jax.nn.sigmoid(g[:, 1 * H:2 * H])
            gc = jnp.tanh(g[:, 2 * H:3 * H])
            o = jax.nn.sigmoid(g[:, 3 * H:4 * H])
            c = f * c + i * gc
            h = o * jnp.tanh(c)
            outs.append(h)
        x = jnp.stack(outs, axis=1)
    return x @ params["fc_w"].T + params["fc_b"]


if __name__ == "__main__":
    INPUT_DIM, EMB_DIM, HIDDEN_DIM, OUTPUT_DIM = 50, 32, 64, 3
    N_LAYERS = 2
    B, S = 2, 8

    key = jax.random.PRNGKey(0)
    pkey, skey = jax.random.split(key)
    params = init_params(pkey, INPUT_DIM, EMB_DIM, HIDDEN_DIM, OUTPUT_DIM, N_LAYERS)
    prepared = prepare_params(params)          # one-time, hoisted out of the call path

    src = jax.random.randint(skey, (B, S), 0, INPUT_DIM, dtype=jnp.int32)

    out = lstm_forward(src, prepared)
    out = jax.block_until_ready(out)
    assert out.shape == (B, S, OUTPUT_DIM)
    assert bool(jnp.all(jnp.isfinite(out)))

    ref = lstm_reference(src, params)
    assert bool(jnp.allclose(out, ref, atol=1e-4, rtol=1e-4))
    print("KERNEL_OK")
</pallas_src>

<mosaic_0001>
module attributes {stable_mosaic.version = 11 : i64} {
  func.func @_lstm_fused_kernel(%arg0: i32, %arg1: memref<2x8xi32, #tpu.memory_space<smem>>, %arg2: memref<50x512xf32, #tpu.memory_space<vmem>>, %arg3: memref<128x512xf32, #tpu.memory_space<vmem>>, %arg4: memref<128x512xf32, #tpu.memory_space<vmem>>, %arg5: memref<128x512xf32, #tpu.memory_space<vmem>>, %arg6: memref<1x512xf32, #tpu.memory_space<vmem>>, %arg7: memref<128x128xf32, #tpu.memory_space<vmem>>, %arg8: memref<1x128xf32, #tpu.memory_space<vmem>>, %arg9: memref<16x128xf32, #tpu.memory_space<vmem>>) attributes {dimension_semantics = [#tpu.dimension_semantics<arbitrary>], iteration_bounds = array<i64: 1>, scalar_prefetch = 1 : i64, scratch_operands = 0 : i64, tpu.core_type = #tpu.core_type<tc>, window_params = [{pipeline_mode = #tpu.pipeline_mode<synchronous>, transform_indices = @transform_0, window_bounds = array<i64: 50, 512>}, {pipeline_mode = #tpu.pipeline_mode<synchronous>, transform_indices = @transform_1, window_bounds = array<i64: 128, 512>}, {pipeline_mode = #tpu.pipeline_mode<synchronous>, transform_indices = @transform_2, window_bounds = array<i64: 128, 512>}, {pipeline_mode = #tpu.pipeline_mode<synchronous>, transform_indices = @transform_3, window_bounds = array<i64: 128, 512>}, {pipeline_mode = #tpu.pipeline_mode<synchronous>, transform_indices = @transform_4, window_bounds = array<i64: 1, 512>}, {pipeline_mode = #tpu.pipeline_mode<synchronous>, transform_indices = @transform_5, window_bounds = array<i64: 128, 128>}, {pipeline_mode = #tpu.pipeline_mode<synchronous>, transform_indices = @transform_6, window_bounds = array<i64: 1, 128>}, {pipeline_mode = #tpu.pipeline_mode<synchronous>, transform_indices = @transform_7, window_bounds = array<i64: 16, 128>}]} {
    %c0 = arith.constant 0 : index
    %c0_0 = arith.constant 0 : index
    %0 = memref.load %arg1[%c0, %c0_0] : memref<2x8xi32, #tpu.memory_space<smem>>
    %1 = arith.index_cast %0 : i32 to index
    %c0_1 = arith.constant 0 : index
    %2 = vector.load %arg2[%1, %c0_1] : memref<50x512xf32, #tpu.memory_space<vmem>>, vector<1x512xf32>
    %c1 = arith.constant 1 : index
    %c0_2 = arith.constant 0 : index
    %3 = memref.load %arg1[%c1, %c0_2] : memref<2x8xi32, #tpu.memory_space<smem>>
    %4 = arith.index_cast %3 : i32 to index
    %c0_3 = arith.constant 0 : index
    %5 = vector.load %arg2[%4, %c0_3] : memref<50x512xf32, #tpu.memory_space<vmem>>, vector<1x512xf32>
    %6 = tpu.concatenate %2, %5 in 0 : vector<1x512xf32>, vector<1x512xf32> -> vector<2x512xf32>
    %7 = vector.extract_strided_slice %6 {offsets = [0, 0], sizes = [2, 128], strides = [1, 1]} : vector<2x512xf32> to vector<2x128xf32>
    %8 = arith.negf %7 : vector<2x128xf32>
    %9 = math.exp %8 : vector<2x128xf32>
    %cst = arith.constant 1.000000e+00 : f32
    %10 = vector.broadcast %cst : f32 to vector<2x128xf32>
    %11 = arith.addf %10, %9 : vector<2x128xf32>
    %12 = arith.divf %10, %11 : vector<2x128xf32>
    %13 = vector.extract_strided_slice %6 {offsets = [0, 256], sizes = [2, 128], strides = [1, 1]} : vector<2x512xf32> to vector<2x128xf32>
    %14 = math.tanh %13 : vector<2x128xf32>
    %15 = vector.extract_strided_slice %6 {offsets = [0, 384], sizes = [2, 128], strides = [1, 1]} : vector<2x512xf32> to vector<2x128xf32>
    %16 = arith.negf %15 : vector<2x128xf32>
    %17 = math.exp %16 : vector<2x128xf32>
    %cst_4 = arith.constant 1.000000e+00 : f32
    %18 = vector.broadcast %cst_4 : f32 to vector<2x128xf32>
    %19 = arith.addf %18, %17 : vector<2x128xf32>
    %20 = arith.divf %18, %19 : vector<2x128xf32>
    %21 = arith.mulf %12, %14 : vector<2x128xf32>
    %22 = math.tanh %21 : vector<2x128xf32>
    %23 = arith.mulf %20, %22 : vector<2x128xf32>
    %c0_5 = arith.constant 0 : index
    %c0_6 = arith.constant 0 : index
    %24 = vector.load %arg4[%c0_5, %c0_6] : memref<128x512xf32, #tpu.memory_space<vmem>>, vector<128x512xf32>
    %cst_7 = arith.constant dense<0.000000e+00> : vector<2x512xf32>
    %25 = tpu.matmul %23, %24, %cst_7 {dimension_numbers = #tpu.dot_dimension_numbers<[1], [0], [0], [1], [0, 0, 1, 1], [], []>} : vector<2x128xf32>, vector<128x512xf32>, vector<2x512xf32> -> vector<2x512xf32>
    %c0_8 = arith.constant 0 : index
    %c0_9 = arith.constant 0 : index
    %26 = vector.load %arg6[%c0_8, %c0_9] : memref<1x512xf32, #tpu.memory_space<vmem>>, vector<1x512xf32>
    %27 = vector.broadcast %26 : vector<1x512xf32> to vector<2x512xf32>
    %28 = arith.addf %25, %27 : vector<2x512xf32>
    %29 = vector.extract_strided_slice %28 {offsets = [0, 0], sizes = [2, 128], strides = [1, 1]} : vector<2x512xf32> to vector<2x128xf32>
    %30 = arith.negf %29 : vector<2x128xf32>
    %31 = math.exp %30 : vector<2x128xf32>
    %cst_10 = arith.constant 1.000000e+00 : f32
    %32 = vector.broadcast %cst_10 : f32 to vector<2x128xf32>
    %33 = arith.addf %32, %31 : vector<2x128xf32>
    %34 = arith.divf %32, %33 : vector<2x128xf32>
    %35 = vector.extract_strided_slice %28 {offsets = [0, 256], sizes = [2, 128], strides = [1, 1]} : vector<2x512xf32> to vector<2x128xf32>
    %36 = math.tanh %35 : vector<2x128xf32>
    %37 = vector.extract_strided_slice %28 {offsets = [0, 384], sizes = [2, 128], strides = [1, 1]} : vector<2x512xf32> to vector<2x128xf32>
    %38 = arith.negf %37 : vector<2x128xf32>
    %39 = math.exp %38 : vector<2x128xf32>
    %cst_11 = arith.constant 1.000000e+00 : f32
    %40 = vector.broadcast %cst_11 : f32 to vector<2x128xf32>
    %41 = arith.addf %40, %39 : vector<2x128xf32>
    %42 = arith.divf %40, %41 : vector<2x128xf32>
    %43 = arith.mulf %34, %36 : vector<2x128xf32>
    %44 = math.tanh %43 : vector<2x128xf32>
    %45 = arith.mulf %42, %44 : vector<2x128xf32>
    %c0_12 = arith.constant 0 : index
    %c1_13 = arith.constant 1 : index
    %46 = memref.load %arg1[%c0_12, %c1_13] : memref<2x8xi32, #tpu.memory_space<smem>>
    %47 = arith.index_cast %46 : i32 to index
    %c0_14 = arith.constant 0 : index
    %48 = vector.load %arg2[%47, %c0_14] : memref<50x512xf32, #tpu.memory_space<vmem>>, vector<1x512xf32>
    %c1_15 = arith.constant 1 : index
    %c1_16 = arith.constant 1 : index
    %49 = memref.load %arg1[%c1_15, %c1_16] : memref<2x8xi32, #tpu.memory_space<smem>>
    %50 = arith.index_cast %49 : i32 to index
    %c0_17 = arith.constant 0 : index
    %51 = vector.load %arg2[%50, %c0_17] : memref<50x512xf32, #tpu.memory_space<vmem>>, vector<1x512xf32>
    %52 = tpu.concatenate %48, %51 in 0 : vector<1x512xf32>, vector<1x512xf32> -> vector<2x512xf32>
    %c0_18 = arith.constant 0 : index
    %c0_19 = arith.constant 0 : index
    %53 = vector.load %arg3[%c0_18, %c0_19] : memref<128x512xf32, #tpu.memory_space<vmem>>, vector<128x512xf32>
    %cst_20 = arith.constant dense<0.000000e+00> : vector<2x512xf32>
    %54 = tpu.matmul %23, %53, %cst_20 {dimension_numbers = #tpu.dot_dimension_numbers<[1], [0], [0], [1], [0, 0, 1, 1], [], []>} : vector<2x128xf32>, vector<128x512xf32>, vector<2x512xf32> -> vector<2x512xf32>
    %55 = arith.addf %52, %54 : vector<2x512xf32>
    %56 = vector.extract_strided_slice %55 {offsets = [0, 0], sizes = [2, 128], strides = [1, 1]} : vector<2x512xf32> to vector<2x128xf32>
    %57 = arith.negf %56 : vector<2x128xf32>
    %58 = math.exp %57 : vector<2x128xf32>
    %cst_21 = arith.constant 1.000000e+00 : f32
    %59 = vector.broadcast %cst_21 : f32 to vector<2x128xf32>
    %60 = arith.addf %59, %58 : vector<2x128xf32>
    %61 = arith.divf %59, %60 : vector<2x128xf32>
    %62 = vector.extract_strided_slice %55 {offsets = [0, 128], sizes = [2, 128], strides = [1, 1]} : vector<2x512xf32> to vector<2x128xf32>
    %63 = arith.negf %62 : vector<2x128xf32>
    %64 = math.exp %63 : vector<2x128xf32>
    %cst_22 = arith.constant 1.000000e+00 : f32
    %65 = vector.broadcast %cst_22 : f32 to vector<2x128xf32>
    %66 = arith.addf %65, %64 : vector<2x128xf32>
    %67 = arith.divf %65, %66 : vector<2x128xf32>
    %68 = vector.extract_strided_slice %55 {offsets = [0, 256], sizes = [2, 128], strides = [1, 1]} : vector<2x512xf32> to vector<2x128xf32>
    %69 = math.tanh %68 : vector<2x128xf32>
    %70 = vector.extract_strided_slice %55 {offsets = [0, 384], sizes = [2, 128], strides = [1, 1]} : vector<2x512xf32> to vector<2x128xf32>
    %71 = arith.negf %70 : vector<2x128xf32>
    %72 = math.exp %71 : vector<2x128xf32>
    %cst_23 = arith.constant 1.000000e+00 : f32
    %73 = vector.broadcast %cst_23 : f32 to vector<2x128xf32>
    %74 = arith.addf %73, %72 : vector<2x128xf32>
    %75 = arith.divf %73, %74 : vector<2x128xf32>
    %76 = arith.mulf %67, %21 : vector<2x128xf32>
    %77 = arith.mulf %61, %69 : vector<2x128xf32>
    %78 = arith.addf %76, %77 : vector<2x128xf32>
    %79 = math.tanh %78 : vector<2x128xf32>
    %80 = arith.mulf %75, %79 : vector<2x128xf32>
    %c0_24 = arith.constant 0 : index
    %c0_25 = arith.constant 0 : index
    %81 = vector.load %arg4[%c0_24, %c0_25] : memref<128x512xf32, #tpu.memory_space<vmem>>, vector<128x512xf32>
    %cst_26 = arith.constant dense<0.000000e+00> : vector<2x512xf32>
    %82 = tpu.matmul %80, %81, %cst_26 {dimension_numbers = #tpu.dot_dimension_numbers<[1], [0], [0], [1], [0, 0, 1, 1], [], []>} : vector<2x128xf32>, vector<128x512xf32>, vector<2x512xf32> -> vector<2x512xf32>
    %c0_27 = arith.constant 0 : index
    %c0_28 = arith.constant 0 : index
    %83 = vector.load %arg6[%c0_27, %c0_28] : memref<1x512xf32, #tpu.memory_space<vmem>>, vector<1x512xf32>
    %84 = vector.broadcast %83 : vector<1x512xf32> to vector<2x512xf32>
    %85 = arith.addf %82, %84 : vector<2x512xf32>
    %c0_29 = arith.constant 0 : index
    %c0_30 = arith.constant 0 : index
    %86 = vector.load %arg5[%c0_29, %c0_30] : memref<128x512xf32, #tpu.memory_space<vmem>>, vector<128x512xf32>
    %cst_31 = arith.constant dense<0.000000e+00> : vector<2x512xf32>
    %87 = tpu.matmul %45, %86, %cst_31 {dimension_numbers = #tpu.dot_dimension_numbers<[1], [0], [0], [1], [0, 0, 1, 1], [], []>} : vector<2x128xf32>, vector<128x512xf32>, vector<2x512xf32> -> vector<2x512xf32>
    %88 = arith.addf %85, %87 : vector<2x512xf32>
    %89 = vector.extract_strided_slice %88 {offsets = [0, 0], sizes = [2, 128], strides = [1, 1]} : vector<2x512xf32> to vector<2x128xf32>
    %90 = arith.negf %89 : vector<2x128xf32>
    %91 = math.exp %90 : vector<2x128xf32>
    %cst_32 = arith.constant 1.000000e+00 : f32
    %92 = vector.broadcast %cst_32 : f32 to vector<2x128xf32>
    %93 = arith.addf %92, %91 : vector<2x128xf32>
    %94 = arith.divf %92, %93 : vector<2x128xf32>
    %95 = vector.extract_strided_slice %88 {offsets = [0, 128], sizes = [2, 128], strides = [1, 1]} : vector<2x512xf32> to vector<2x128xf32>
    %96 = arith.negf %95 : vector<2x128xf32>
    %97 = math.exp %96 : vector<2x128xf32>
    %cst_33 = arith.constant 1.000000e+00 : f32
    %98 = vector.broadcast %cst_33 : f32 to vector<2x128xf32>
    %99 = arith.addf %98, %97 : vector<2x128xf32>
    %100 = arith.divf %98, %99 : vector<2x128xf32>
    %101 = vector.extract_strided_slice %88 {offsets = [0, 256], sizes = [2, 128], strides = [1, 1]} : vector<2x512xf32> to vector<2x128xf32>
    %102 = math.tanh %101 : vector<2x128xf32>
    %103 = vector.extract_strided_slice %88 {offsets = [0, 384], sizes = [2, 128], strides = [1, 1]} : vector<2x512xf32> to vector<2x128xf32>
    %104 = arith.negf %103 : vector<2x128xf32>
    %105 = math.exp %104 : vector<2x128xf32>
    %cst_34 = arith.constant 1.000000e+00 : f32
    %106 = vector.broadcast %cst_34 : f32 to vector<2x128xf32>
    %107 = arith.addf %106, %105 : vector<2x128xf32>
    %108 = arith.divf %106, %107 : vector<2x128xf32>
    %109 = arith.mulf %100, %43 : vector<2x128xf32>
    %110 = arith.mulf %94, %102 : vector<2x128xf32>
    %111 = arith.addf %109, %110 : vector<2x128xf32>
    %112 = math.tanh %111 : vector<2x128xf32>
    %113 = arith.mulf %108, %112 : vector<2x128xf32>
    %c0_35 = arith.constant 0 : index
    %c2 = arith.constant 2 : index
    %114 = memref.load %arg1[%c0_35, %c2] : memref<2x8xi32, #tpu.memory_space<smem>>
    %115 = arith.index_cast %114 : i32 to index
    %c0_36 = arith.constant 0 : index
    %116 = vector.load %arg2[%115, %c0_36] : memref<50x512xf32, #tpu.memory_space<vmem>>, vector<1x512xf32>
    %c1_37 = arith.constant 1 : index
    %c2_38 = arith.constant 2 : index
    %117 = memref.load %arg1[%c1_37, %c2_38] : memref<2x8xi32, #tpu.memory_space<smem>>
    %118 = arith.index_cast %117 : i32 to index
    %c0_39 = arith.constant 0 : index
    %119 = vector.load %arg2[%118, %c0_39] : memref<50x512xf32, #tpu.memory_space<vmem>>, vector<1x512xf32>
    %120 = tpu.concatenate %116, %119 in 0 : vector<1x512xf32>, vector<1x512xf32> -> vector<2x512xf32>
    %c0_40 = arith.constant 0 : index
    %c0_41 = arith.constant 0 : index
    %121 = vector.load %arg3[%c0_40, %c0_41] : memref<128x512xf32, #tpu.memory_space<vmem>>, vector<128x512xf32>
    %cst_42 = arith.constant dense<0.000000e+00> : vector<2x512xf32>
    %122 = tpu.matmul %80, %121, %cst_42 {dimension_numbers = #tpu.dot_dimension_numbers<[1], [0], [0], [1], [0, 0, 1, 1], [], []>} : vector<2x128xf32>, vector<128x512xf32>, vector<2x512xf32> -> vector<2x512xf32>
    %123 = arith.addf %120, %122 : vector<2x512xf32>
    %124 = vector.extract_strided_slice %123 {offsets = [0, 0], sizes = [2, 128], strides = [1, 1]} : vector<2x512xf32> to vector<2x128xf32>
    %125 = arith.negf %124 : vector<2x128xf32>
    %126 = math.exp %125 : vector<2x128xf32>
    %cst_43 = arith.constant 1.000000e+00 : f32
    %127 = vector.broadcast %cst_43 : f32 to vector<2x128xf32>
    %128 = arith.addf %127, %126 : vector<2x128xf32>
    %129 = arith.divf %127, %128 : vector<2x128xf32>
    %130 = vector.extract_strided_slice %123 {offsets = [0, 128], sizes = [2, 128], strides = [1, 1]} : vector<2x512xf32> to vector<2x128xf32>
    %131 = arith.negf %130 : vector<2x128xf32>
    %132 = math.exp %131 : vector<2x128xf32>
    %cst_44 = arith.constant 1.000000e+00 : f32
    %133 = vector.broadcast %cst_44 : f32 to vector<2x128xf32>
    %134 = arith.addf %133, %132 : vector<2x128xf32>
    %135 = arith.divf %133, %134 : vector<2x128xf32>
    %136 = vector.extract_strided_slice %123 {offsets = [0, 256], sizes = [2, 128], strides = [1, 1]} : vector<2x512xf32> to vector<2x128xf32>
    %137 = math.tanh %136 : vector<2x128xf32>
    %138 = vector.extract_strided_slice %123 {offsets = [0, 384], sizes = [2, 128], strides = [1, 1]} : vector<2x512xf32> to vector<2x128xf32>
    %139 = arith.negf %138 : vector<2x128xf32>
    %140 = math.exp %139 : vector<2x128xf32>
    %cst_45 = arith.constant 1.000000e+00 : f32
    %141 = vector.broadcast %cst_45 : f32 to vector<2x128xf32>
    %142 = arith.addf %141, %140 : vector<2x128xf32>
    %143 = arith.divf %141, %142 : vector<2x128xf32>
    %144 = arith.mulf %135, %78 : vector<2x128xf32>
    %145 = arith.mulf %129, %137 : vector<2x128xf32>
    %146 = arith.addf %144, %145 : vector<2x128xf32>
    %147 = math.tanh %146 : vector<2x128xf32>
    %148 = arith.mulf %143, %147 : vector<2x128xf32>
    %c0_46 = arith.constant 0 : index
    %c0_47 = arith.constant 0 : index
    %149 = vector.load %arg4[%c0_46, %c0_47] : memref<128x512xf32, #tpu.memory_space<vmem>>, vector<128x512xf32>
    %cst_48 = arith.constant dense<0.000000e+00> : vector<2x512xf32>
    %150 = tpu.matmul %148, %149, %cst_48 {dimension_numbers = #tpu.dot_dimension_numbers<[1], [0], [0], [1], [0, 0, 1, 1], [], []>} : vector<2x128xf32>, vector<128x512xf32>, vector<2x512xf32> -> vector<2x512xf32>
    %c0_49 = arith.constant 0 : index
    %c0_50 = arith.constant 0 : index
    %151 = vector.load %arg6[%c0_49, %c0_50] : memref<1x512xf32, #tpu.memory_space<vmem>>, vector<1x512xf32>
    %152 = vector.broadcast %151 : vector<1x512xf32> to vector<2x512xf32>
    %153 = arith.addf %150, %152 : vector<2x512xf32>
    %c0_51 = arith.constant 0 : index
    %c0_52 = arith.constant 0 : index
    %154 = vector.load %arg5[%c0_51, %c0_52] : memref<128x512xf32, #tpu.memory_space<vmem>>, vector<128x512xf32>
    %cst_53 = arith.constant dense<0.000000e+00> : vector<2x512xf32>
    %155 = tpu.matmul %113, %154, %cst_53 {dimension_numbers = #tpu.dot_dimension_numbers<[1], [0], [0], [1], [0, 0, 1, 1], [], []>} : vector<2x128xf32>, vector<128x512xf32>, vector<2x512xf32> -> vector<2x512xf32>
    %156 = arith.addf %153, %155 : vector<2x512xf32>
    %157 = vector.extract_strided_slice %156 {offsets = [0, 0], sizes = [2, 128], strides = [1, 1]} : vector<2x512xf32> to vector<2x128xf32>
    %158 = arith.negf %157 : vector<2x128xf32>
    %159 = math.exp %158 : vector<2x128xf32>
    %cst_54 = arith.constant 1.000000e+00 : f32
    %160 = vector.broadcast %cst_54 : f32 to vector<2x128xf32>
    %161 = arith.addf %160, %159 : vector<2x128xf32>
    %162 = arith.divf %160, %161 : vector<2x128xf32>
    %163 = vector.extract_strided_slice %156 {offsets = [0, 128], sizes = [2, 128], strides = [1, 1]} : vector<2x512xf32> to vector<2x128xf32>
    %164 = arith.negf %163 : vector<2x128xf32>
    %165 = math.exp %164 : vector<2x128xf32>
    %cst_55 = arith.constant 1.000000e+00 : f32
    %166 = vector.broadcast %cst_55 : f32 to vector<2x128xf32>
    %167 = arith.addf %166, %165 : vector<2x128xf32>
    %168 = arith.divf %166, %167 : vector<2x128xf32>
    %169 = vector.extract_strided_slice %156 {offsets = [0, 256], sizes = [2, 128], strides = [1, 1]} : vector<2x512xf32> to vector<2x128xf32>
    %170 = math.tanh %169 : vector<2x128xf32>
    %171 = vector.extract_strided_slice %156 {offsets = [0, 384], sizes = [2, 128], strides = [1, 1]} : vector<2x512xf32> to vector<2x128xf32>
    %172 = arith.negf %171 : vector<2x128xf32>
    %173 = math.exp %172 : vector<2x128xf32>
    %cst_56 = arith.constant 1.000000e+00 : f32
    %174 = vector.broadcast %cst_56 : f32 to vector<2x128xf32>
    %175 = arith.addf %174, %173 : vector<2x128xf32>
    %176 = arith.divf %174, %175 : vector<2x128xf32>
    %177 = arith.mulf %168, %111 : vector<2x128xf32>
    %178 = arith.mulf %162, %170 : vector<2x128xf32>
    %179 = arith.addf %177, %178 : vector<2x128xf32>
    %180 = math.tanh %179 : vector<2x128xf32>
    %181 = arith.mulf %176, %180 : vector<2x128xf32>
    %c0_57 = arith.constant 0 : index
    %c3 = arith.constant 3 : index
    %182 = memref.load %arg1[%c0_57, %c3] : memref<2x8xi32, #tpu.memory_space<smem>>
    %183 = arith.index_cast %182 : i32 to index
    %c0_58 = arith.constant 0 : index
    %184 = vector.load %arg2[%183, %c0_58] : memref<50x512xf32, #tpu.memory_space<vmem>>, vector<1x512xf32>
    %c1_59 = arith.constant 1 : index
    %c3_60 = arith.constant 3 : index
    %185 = memref.load %arg1[%c1_59, %c3_60] : memref<2x8xi32, #tpu.memory_space<smem>>
    %186 = arith.index_cast %185 : i32 to index
    %c0_61 = arith.constant 0 : index
    %187 = vector.load %arg2[%186, %c0_61] : memref<50x512xf32, #tpu.memory_space<vmem>>, vector<1x512xf32>
    %188 = tpu.concatenate %184, %187 in 0 : vector<1x512xf32>, vector<1x512xf32> -> vector<2x512xf32>
    %c0_62 = arith.constant 0 : index
    %c0_63 = arith.constant 0 : index
    %189 = vector.load %arg3[%c0_62, %c0_63] : memref<128x512xf32, #tpu.memory_space<vmem>>, vector<128x512xf32>
    %cst_64 = arith.constant dense<0.000000e+00> : vector<2x512xf32>
    %190 = tpu.matmul %148, %189, %cst_64 {dimension_numbers = #tpu.dot_dimension_numbers<[1], [0], [0], [1], [0, 0, 1, 1], [], []>} : vector<2x128xf32>, vector<128x512xf32>, vector<2x512xf32> -> vector<2x512xf32>
    %191 = arith.addf %188, %190 : vector<2x512xf32>
    %192 = vector.extract_strided_slice %191 {offsets = [0, 0], sizes = [2, 128], strides = [1, 1]} : vector<2x512xf32> to vector<2x128xf32>
    %193 = arith.negf %192 : vector<2x128xf32>
    %194 = math.exp %193 : vector<2x128xf32>
    %cst_65 = arith.constant 1.000000e+00 : f32
    %195 = vector.broadcast %cst_65 : f32 to vector<2x128xf32>
    %196 = arith.addf %195, %194 : vector<2x128xf32>
    %197 = arith.divf %195, %196 : vector<2x128xf32>
    %198 = vector.extract_strided_slice %191 {offsets = [0, 128], sizes = [2, 128], strides = [1, 1]} : vector<2x512xf32> to vector<2x128xf32>
    %199 = arith.negf %198 : vector<2x128xf32>
    %200 = math.exp %199 : vector<2x128xf32>
    %cst_66 = arith.constant 1.000000e+00 : f32
    %201 = vector.broadcast %cst_66 : f32 to vector<2x128xf32>
    %202 = arith.addf %201, %200 : vector<2x128xf32>
    %203 = arith.divf %201, %202 : vector<2x128xf32>
    %204 = vector.extract_strided_slice %191 {offsets = [0, 256], sizes = [2, 128], strides = [1, 1]} : vector<2x512xf32> to vector<2x128xf32>
    %205 = math.tanh %204 : vector<2x128xf32>
    %206 = vector.extract_strided_slice %191 {offsets = [0, 384], sizes = [2, 128], strides = [1, 1]} : vector<2x512xf32> to vector<2x128xf32>
    %207 = arith.negf %206 : vector<2x128xf32>
    %208 = math.exp %207 : vector<2x128xf32>
    %cst_67 = arith.constant 1.000000e+00 : f32
    %209 = vector.broadcast %cst_67 : f32 to vector<2x128xf32>
    %210 = arith.addf %209, %208 : vector<2x128xf32>
    %211 = arith.divf %209, %210 : vector<2x128xf32>
    %212 = arith.mulf %203, %146 : vector<2x128xf32>
    %213 = arith.mulf %197, %205 : vector<2x128xf32>
    %214 = arith.addf %212, %213 : vector<2x128xf32>
    %215 = math.tanh %214 : vector<2x128xf32>
    %216 = arith.mulf %211, %215 : vector<2x128xf32>
    %c0_68 = arith.constant 0 : index
    %c0_69 = arith.constant 0 : index
    %217 = vector.load %arg4[%c0_68, %c0_69] : memref<128x512xf32, #tpu.memory_space<vmem>>, vector<128x512xf32>
    %cst_70 = arith.constant dense<0.000000e+00> : vector<2x512xf32>
    %218 = tpu.matmul %216, %217, %cst_70 {dimension_numbers = #tpu.dot_dimension_numbers<[1], [0], [0], [1], [0, 0, 1, 1], [], []>} : vector<2x128xf32>, vector<128x512xf32>, vector<2x512xf32> -> vector<2x512xf32>
    %c0_71 = arith.constant 0 : index
    %c0_72 = arith.constant 0 : index
    %219 = vector.load %arg6[%c0_71, %c0_72] : memref<1x512xf32, #tpu.memory_space<vmem>>, vector<1x512xf32>
    %220 = vector.broadcast %219 : vector<1x512xf32> to vector<2x512xf32>
    %221 = arith.addf %218, %220 : vector<2x512xf32>
    %c0_73 = arith.constant 0 : index
    %c0_74 = arith.constant 0 : index
    %222 = vector.load %arg5[%c0_73, %c0_74] : memref<128x512xf32, #tpu.memory_space<vmem>>, vector<128x512xf32>
    %cst_75 = arith.constant dense<0.000000e+00> : vector<2x512xf32>
    %223 = tpu.matmul %181, %222, %cst_75 {dimension_numbers = #tpu.dot_dimension_numbers<[1], [0], [0], [1], [0, 0, 1, 1], [], []>} : vector<2x128xf32>, vector<128x512xf32>, vector<2x512xf32> -> vector<2x512xf32>
    %224 = arith.addf %221, %223 : vector<2x512xf32>
    %225 = vector.extract_strided_slice %224 {offsets = [0, 0], sizes = [2, 128], strides = [1, 1]} : vector<2x512xf32> to vector<2x128xf32>
    %226 = arith.negf %225 : vector<2x128xf32>
    %227 = math.exp %226 : vector<2x128xf32>
    %cst_76 = arith.constant 1.000000e+00 : f32
    %228 = vector.broadcast %cst_76 : f32 to vector<2x128xf32>
    %229 = arith.addf %228, %227 : vector<2x128xf32>
    %230 = arith.divf %228, %229 : vector<2x128xf32>
    %231 = vector.extract_strided_slice %224 {offsets = [0, 128], sizes = [2, 128], strides = [1, 1]} : vector<2x512xf32> to vector<2x128xf32>
    %232 = arith.negf %231 : vector<2x128xf32>
    %233 = math.exp %232 : vector<2x128xf32>
    %cst_77 = arith.constant 1.000000e+00 : f32
    %234 = vector.broadcast %cst_77 : f32 to vector<2x128xf32>
    %235 = arith.addf %234, %233 : vector<2x128xf32>
    %236 = arith.divf %234, %235 : vector<2x128xf32>
    %237 = vector.extract_strided_slice %224 {offsets = [0, 256], sizes = [2, 128], strides = [1, 1]} : vector<2x512xf32> to vector<2x128xf32>
    %238 = math.tanh %237 : vector<2x128xf32>
    %239 = vector.extract_strided_slice %224 {offsets = [0, 384], sizes = [2, 128], strides = [1, 1]} : vector<2x512xf32> to vector<2x128xf32>
    %240 = arith.negf %239 : vector<2x128xf32>
    %241 = math.exp %240 : vector<2x128xf32>
    %cst_78 = arith.constant 1.000000e+00 : f32
    %242 = vector.broadcast %cst_78 : f32 to vector<2x128xf32>
    %243 = arith.addf %242, %241 : vector<2x128xf32>
    %244 = arith.divf %242, %243 : vector<2x128xf32>
    %245 = arith.mulf %236, %179 : vector<2x128xf32>
    %246 = arith.mulf %230, %238 : vector<2x128xf32>
    %247 = arith.addf %245, %246 : vector<2x128xf32>
    %248 = math.tanh %247 : vector<2x128xf32>
    %249 = arith.mulf %244, %248 : vector<2x128xf32>
    %c0_79 = arith.constant 0 : index
    %c4 = arith.constant 4 : index
    %250 = memref.load %arg1[%c0_79, %c4] : memref<2x8xi32, #tpu.memory_space<smem>>
    %251 = arith.index_cast %250 : i32 to index
    %c0_80 = arith.constant 0 : index
    %252 = vector.load %arg2[%251, %c0_80] : memref<50x512xf32, #tpu.memory_space<vmem>>, vector<1x512xf32>
    %c1_81 = arith.constant 1 : index
    %c4_82 = arith.constant 4 : index
    %253 = memref.load %arg1[%c1_81, %c4_82] : memref<2x8xi32, #tpu.memory_space<smem>>
    %254 = arith.index_cast %253 : i32 to index
    %c0_83 = arith.constant 0 : index
    %255 = vector.load %arg2[%254, %c0_83] : memref<50x512xf32, #tpu.memory_space<vmem>>, vector<1x512xf32>
    %256 = tpu.concatenate %252, %255 in 0 : vector<1x512xf32>, vector<1x512xf32> -> vector<2x512xf32>
    %c0_84 = arith.constant 0 : index
    %c0_85 = arith.constant 0 : index
    %257 = vector.load %arg3[%c0_84, %c0_85] : memref<128x512xf32, #tpu.memory_space<vmem>>, vector<128x512xf32>
    %cst_86 = arith.constant dense<0.000000e+00> : vector<2x512xf32>
    %258 = tpu.matmul %216, %257, %cst_86 {dimension_numbers = #tpu.dot_dimension_numbers<[1], [0], [0], [1], [0, 0, 1, 1], [], []>} : vector<2x128xf32>, vector<128x512xf32>, vector<2x512xf32> -> vector<2x512xf32>
    %259 = arith.addf %256, %258 : vector<2x512xf32>
    %260 = vector.extract_strided_slice %259 {offsets = [0, 0], sizes = [2, 128], strides = [1, 1]} : vector<2x512xf32> to vector<2x128xf32>
    %261 = arith.negf %260 : vector<2x128xf32>
    %262 = math.exp %261 : vector<2x128xf32>
    %cst_87 = arith.constant 1.000000e+00 : f32
    %263 = vector.broadcast %cst_87 : f32 to vector<2x128xf32>
    %264 = arith.addf %263, %262 : vector<2x128xf32>
    %265 = arith.divf %263, %264 : vector<2x128xf32>
    %266 = vector.extract_strided_slice %259 {offsets = [0, 128], sizes = [2, 128], strides = [1, 1]} : vector<2x512xf32> to vector<2x128xf32>
    %267 = arith.negf %266 : vector<2x128xf32>
    %268 = math.exp %267 : vector<2x128xf32>
    %cst_88 = arith.constant 1.000000e+00 : f32
    %269 = vector.broadcast %cst_88 : f32 to vector<2x128xf32>
    %270 = arith.addf %269, %268 : vector<2x128xf32>
    %271 = arith.divf %269, %270 : vector<2x128xf32>
    %272 = vector.extract_strided_slice %259 {offsets = [0, 256], sizes = [2, 128], strides = [1, 1]} : vector<2x512xf32> to vector<2x128xf32>
    %273 = math.tanh %272 : vector<2x128xf32>
    %274 = vector.extract_strided_slice %259 {offsets = [0, 384], sizes = [2, 128], strides = [1, 1]} : vector<2x512xf32> to vector<2x128xf32>
    %275 = arith.negf %274 : vector<2x128xf32>
    %276 = math.exp %275 : vector<2x128xf32>
    %cst_89 = arith.constant 1.000000e+00 : f32
    %277 = vector.broadcast %cst_89 : f32 to vector<2x128xf32>
    %278 = arith.addf %277, %276 : vector<2x128xf32>
    %279 = arith.divf %277, %278 : vector<2x128xf32>
    %280 = arith.mulf %271, %214 : vector<2x128xf32>
    %281 = arith.mulf %265, %273 : vector<2x128xf32>
    %282 = arith.addf %280, %281 : vector<2x128xf32>
    %283 = math.tanh %282 : vector<2x128xf32>
    %284 = arith.mulf %279, %283 : vector<2x128xf32>
    %c0_90 = arith.constant 0 : index
    %c0_91 = arith.constant 0 : index
    %285 = vector.load %arg4[%c0_90, %c0_91] : memref<128x512xf32, #tpu.memory_space<vmem>>, vector<128x512xf32>
    %cst_92 = arith.constant dense<0.000000e+00> : vector<2x512xf32>
    %286 = tpu.matmul %284, %285, %cst_92 {dimension_numbers = #tpu.dot_dimension_numbers<[1], [0], [0], [1], [0, 0, 1, 1], [], []>} : vector<2x128xf32>, vector<128x512xf32>, vector<2x512xf32> -> vector<2x512xf32>
    %c0_93 = arith.constant 0 : index
    %c0_94 = arith.constant 0 : index
    %287 = vector.load %arg6[%c0_93, %c0_94] : memref<1x512xf32, #tpu.memory_space<vmem>>, vector<1x512xf32>
    %288 = vector.broadcast %287 : vector<1x512xf32> to vector<2x512xf32>
    %289 = arith.addf %286, %288 : vector<2x512xf32>
    %c0_95 = arith.constant 0 : index
    %c0_96 = arith.constant 0 : index
    %290 = vector.load %arg5[%c0_95, %c0_96] : memref<128x512xf32, #tpu.memory_space<vmem>>, vector<128x512xf32>
    %cst_97 = arith.constant dense<0.000000e+00> : vector<2x512xf32>
    %291 = tpu.matmul %249, %290, %cst_97 {dimension_numbers = #tpu.dot_dimension_numbers<[1], [0], [0], [1], [0, 0, 1, 1], [], []>} : vector<2x128xf32>, vector<128x512xf32>, vector<2x512xf32> -> vector<2x512xf32>
    %292 = arith.addf %289, %291 : vector<2x512xf32>
    %293 = vector.extract_strided_slice %292 {offsets = [0, 0], sizes = [2, 128], strides = [1, 1]} : vector<2x512xf32> to vector<2x128xf32>
    %294 = arith.negf %293 : vector<2x128xf32>
    %295 = math.exp %294 : vector<2x128xf32>
    %cst_98 = arith.constant 1.000000e+00 : f32
    %296 = vector.broadcast %cst_98 : f32 to vector<2x128xf32>
    %297 = arith.addf %296, %295 : vector<2x128xf32>
    %298 = arith.divf %296, %297 : vector<2x128xf32>
    %299 = vector.extract_strided_slice %292 {offsets = [0, 128], sizes = [2, 128], strides = [1, 1]} : vector<2x512xf32> to vector<2x128xf32>
    %300 = arith.negf %299 : vector<2x128xf32>
    %301 = math.exp %300 : vector<2x128xf32>
    %cst_99 = arith.constant 1.000000e+00 : f32
    %302 = vector.broadcast %cst_99 : f32 to vector<2x128xf32>
    %303 = arith.addf %302, %301 : vector<2x128xf32>
    %304 = arith.divf %302, %303 : vector<2x128xf32>
    %305 = vector.extract_strided_slice %292 {offsets = [0, 256], sizes = [2, 128], strides = [1, 1]} : vector<2x512xf32> to vector<2x128xf32>
    %306 = math.tanh %305 : vector<2x128xf32>
    %307 = vector.extract_strided_slice %292 {offsets = [0, 384], sizes = [2, 128], strides = [1, 1]} : vector<2x512xf32> to vector<2x128xf32>
    %308 = arith.negf %307 : vector<2x128xf32>
    %309 = math.exp %308 : vector<2x128xf32>
    %cst_100 = arith.constant 1.000000e+00 : f32
    %310 = vector.broadcast %cst_100 : f32 to vector<2x128xf32>
    %311 = arith.addf %310, %309 : vector<2x128xf32>
    %312 = arith.divf %310, %311 : vector<2x128xf32>
    %313 = arith.mulf %304, %247 : vector<2x128xf32>
    %314 = arith.mulf %298, %306 : vector<2x128xf32>
    %315 = arith.addf %313, %314 : vector<2x128xf32>
    %316 = math.tanh %315 : vector<2x128xf32>
    %317 = arith.mulf %312, %316 : vector<2x128xf32>
    %c0_101 = arith.constant 0 : index
    %c5 = arith.constant 5 : index
    %318 = memref.load %arg1[%c0_101, %c5] : memref<2x8xi32, #tpu.memory_space<smem>>
    %319 = arith.index_cast %318 : i32 to index
    %c0_102 = arith.constant 0 : index
    %320 = vector.load %arg2[%319, %c0_102] : memref<50x512xf32, #tpu.memory_space<vmem>>, vector<1x512xf32>
    %c1_103 = arith.constant 1 : index
    %c5_104 = arith.constant 5 : index
    %321 = memref.load %arg1[%c1_103, %c5_104] : memref<2x8xi32, #tpu.memory_space<smem>>
    %322 = arith.index_cast %321 : i32 to index
    %c0_105 = arith.constant 0 : index
    %323 = vector.load %arg2[%322, %c0_105] : memref<50x512xf32, #tpu.memory_space<vmem>>, vector<1x512xf32>
    %324 = tpu.concatenate %320, %323 in 0 : vector<1x512xf32>, vector<1x512xf32> -> vector<2x512xf32>
    %c0_106 = arith.constant 0 : index
    %c0_107 = arith.constant 0 : index
    %325 = vector.load %arg3[%c0_106, %c0_107] : memref<128x512xf32, #tpu.memory_space<vmem>>, vector<128x512xf32>
    %cst_108 = arith.constant dense<0.000000e+00> : vector<2x512xf32>
    %326 = tpu.matmul %284, %325, %cst_108 {dimension_numbers = #tpu.dot_dimension_numbers<[1], [0], [0], [1], [0, 0, 1, 1], [], []>} : vector<2x128xf32>, vector<128x512xf32>, vector<2x512xf32> -> vector<2x512xf32>
    %327 = arith.addf %324, %326 : vector<2x512xf32>
    %328 = vector.extract_strided_slice %327 {offsets = [0, 0], sizes = [2, 128], strides = [1, 1]} : vector<2x512xf32> to vector<2x128xf32>
    %329 = arith.negf %328 : vector<2x128xf32>
    %330 = math.exp %329 : vector<2x128xf32>
    %cst_109 = arith.constant 1.000000e+00 : f32
    %331 = vector.broadcast %cst_109 : f32 to vector<2x128xf32>
    %332 = arith.addf %331, %330 : vector<2x128xf32>
    %333 = arith.divf %331, %332 : vector<2x128xf32>
    %334 = vector.extract_strided_slice %327 {offsets = [0, 128], sizes = [2, 128], strides = [1, 1]} : vector<2x512xf32> to vector<2x128xf32>
    %335 = arith.negf %334 : vector<2x128xf32>
    %336 = math.exp %335 : vector<2x128xf32>
    %cst_110 = arith.constant 1.000000e+00 : f32
    %337 = vector.broadcast %cst_110 : f32 to vector<2x128xf32>
    %338 = arith.addf %337, %336 : vector<2x128xf32>
    %339 = arith.divf %337, %338 : vector<2x128xf32>
    %340 = vector.extract_strided_slice %327 {offsets = [0, 256], sizes = [2, 128], strides = [1, 1]} : vector<2x512xf32> to vector<2x128xf32>
    %341 = math.tanh %340 : vector<2x128xf32>
    %342 = vector.extract_strided_slice %327 {offsets = [0, 384], sizes = [2, 128], strides = [1, 1]} : vector<2x512xf32> to vector<2x128xf32>
    %343 = arith.negf %342 : vector<2x128xf32>
    %344 = math.exp %343 : vector<2x128xf32>
    %cst_111 = arith.constant 1.000000e+00 : f32
    %345 = vector.broadcast %cst_111 : f32 to vector<2x128xf32>
    %346 = arith.addf %345, %344 : vector<2x128xf32>
    %347 = arith.divf %345, %346 : vector<2x128xf32>
    %348 = arith.mulf %339, %282 : vector<2x128xf32>
    %349 = arith.mulf %333, %341 : vector<2x128xf32>
    %350 = arith.addf %348, %349 : vector<2x128xf32>
    %351 = math.tanh %350 : vector<2x128xf32>
    %352 = arith.mulf %347, %351 : vector<2x128xf32>
    %c0_112 = arith.constant 0 : index
    %c0_113 = arith.constant 0 : index
    %353 = vector.load %arg4[%c0_112, %c0_113] : memref<128x512xf32, #tpu.memory_space<vmem>>, vector<128x512xf32>
    %cst_114 = arith.constant dense<0.000000e+00> : vector<2x512xf32>
    %354 = tpu.matmul %352, %353, %cst_114 {dimension_numbers = #tpu.dot_dimension_numbers<[1], [0], [0], [1], [0, 0, 1, 1], [], []>} : vector<2x128xf32>, vector<128x512xf32>, vector<2x512xf32> -> vector<2x512xf32>
    %c0_115 = arith.constant 0 : index
    %c0_116 = arith.constant 0 : index
    %355 = vector.load %arg6[%c0_115, %c0_116] : memref<1x512xf32, #tpu.memory_space<vmem>>, vector<1x512xf32>
    %356 = vector.broadcast %355 : vector<1x512xf32> to vector<2x512xf32>
    %357 = arith.addf %354, %356 : vector<2x512xf32>
    %c0_117 = arith.constant 0 : index
    %c0_118 = arith.constant 0 : index
    %358 = vector.load %arg5[%c0_117, %c0_118] : memref<128x512xf32, #tpu.memory_space<vmem>>, vector<128x512xf32>
    %cst_119 = arith.constant dense<0.000000e+00> : vector<2x512xf32>
    %359 = tpu.matmul %317, %358, %cst_119 {dimension_numbers = #tpu.dot_dimension_numbers<[1], [0], [0], [1], [0, 0, 1, 1], [], []>} : vector<2x128xf32>, vector<128x512xf32>, vector<2x512xf32> -> vector<2x512xf32>
    %360 = arith.addf %357, %359 : vector<2x512xf32>
    %361 = vector.extract_strided_slice %360 {offsets = [0, 0], sizes = [2, 128], strides = [1, 1]} : vector<2x512xf32> to vector<2x128xf32>
    %362 = arith.negf %361 : vector<2x128xf32>
    %363 = math.exp %362 : vector<2x128xf32>
    %cst_120 = arith.constant 1.000000e+00 : f32
    %364 = vector.broadcast %cst_120 : f32 to vector<2x128xf32>
    %365 = arith.addf %364, %363 : vector<2x128xf32>
    %366 = arith.divf %364, %365 : vector<2x128xf32>
    %367 = vector.extract_strided_slice %360 {offsets = [0, 128], sizes = [2, 128], strides = [1, 1]} : vector<2x512xf32> to vector<2x128xf32>
    %368 = arith.negf %367 : vector<2x128xf32>
    %369 = math.exp %368 : vector<2x128xf32>
    %cst_121 = arith.constant 1.000000e+00 : f32
    %370 = vector.broadcast %cst_121 : f32 to vector<2x128xf32>
    %371 = arith.addf %370, %369 : vector<2x128xf32>
    %372 = arith.divf %370, %371 : vector<2x128xf32>
    %373 = vector.extract_strided_slice %360 {offsets = [0, 256], sizes = [2, 128], strides = [1, 1]} : vector<2x512xf32> to vector<2x128xf32>
    %374 = math.tanh %373 : vector<2x128xf32>
    %375 = vector.extract_strided_slice %360 {offsets = [0, 384], sizes = [2, 128], strides = [1, 1]} : vector<2x512xf32> to vector<2x128xf32>
    %376 = arith.negf %375 : vector<2x128xf32>
    %377 = math.exp %376 : vector<2x128xf32>
    %cst_122 = arith.constant 1.000000e+00 : f32
    %378 = vector.broadcast %cst_122 : f32 to vector<2x128xf32>
    %379 = arith.addf %378, %377 : vector<2x128xf32>
    %380 = arith.divf %378, %379 : vector<2x128xf32>
    %381 = arith.mulf %372, %315 : vector<2x128xf32>
    %382 = arith.mulf %366, %374 : vector<2x128xf32>
    %383 = arith.addf %381, %382 : vector<2x128xf32>
    %384 = math.tanh %383 : vector<2x128xf32>
    %385 = arith.mulf %380, %384 : vector<2x128xf32>
    %c0_123 = arith.constant 0 : index
    %c6 = arith.constant 6 : index
    %386 = memref.load %arg1[%c0_123, %c6] : memref<2x8xi32, #tpu.memory_space<smem>>
    %387 = arith.index_cast %386 : i32 to index
    %c0_124 = arith.constant 0 : index
    %388 = vector.load %arg2[%387, %c0_124] : memref<50x512xf32, #tpu.memory_space<vmem>>, vector<1x512xf32>
    %c1_125 = arith.constant 1 : index
    %c6_126 = arith.constant 6 : index
    %389 = memref.load %arg1[%c1_125, %c6_126] : memref<2x8xi32, #tpu.memory_space<smem>>
    %390 = arith.index_cast %389 : i32 to index
    %c0_127 = arith.constant 0 : index
    %391 = vector.load %arg2[%390, %c0_127] : memref<50x512xf32, #tpu.memory_space<vmem>>, vector<1x512xf32>
    %392 = tpu.concatenate %388, %391 in 0 : vector<1x512xf32>, vector<1x512xf32> -> vector<2x512xf32>
    %c0_128 = arith.constant 0 : index
    %c0_129 = arith.constant 0 : index
    %393 = vector.load %arg3[%c0_128, %c0_129] : memref<128x512xf32, #tpu.memory_space<vmem>>, vector<128x512xf32>
    %cst_130 = arith.constant dense<0.000000e+00> : vector<2x512xf32>
    %394 = tpu.matmul %352, %393, %cst_130 {dimension_numbers = #tpu.dot_dimension_numbers<[1], [0], [0], [1], [0, 0, 1, 1], [], []>} : vector<2x128xf32>, vector<128x512xf32>, vector<2x512xf32> -> vector<2x512xf32>
    %395 = arith.addf %392, %394 : vector<2x512xf32>
    %396 = vector.extract_strided_slice %395 {offsets = [0, 0], sizes = [2, 128], strides = [1, 1]} : vector<2x512xf32> to vector<2x128xf32>
    %397 = arith.negf %396 : vector<2x128xf32>
    %398 = math.exp %397 : vector<2x128xf32>
    %cst_131 = arith.constant 1.000000e+00 : f32
    %399 = vector.broadcast %cst_131 : f32 to vector<2x128xf32>
    %400 = arith.addf %399, %398 : vector<2x128xf32>
    %401 = arith.divf %399, %400 : vector<2x128xf32>
    %402 = vector.extract_strided_slice %395 {offsets = [0, 128], sizes = [2, 128], strides = [1, 1]} : vector<2x512xf32> to vector<2x128xf32>
    %403 = arith.negf %402 : vector<2x128xf32>
    %404 = math.exp %403 : vector<2x128xf32>
    %cst_132 = arith.constant 1.000000e+00 : f32
    %405 = vector.broadcast %cst_132 : f32 to vector<2x128xf32>
    %406 = arith.addf %405, %404 : vector<2x128xf32>
    %407 = arith.divf %405, %406 : vector<2x128xf32>
    %408 = vector.extract_strided_slice %395 {offsets = [0, 256], sizes = [2, 128], strides = [1, 1]} : vector<2x512xf32> to vector<2x128xf32>
    %409 = math.tanh %408 : vector<2x128xf32>
    %410 = vector.extract_strided_slice %395 {offsets = [0, 384], sizes = [2, 128], strides = [1, 1]} : vector<2x512xf32> to vector<2x128xf32>
    %411 = arith.negf %410 : vector<2x128xf32>
    %412 = math.exp %411 : vector<2x128xf32>
    %cst_133 = arith.constant 1.000000e+00 : f32
    %413 = vector.broadcast %cst_133 : f32 to vector<2x128xf32>
    %414 = arith.addf %413, %412 : vector<2x128xf32>
    %415 = arith.divf %413, %414 : vector<2x128xf32>
    %416 = arith.mulf %407, %350 : vector<2x128xf32>
    %417 = arith.mulf %401, %409 : vector<2x128xf32>
    %418 = arith.addf %416, %417 : vector<2x128xf32>
    %419 = math.tanh %418 : vector<2x128xf32>
    %420 = arith.mulf %415, %419 : vector<2x128xf32>
    %c0_134 = arith.constant 0 : index
    %c0_135 = arith.constant 0 : index
    %421 = vector.load %arg4[%c0_134, %c0_135] : memref<128x512xf32, #tpu.memory_space<vmem>>, vector<128x512xf32>
    %cst_136 = arith.constant dense<0.000000e+00> : vector<2x512xf32>
    %422 = tpu.matmul %420, %421, %cst_136 {dimension_numbers = #tpu.dot_dimension_numbers<[1], [0], [0], [1], [0, 0, 1, 1], [], []>} : vector<2x128xf32>, vector<128x512xf32>, vector<2x512xf32> -> vector<2x512xf32>
    %c0_137 = arith.constant 0 : index
    %c0_138 = arith.constant 0 : index
    %423 = vector.load %arg6[%c0_137, %c0_138] : memref<1x512xf32, #tpu.memory_space<vmem>>, vector<1x512xf32>
    %424 = vector.broadcast %423 : vector<1x512xf32> to vector<2x512xf32>
    %425 = arith.addf %422, %424 : vector<2x512xf32>
    %c0_139 = arith.constant 0 : index
    %c0_140 = arith.constant 0 : index
    %426 = vector.load %arg5[%c0_139, %c0_140] : memref<128x512xf32, #tpu.memory_space<vmem>>, vector<128x512xf32>
    %cst_141 = arith.constant dense<0.000000e+00> : vector<2x512xf32>
    %427 = tpu.matmul %385, %426, %cst_141 {dimension_numbers = #tpu.dot_dimension_numbers<[1], [0], [0], [1], [0, 0, 1, 1], [], []>} : vector<2x128xf32>, vector<128x512xf32>, vector<2x512xf32> -> vector<2x512xf32>
    %428 = arith.addf %425, %427 : vector<2x512xf32>
    %429 = vector.extract_strided_slice %428 {offsets = [0, 0], sizes = [2, 128], strides = [1, 1]} : vector<2x512xf32> to vector<2x128xf32>
    %430 = arith.negf %429 : vector<2x128xf32>
    %431 = math.exp %430 : vector<2x128xf32>
    %cst_142 = arith.constant 1.000000e+00 : f32
    %432 = vector.broadcast %cst_142 : f32 to vector<2x128xf32>
    %433 = arith.addf %432, %431 : vector<2x128xf32>
    %434 = arith.divf %432, %433 : vector<2x128xf32>
    %435 = vector.extract_strided_slice %428 {offsets = [0, 128], sizes = [2, 128], strides = [1, 1]} : vector<2x512xf32> to vector<2x128xf32>
    %436 = arith.negf %435 : vector<2x128xf32>
    %437 = math.exp %436 : vector<2x128xf32>
    %cst_143 = arith.constant 1.000000e+00 : f32
    %438 = vector.broadcast %cst_143 : f32 to vector<2x128xf32>
    %439 = arith.addf %438, %437 : vector<2x128xf32>
    %440 = arith.divf %438, %439 : vector<2x128xf32>
    %441 = vector.extract_strided_slice %428 {offsets = [0, 256], sizes = [2, 128], strides = [1, 1]} : vector<2x512xf32> to vector<2x128xf32>
    %442 = math.tanh %441 : vector<2x128xf32>
    %443 = vector.extract_strided_slice %428 {offsets = [0, 384], sizes = [2, 128], strides = [1, 1]} : vector<2x512xf32> to vector<2x128xf32>
    %444 = arith.negf %443 : vector<2x128xf32>
    %445 = math.exp %444 : vector<2x128xf32>
    %cst_144 = arith.constant 1.000000e+00 : f32
    %446 = vector.broadcast %cst_144 : f32 to vector<2x128xf32>
    %447 = arith.addf %446, %445 : vector<2x128xf32>
    %448 = arith.divf %446, %447 : vector<2x128xf32>
    %449 = arith.mulf %440, %383 : vector<2x128xf32>
    %450 = arith.mulf %434, %442 : vector<2x128xf32>
    %451 = arith.addf %449, %450 : vector<2x128xf32>
    %452 = math.tanh %451 : vector<2x128xf32>
    %453 = arith.mulf %448, %452 : vector<2x128xf32>
    %c0_145 = arith.constant 0 : index
    %c7 = arith.constant 7 : index
    %454 = memref.load %arg1[%c0_145, %c7] : memref<2x8xi32, #tpu.memory_space<smem>>
    %455 = arith.index_cast %454 : i32 to index
    %c0_146 = arith.constant 0 : index
    %456 = vector.load %arg2[%455, %c0_146] : memref<50x512xf32, #tpu.memory_space<vmem>>, vector<1x512xf32>
    %c1_147 = arith.constant 1 : index
    %c7_148 = arith.constant 7 : index
    %457 = memref.load %arg1[%c1_147, %c7_148] : memref<2x8xi32, #tpu.memory_space<smem>>
    %458 = arith.index_cast %457 : i32 to index
    %c0_149 = arith.constant 0 : index
    %459 = vector.load %arg2[%458, %c0_149] : memref<50x512xf32, #tpu.memory_space<vmem>>, vector<1x512xf32>
    %460 = tpu.concatenate %456, %459 in 0 : vector<1x512xf32>, vector<1x512xf32> -> vector<2x512xf32>
    %c0_150 = arith.constant 0 : index
    %c0_151 = arith.constant 0 : index
    %461 = vector.load %arg3[%c0_150, %c0_151] : memref<128x512xf32, #tpu.memory_space<vmem>>, vector<128x512xf32>
    %cst_152 = arith.constant dense<0.000000e+00> : vector<2x512xf32>
    %462 = tpu.matmul %420, %461, %cst_152 {dimension_numbers = #tpu.dot_dimension_numbers<[1], [0], [0], [1], [0, 0, 1, 1], [], []>} : vector<2x128xf32>, vector<128x512xf32>, vector<2x512xf32> -> vector<2x512xf32>
    %463 = arith.addf %460, %462 : vector<2x512xf32>
    %464 = vector.extract_strided_slice %463 {offsets = [0, 0], sizes = [2, 128], strides = [1, 1]} : vector<2x512xf32> to vector<2x128xf32>
    %465 = arith.negf %464 : vector<2x128xf32>
    %466 = math.exp %465 : vector<2x128xf32>
    %cst_153 = arith.constant 1.000000e+00 : f32
    %467 = vector.broadcast %cst_153 : f32 to vector<2x128xf32>
    %468 = arith.addf %467, %466 : vector<2x128xf32>
    %469 = arith.divf %467, %468 : vector<2x128xf32>
    %470 = vector.extract_strided_slice %463 {offsets = [0, 128], sizes = [2, 128], strides = [1, 1]} : vector<2x512xf32> to vector<2x128xf32>
    %471 = arith.negf %470 : vector<2x128xf32>
    %472 = math.exp %471 : vector<2x128xf32>
    %cst_154 = arith.constant 1.000000e+00 : f32
    %473 = vector.broadcast %cst_154 : f32 to vector<2x128xf32>
    %474 = arith.addf %473, %472 : vector<2x128xf32>
    %475 = arith.divf %473, %474 : vector<2x128xf32>
    %476 = vector.extract_strided_slice %463 {offsets = [0, 256], sizes = [2, 128], strides = [1, 1]} : vector<2x512xf32> to vector<2x128xf32>
    %477 = math.tanh %476 : vector<2x128xf32>
    %478 = vector.extract_strided_slice %463 {offsets = [0, 384], sizes = [2, 128], strides = [1, 1]} : vector<2x512xf32> to vector<2x128xf32>
    %479 = arith.negf %478 : vector<2x128xf32>
    %480 = math.exp %479 : vector<2x128xf32>
    %cst_155 = arith.constant 1.000000e+00 : f32
    %481 = vector.broadcast %cst_155 : f32 to vector<2x128xf32>
    %482 = arith.addf %481, %480 : vector<2x128xf32>
    %483 = arith.divf %481, %482 : vector<2x128xf32>
    %484 = arith.mulf %475, %418 : vector<2x128xf32>
    %485 = arith.mulf %469, %477 : vector<2x128xf32>
    %486 = arith.addf %484, %485 : vector<2x128xf32>
    %487 = math.tanh %486 : vector<2x128xf32>
    %488 = arith.mulf %483, %487 : vector<2x128xf32>
    %c0_156 = arith.constant 0 : index
    %c0_157 = arith.constant 0 : index
    %489 = vector.load %arg4[%c0_156, %c0_157] : memref<128x512xf32, #tpu.memory_space<vmem>>, vector<128x512xf32>
    %cst_158 = arith.constant dense<0.000000e+00> : vector<2x512xf32>
    %490 = tpu.matmul %488, %489, %cst_158 {dimension_numbers = #tpu.dot_dimension_numbers<[1], [0], [0], [1], [0, 0, 1, 1], [], []>} : vector<2x128xf32>, vector<128x512xf32>, vector<2x512xf32> -> vector<2x512xf32>
    %c0_159 = arith.constant 0 : index
    %c0_160 = arith.constant 0 : index
    %491 = vector.load %arg6[%c0_159, %c0_160] : memref<1x512xf32, #tpu.memory_space<vmem>>, vector<1x512xf32>
    %492 = vector.broadcast %491 : vector<1x512xf32> to vector<2x512xf32>
    %493 = arith.addf %490, %492 : vector<2x512xf32>
    %c0_161 = arith.constant 0 : index
    %c0_162 = arith.constant 0 : index
    %494 = vector.load %arg5[%c0_161, %c0_162] : memref<128x512xf32, #tpu.memory_space<vmem>>, vector<128x512xf32>
    %cst_163 = arith.constant dense<0.000000e+00> : vector<2x512xf32>
    %495 = tpu.matmul %453, %494, %cst_163 {dimension_numbers = #tpu.dot_dimension_numbers<[1], [0], [0], [1], [0, 0, 1, 1], [], []>} : vector<2x128xf32>, vector<128x512xf32>, vector<2x512xf32> -> vector<2x512xf32>
    %496 = arith.addf %493, %495 : vector<2x512xf32>
    %497 = vector.extract_strided_slice %496 {offsets = [0, 0], sizes = [2, 128], strides = [1, 1]} : vector<2x512xf32> to vector<2x128xf32>
    %498 = arith.negf %497 : vector<2x128xf32>
    %499 = math.exp %498 : vector<2x128xf32>
    %cst_164 = arith.constant 1.000000e+00 : f32
    %500 = vector.broadcast %cst_164 : f32 to vector<2x128xf32>
    %501 = arith.addf %500, %499 : vector<2x128xf32>
    %502 = arith.divf %500, %501 : vector<2x128xf32>
    %503 = vector.extract_strided_slice %496 {offsets = [0, 128], sizes = [2, 128], strides = [1, 1]} : vector<2x512xf32> to vector<2x128xf32>
    %504 = arith.negf %503 : vector<2x128xf32>
    %505 = math.exp %504 : vector<2x128xf32>
    %cst_165 = arith.constant 1.000000e+00 : f32
    %506 = vector.broadcast %cst_165 : f32 to vector<2x128xf32>
    %507 = arith.addf %506, %505 : vector<2x128xf32>
    %508 = arith.divf %506, %507 : vector<2x128xf32>
    %509 = vector.extract_strided_slice %496 {offsets = [0, 256], sizes = [2, 128], strides = [1, 1]} : vector<2x512xf32> to vector<2x128xf32>
    %510 = math.tanh %509 : vector<2x128xf32>
    %511 = vector.extract_strided_slice %496 {offsets = [0, 384], sizes = [2, 128], strides = [1, 1]} : vector<2x512xf32> to vector<2x128xf32>
    %512 = arith.negf %511 : vector<2x128xf32>
    %513 = math.exp %512 : vector<2x128xf32>
    %cst_166 = arith.constant 1.000000e+00 : f32
    %514 = vector.broadcast %cst_166 : f32 to vector<2x128xf32>
    %515 = arith.addf %514, %513 : vector<2x128xf32>
    %516 = arith.divf %514, %515 : vector<2x128xf32>
    %517 = arith.mulf %508, %451 : vector<2x128xf32>
    %518 = arith.mulf %502, %510 : vector<2x128xf32>
    %519 = arith.addf %517, %518 : vector<2x128xf32>
    %520 = math.tanh %519 : vector<2x128xf32>
    %521 = arith.mulf %516, %520 : vector<2x128xf32>
    %522 = vector.extract_strided_slice %45 {offsets = [0, 0], sizes = [1, 128], strides = [1, 1]} : vector<2x128xf32> to vector<1x128xf32>
    %523 = vector.extract_strided_slice %113 {offsets = [0, 0], sizes = [1, 128], strides = [1, 1]} : vector<2x128xf32> to vector<1x128xf32>
    %524 = vector.extract_strided_slice %181 {offsets = [0, 0], sizes = [1, 128], strides = [1, 1]} : vector<2x128xf32> to vector<1x128xf32>
    %525 = vector.extract_strided_slice %249 {offsets = [0, 0], sizes = [1, 128], strides = [1, 1]} : vector<2x128xf32> to vector<1x128xf32>
    %526 = vector.extract_strided_slice %317 {offsets = [0, 0], sizes = [1, 128], strides = [1, 1]} : vector<2x128xf32> to vector<1x128xf32>
    %527 = vector.extract_strided_slice %385 {offsets = [0, 0], sizes = [1, 128], strides = [1, 1]} : vector<2x128xf32> to vector<1x128xf32>
    %528 = vector.extract_strided_slice %453 {offsets = [0, 0], sizes = [1, 128], strides = [1, 1]} : vector<2x128xf32> to vector<1x128xf32>
    %529 = vector.extract_strided_slice %521 {offsets = [0, 0], sizes = [1, 128], strides = [1, 1]} : vector<2x128xf32> to vector<1x128xf32>
    %530 = tpu.concatenate %522, %523, %524, %525, %526, %527, %528, %529 in 0 : vector<1x128xf32>, vector<1x128xf32>, vector<1x128xf32>, vector<1x128xf32>, vector<1x128xf32>, vector<1x128xf32>, vector<1x128xf32>, vector<1x128xf32> -> vector<8x128xf32>
    %531 = vector.extract_strided_slice %45 {offsets = [1, 0], sizes = [1, 128], strides = [1, 1]} : vector<2x128xf32> to vector<1x128xf32>
    %532 = vector.extract_strided_slice %113 {offsets = [1, 0], sizes = [1, 128], strides = [1, 1]} : vector<2x128xf32> to vector<1x128xf32>
    %533 = vector.extract_strided_slice %181 {offsets = [1, 0], sizes = [1, 128], strides = [1, 1]} : vector<2x128xf32> to vector<1x128xf32>
    %534 = vector.extract_strided_slice %249 {offsets = [1, 0], sizes = [1, 128], strides = [1, 1]} : vector<2x128xf32> to vector<1x128xf32>
    %535 = vector.extract_strided_slice %317 {offsets = [1, 0], sizes = [1, 128], strides = [1, 1]} : vector<2x128xf32> to vector<1x128xf32>
    %536 = vector.extract_strided_slice %385 {offsets = [1, 0], sizes = [1, 128], strides = [1, 1]} : vector<2x128xf32> to vector<1x128xf32>
    %537 = vector.extract_strided_slice %453 {offsets = [1, 0], sizes = [1, 128], strides = [1, 1]} : vector<2x128xf32> to vector<1x128xf32>
    %538 = vector.extract_strided_slice %521 {offsets = [1, 0], sizes = [1, 128], strides = [1, 1]} : vector<2x128xf32> to vector<1x128xf32>
    %539 = tpu.concatenate %531, %532, %533, %534, %535, %536, %537, %538 in 0 : vector<1x128xf32>, vector<1x128xf32>, vector<1x128xf32>, vector<1x128xf32>, vector<1x128xf32>, vector<1x128xf32>, vector<1x128xf32>, vector<1x128xf32> -> vector<8x128xf32>
    %540 = tpu.concatenate %530, %539 in 0 : vector<8x128xf32>, vector<8x128xf32> -> vector<16x128xf32>
    %c0_167 = arith.constant 0 : index
    %c0_168 = arith.constant 0 : index
    %541 = vector.load %arg7[%c0_167, %c0_168] : memref<128x128xf32, #tpu.memory_space<vmem>>, vector<128x128xf32>
    %cst_169 = arith.constant dense<0.000000e+00> : vector<16x128xf32>
    %542 = tpu.matmul %540, %541, %cst_169 {dimension_numbers = #tpu.dot_dimension_numbers<[1], [0], [0], [1], [0, 0, 1, 1], [], []>} : vector<16x128xf32>, vector<128x128xf32>, vector<16x128xf32> -> vector<16x128xf32>
    %c0_170 = arith.constant 0 : index
    %c0_171 = arith.constant 0 : index
    %543 = vector.load %arg8[%c0_170, %c0_171] : memref<1x128xf32, #tpu.memory_space<vmem>>, vector<1x128xf32>
    %544 = vector.broadcast %543 : vector<1x128xf32> to vector<16x128xf32>
    %545 = arith.addf %542, %544 : vector<16x128xf32>
    %c0_172 = arith.constant 0 : index
    %c0_173 = arith.constant 0 : index
    %546 = vector.load %arg9[%c0_172, %c0_173] : memref<16x128xf32, #tpu.memory_space<vmem>>, vector<16x128xf32>
    tpu.vector_store %arg9[%c0_172, %c0_173], %545 {strides = array<i32>} : memref<16x128xf32, #tpu.memory_space<vmem>>, vector<16x128xf32>,
    return
  }
  func.func @transform_0(%arg0: i32, %arg1: memref<2x8xi32, #tpu.memory_space<smem>>) -> (i32, i32) {
    %c0_i32 = arith.constant 0 : i32
    %c0_i32_0 = arith.constant 0 : i32
    %c0_i32_1 = arith.constant 0 : i32
    return %c0_i32, %c0_i32_0 : i32, i32
  }
  func.func @transform_1(%arg0: i32, %arg1: memref<2x8xi32, #tpu.memory_space<smem>>) -> (i32, i32) {
    %c0_i32 = arith.constant 0 : i32
    %c0_i32_0 = arith.constant 0 : i32
    %c0_i32_1 = arith.constant 0 : i32
    return %c0_i32, %c0_i32_0 : i32, i32
  }
  func.func @transform_2(%arg0: i32, %arg1: memref<2x8xi32, #tpu.memory_space<smem>>) -> (i32, i32) {
    %c0_i32 = arith.constant 0 : i32
    %c0_i32_0 = arith.constant 0 : i32
    %c0_i32_1 = arith.constant 0 : i32
    return %c0_i32, %c0_i32_0 : i32, i32
  }
  func.func @transform_3(%arg0: i32, %arg1: memref<2x8xi32, #tpu.memory_space<smem>>) -> (i32, i32) {
    %c0_i32 = arith.constant 0 : i32
    %c0_i32_0 = arith.constant 0 : i32
    %c0_i32_1 = arith.constant 0 : i32
    return %c0_i32, %c0_i32_0 : i32, i32
  }
  func.func @transform_4(%arg0: i32, %arg1: memref<2x8xi32, #tpu.memory_space<smem>>) -> (i32, i32) {
    %c0_i32 = arith.constant 0 : i32
    %c0_i32_0 = arith.constant 0 : i32
    %c0_i32_1 = arith.constant 0 : i32
    return %c0_i32, %c0_i32_0 : i32, i32
  }
  func.func @transform_5(%arg0: i32, %arg1: memref<2x8xi32, #tpu.memory_space<smem>>) -> (i32, i32) {
    %c0_i32 = arith.constant 0 : i32
    %c0_i32_0 = arith.constant 0 : i32
    %c0_i32_1 = arith.constant 0 : i32
    return %c0_i32, %c0_i32_0 : i32, i32
  }
  func.func @transform_6(%arg0: i32, %arg1: memref<2x8xi32, #tpu.memory_space<smem>>) -> (i32, i32) {
    %c0_i32 = arith.constant 0 : i32
    %c0_i32_0 = arith.constant 0 : i32
    %c0_i32_1 = arith.constant 0 : i32
    return %c0_i32, %c0_i32_0 : i32, i32
  }
  func.func @transform_7(%arg0: i32, %arg1: memref<2x8xi32, #tpu.memory_space<smem>>) -> (i32, i32) {
    %c0_i32 = arith.constant 0 : i32
    %c0_i32_0 = arith.constant 0 : i32
    %c0_i32_1 = arith.constant 0 : i32
    return %c0_i32, %c0_i32_0 : i32, i32
  }
}

</mosaic_0001>

<bundles_post_ra>
// kernel: _forward_jit.1
= control target key start
LH: loop header
LB: loop body
LE: loop exit
PB: predicated region body
PF: predicated region fallthrough
CT: control target
= control target key end

     0   :  { %s8093_s0 = inlined_call_operand.hbm [shape: s32[2,8], index: 0, kind: input, shape index: {}]   ;;  %s8094_s1 = inlined_call_operand.hbm [shape: f32[50,512], index: 1, kind: input, shape index: {}]   ;;  %s8095_s2 = inlined_call_operand.hbm [shape: f32[128,512], index: 2, kind: input, shape index: {}]   ;;  %s8096_s3 = inlined_call_operand.hbm [shape: f32[128,512], index: 3, kind: input, shape index: {}]   ;;  %s8097_s4 = inlined_call_operand.hbm [shape: f32[128,512], index: 4, kind: input, shape index: {}]   ;;  %s8098_s5 = inlined_call_operand.vmem [shape: f32[1,512], index: 5, kind: input, shape index: {}]   ;;  %s8099_s6 = inlined_call_operand.hbm [shape: f32[128,128], index: 6, kind: input, shape index: {}]   ;;  %s8100_s7 = inlined_call_operand.vmem [shape: f32[1,128], index: 7, kind: input, shape index: {}]   ;;  %s8101_s8 = inlined_call_operand.vmem [shape: f32[16,128], index: 8, kind: output, shape index: {}]  }
   0x1   :  { %s6507_s29 = scalar_lea.hbm %s8093_s0, 32 }
   0x2   :  { %p6508_p0 = scmp.ne.s32.totalorder %s8093_s0, %s6507_s29  ;;  %p6511_p1 = scmp.lt.u32.totalorder %s6507_s29, %s8093_s0 }
   0x4   :  { %p6513_p2 = pnand %p6511_p1, %p6508_p0 }
   0x6   :  { %6516 = shalt.err (!%p6513_p2)  }
   0x7   :  { %s6635_s12 = smov [#allocation3]  }
   0x8   :  { %14 = dma.hbm_to_smem %s8093_s0, 32, %s6635_s12, [#allocation2] }
   0x9   :  { %6627 = dma.done.wait [#allocation2], 32 }
   0xa   :  { %6628 = vsyncadd [#allocation2], 4294967264 }
   0xb   :  { %16 = sfence }
   0xc   :  { %17 = vsyncpa [#allocation5], 0 }
   0xd   :  { %18 = vsyncpa [#allocation7], 0 }
   0xe   :  { %19 = vsyncpa [#allocation10], 0  ;;  %s6636_s15 = smov [#allocation6]   ;;  %s6637_s17 = smov [#allocation9]  }
   0xf   :  { %s37_s16 = sshll.u32 %s6636_s15, 4  ;;  %s61_s18 = sshll.u32 %s6637_s17, 4  ;;  %s38_s16 = int_to_ptr.vmem [resolvable:$true] %s37_s16  ;;  %s6703_s18 = int_to_ptr.vmem [resolvable:$true] %s61_s18 }
  0x10   :  { %s6517_s21 = scalar_lea.hbm %s8095_s2, 8192 }
  0x11   :  { %p6518_p3 = scmp.ne.s32.totalorder %s8095_s2, %s6517_s21  ;;  %p6521_p4 = scmp.lt.u32.totalorder %s6517_s21, %s8095_s2 }
  0x13   :  { %p6523_p5 = pnand %p6521_p4, %p6518_p3 }
  0x15   :  { %6526 = shalt.err (!%p6523_p5)
}
  0x16   :  { %s6527_s25 = scalar_lea.vmem %s38_s16, 8192  ;;  %p6532_p7 = scmp.lt.s32.totalorder %s38_s16, %s38_s16 }
  0x17   :  { %p6528_p6 = scmp.ne.s32.totalorder %s38_s16, %s6527_s25  ;;  %p6533_p8 = scmp.lt.s32.totalorder %s6527_s25, %s6527_s25 }
  0x19   :  { %p6534_p9 = por %p6533_p8, %p6532_p7 }
  0x1b   :  { %p6535_p10 = pnand %p6534_p9, %p6528_p6 }
  0x1d   :  { %6538 = shalt.err (!%p6535_p10)
}
  0x1e   :  { %s6638_s26 = smov 512   ;;  %s6639_s27 = smov 32  }
  0x1f   :  { %43 = dma.hbm_to_vmem [thread:$0]  %s8095_s2, 8192, %s38_s16, [#allocation7], %s6638_s26, %s6638_s26, %s6639_s27  }
  0x20   :  { %s6539_s10 = scalar_lea.hbm %s8097_s4, 8192 }
  0x21   :  { %p6540_p11 = scmp.ne.s32.totalorder %s8097_s4, %s6539_s10  ;;  %p6543_p12 = scmp.lt.u32.totalorder %s6539_s10, %s8097_s4 }
  0x23   :  { %p6545_p13 = pnand %p6543_p12, %p6540_p11 }
  0x25   :  { %6548 = shalt.err (!%p6545_p13)
}
  0x26   :  { %s6549_s15 = scalar_lea.vmem %s6703_s18, 8192  ;;  %p6554_p1 = scmp.lt.s32.totalorder %s6703_s18, %s6703_s18 }
  0x27   :  { %p6550_p0 = scmp.ne.s32.totalorder %s6703_s18, %s6549_s15  ;;  %p6555_p2 = scmp.lt.s32.totalorder %s6549_s15, %s6549_s15 }
  0x29   :  { %p6556_p3 = por %p6555_p2, %p6554_p1 }
  0x2b   :  { %p6557_p4 = pnand %p6556_p3, %p6550_p0 }
  0x2d   :  { %6560 = shalt.err (!%p6557_p4)
}
  0x2e   :  { %67 = dma.hbm_to_vmem [thread:$0]  %s8097_s4, 8192, %s6703_s18, [#allocation10], %s6638_s26, %s6638_s26, %s6639_s27  }
  0x2f   :  { %s6640_s17 = smov [#allocation4]   ;;  %s6641_s20 = smov [#allocation8]  }
  0x30   :  { %s25_s19 = sshll.u32 %s6640_s17, 4  ;;  %s49_s21 = sshll.u32 %s6641_s20, 4  ;;  %s26_s19 = int_to_ptr.vmem [resolvable:$true] %s25_s19  ;;  %s6740_s21 = int_to_ptr.vmem [resolvable:$true] %s49_s21 }
  0x31   :  { %s6561_s0 = scalar_lea.hbm %s8094_s1, 3584 }
  0x32   :  { %p6562_p5 = scmp.ne.s32.totalorder %s8094_s1, %s6561_s0  ;;  %p6565_p6 = scmp.lt.u32.totalorder %s6561_s0, %s8094_s1 }
  0x34   :  { %p6567_p7 = pnand %p6565_p6, %p6562_p5 }
  0x36   :  { %6570 = shalt.err (!%p6567_p7)
}
  0x37   :  { %s6571_s4 = scalar_lea.vmem %s26_s19, 3584  ;;  %p6576_p9 = scmp.lt.s32.totalorder %s26_s19, %s26_s19 }
  0x38   :  { %p6572_p8 = scmp.ne.s32.totalorder %s26_s19, %s6571_s4  ;;  %p6577_p10 = scmp.lt.s32.totalorder %s6571_s4, %s6571_s4 }
  0x3a   :  { %p6578_p11 = por %p6577_p10, %p6576_p9 }
  0x3c   :  { %p6579_p12 = pnand %p6578_p11, %p6572_p8 }
  0x3e   :  { %6582 = shalt.err (!%p6579_p12)
}
  0x3f   :  { %31 = dma.hbm_to_vmem [thread:$0]  %s8094_s1, 3584, %s26_s19, [#allocation5], %s6638_s26, %s6638_s26, %s6639_s27  }
  0x40   :  { %s6583_s11 = scalar_lea.hbm %s8096_s3, 8192 }
  0x41   :  { %p6584_p13 = scmp.ne.s32.totalorder %s8096_s3, %s6583_s11  ;;  %p6587_p0 = scmp.lt.u32.totalorder %s6583_s11, %s8096_s3 }
  0x43   :  { %p6589_p1 = pnand %p6587_p0, %p6584_p13 }
  0x45   :  { %6592 = shalt.err (!%p6589_p1)
}
  0x46   :  { %s6593_s2 = scalar_lea.vmem %s6740_s21, 8192  ;;  %p6598_p3 = scmp.lt.s32.totalorder %s6740_s21, %s6740_s21 }
  0x47   :  { %p6594_p2 = scmp.ne.s32.totalorder %s6740_s21, %s6593_s2  ;;  %p6599_p4 = scmp.lt.s32.totalorder %s6593_s2, %s6593_s2 }
  0x49   :  { %p6600_p5 = por %p6599_p4, %p6598_p3 }
  0x4b   :  { %p6601_p6 = pnand %p6600_p5, %p6594_p2 }
  0x4d   :  { %6604 = shalt.err (!%p6601_p6)
}
  0x4e   :  { %55 = dma.hbm_to_vmem [thread:$0]  %s8096_s3, 8192, %s6740_s21, [#allocation7], %s6638_s26, %s6638_s26, %s6639_s27  }
  0x4f   :  { %s6642_s17 = smov [#allocation11]   ;;  %s6605_s23 = scalar_lea.hbm %s8099_s6, 2048 }
  0x50   :  { %s75_s19 = sshll.u32 %s6642_s17, 4  ;;  %p6606_p7 = scmp.ne.s32.totalorder %s8099_s6, %s6605_s23  ;;  %s76_s19 = int_to_ptr.vmem [resolvable:$true] %s75_s19 }
  0x51   :  { %p6609_p8 = scmp.lt.u32.totalorder %s6605_s23, %s8099_s6 }
  0x53   :  { %p6611_p9 = pnand %p6609_p8, %p6606_p7 }
  0x55   :  { %6614 = shalt.err (!%p6611_p9)
}
  0x56   :  { %s6615_s29 = scalar_lea.vmem %s76_s19, 2048  ;;  %p6620_p11 = scmp.lt.s32.totalorder %s76_s19, %s76_s19 }
  0x57   :  { %p6616_p10 = scmp.ne.s32.totalorder %s76_s19, %s6615_s29  ;;  %p6621_p12 = scmp.lt.s32.totalorder %s6615_s29, %s6615_s29 }
  0x59   :  { %p6622_p13 = por %p6621_p12, %p6620_p11 }
  0x5b   :  { %p6623_p0 = pnand %p6622_p13, %p6616_p10 }
  0x5d   :  { %6626 = shalt.err (!%p6623_p0)
}
  0x5e   :  { %s6643_s3 = smov 128   ;;  %s6644_s26 = smov 8  }
  0x5f   :  { %81 = dma.hbm_to_vmem [thread:$0]  %s8099_s6, 2048, %s76_s19, [#allocation10], %s6643_s3, %s6643_s3, %s6644_s26  }
  0x60   :  { %6629 = dma.done.wait [#allocation5], 3584  }
  0x61   :  { %6630 = vsyncadd [#allocation5], 4294963712 }
  0x62   :  { %6631 = dma.done.wait [#allocation7], 16384  }
  0x63   :  { %6632 = vsyncadd [#allocation7], 4294950912 }
  0x64   :  { %6633 = dma.done.wait [#allocation10], 10240  }
  0x65   :  { %6634 = vsyncadd [#allocation10], 4294957056  ;;  %v8102_v0 = vmov 0.0   ;;  %s6791_s4 = sld [smem:[#allocation3]]  ;;  %v172_v1 = vld [vmem:[#allocation8 + $0x8] sm:$0xff]  ;;  %v171_v3 = vld [vmem:[#allocation8] sm:$0xff]  ;;  %v120_v26 = vlaneseq }
  0x66   :  { %321 = vmatprep.mubr.f32.mxu0 %v8102_v0  ;;  %391 = vmatprep.mubr.f32.mxu1 %v8102_v0  ;;  %s6793_s18 = sld [smem:[#allocation3 + $0x80]]  ;;  %v176_v2 = vld [vmem:[#allocation8 + $0x28] sm:$0xff]  ;;  %v175_v5 = vld [vmem:[#allocation8 + $0x20] sm:$0xff]  ;;  %v174_v19 = vld [vmem:[#allocation8 + $0x18] sm:$0xff]  ;;  %vm151_vm0 = vcmask 1040384   ;;  %s4598_s17 = sld [smem:[#allocation3 + $0x1]] }
  0x67   :  { %v6795_v4 = vpack.c.bf16 %v176_v2, %v172_v1  ;;  %v180_v6 = vld [vmem:[#allocation8 + $0x48] sm:$0xff]  ;;  %v6797_v8 = vpack.c.bf16 %v175_v5, %v171_v3  ;;  %v179_v10 = vld [vmem:[#allocation8 + $0x40] sm:$0xff]  ;;  %v178_v20 = vld [vmem:[#allocation8 + $0x38] sm:$0xff]  ;;  %v6829_v43 = vshrl.u32 %v120_v26, 7  ;;  %s4601_s19 = sld [smem:[#allocation3 + $0x81]]  ;;  %s4610_s26 = sld [smem:[#allocation3 + $0x2]] }
  0x68   :  { %v184_v7 = vld [vmem:[#allocation8 + $0x68] sm:$0xff]  ;;  %v183_v11 = vld [vmem:[#allocation8 + $0x60] sm:$0xff]  ;;  %v6809_v22 = vpack.c.bf16 %v178_v20, %v174_v19  ;;  %v173_v23 = vld [vmem:[#allocation8 + $0x10] sm:$0xff]  ;;  %s4613_s27 = sld [smem:[#allocation3 + $0x82]]  ;;  %vm4400_vm1 = vcmask 1041408   ;;  %vm4402_vm2 = vcmask 1042432  }
  0x69   :  { %8311 = vst [vmem:[#allocation16_spill] sm:$0xff] %v6795_v4  ;;  %8312 = vst [vmem:[#allocation17_spill] sm:$0xff] %v6797_v8  ;;  %v6799_v9 = vpack.c.bf16 %v184_v7, %v180_v6  ;;  %v188_v12 = vld [vmem:[#allocation8 + $0x88] sm:$0xff]  ;;  %4753 = vmatprep.subr.bf16.mxu0 %v6795_v4  ;;  %v6803_v14 = vpack.c.bf16 %v183_v11, %v179_v10  ;;  %v187_v15 = vld [vmem:[#allocation8 + $0x80] sm:$0xff]  ;;  %v6850_v59 = vsub.s32 0, %v6829_v43  ;;  %v6856_v1 = vsub.s32 3, %v6829_v43 }
  0x6a   :  { %v192_v13 = vld [vmem:[#allocation8 + $0xa8] sm:$0xff]  ;;  %4755 = vmatpush1.bf16.msra.mxu0 %v6797_v8  ;;  %v191_v16 = vld [vmem:[#allocation8 + $0xa0] sm:$0xff]  ;;  %8316 = vst [vmem:[#allocation21_spill] sm:$0xff] %v6809_v22  ;;  %v177_v24 = vld [vmem:[#allocation8 + $0x30] sm:$0xff]  ;;  %4785 = vmatprep.subr.bf16.mxu1 %v6809_v22  ;;  %vm4404_vm3 = vcmask 1043456   ;;  %vm4406_vm4 = vcmask 1044480  }
  0x6b   :  { %8313 = vst [vmem:[#allocation18_spill] sm:$0xff] %v6799_v9  ;;  %8314 = vst [vmem:[#allocation19_spill] sm:$0xff] %v6803_v14  ;;  %4757 = vmatprep.subr.bf16.mxu0 %v6799_v9  ;;  %v6806_v17 = vpack.c.bf16 %v192_v13, %v188_v12  ;;  %v196_v18 = vld [vmem:[#allocation8 + $0xc8] sm:$0xff]  ;;  %s100_s6 = sshra.s32 %s6791_s4, 3  ;;  %v6812_v25 = vpack.c.bf16 %v177_v24, %v173_v23  ;;  %v6815_v27 = vpack.c.bf16 %v191_v16, %v187_v15  ;;  %v182_v28 = vld [vmem:[#allocation8 + $0x58] sm:$0xff]  ;;  %s103_s9 = sand.u32 7, %s6791_s4 }
  0x6c   :  { %v200_v21 = vld [vmem:[#allocation8 + $0xe8] sm:$0xff]  ;;  %s110_s30 = sshra.s32 %s6793_s18, 3  ;;  %v186_v29 = vld [vmem:[#allocation8 + $0x78] sm:$0xff]  ;;  %v181_v30 = vld [vmem:[#allocation8 + $0x50] sm:$0xff]  ;;  %s4683_s10 = sshll.u32 %s100_s6, 5  ;;  %8327 = vst [vmem:[#allocation32_spill] sm:$0xff] %v6850_v59 }
  0x6d   :  { %8315 = vst [vmem:[#allocation20_spill] sm:$0xff] %v6806_v17  ;;  %8317 = vst [vmem:[#allocation22_spill] sm:$0xff] %v6812_v25  ;;  %v6820_v31 = vpack.c.bf16 %v200_v21, %v196_v18  ;;  %v195_v32 = vld [vmem:[#allocation8 + $0xc0] sm:$0xff]  ;;  %4787 = vmatpush1.bf16.msra.mxu1 %v6812_v25  ;;  %v6823_v34 = vpack.c.bf16 %v186_v29, %v182_v28  ;;  %v185_v35 = vld [vmem:[#allocation8 + $0x70] sm:$0xff]  ;;  %s113_s11 = sand.u32 7, %s6793_s18  ;;  %s4684_s12 = sshll.u32 %s110_s30, 5 }
  0x6e   :  { %4759 = vmatpush1.bf16.msra.mxu0 %v6803_v14  ;;  %8318 = vst [vmem:[#allocation23_spill] sm:$0xff] %v6815_v27  ;;  %v199_v33 = vld [vmem:[#allocation8 + $0xe0] sm:$0xff]  ;;  %v204_v36 = vld [vmem:[#allocation8 + $0x108] sm:$0xff]  ;;  %v6826_v38 = vpack.c.bf16 %v185_v35, %v181_v30  ;;  %v190_v39 = vld [vmem:[#allocation8 + $0x98] sm:$0xff]  ;;  %s6836_s13 = sadd.s32 %s4683_s10, %s103_s9  ;;  %s6838_s14 = sadd.s32 %s4684_s12, %s113_s11  ;;  %vm4408_vm5 = vcmask 1045504   ;;  %vm4410_vm6 = vcmask 1046528  }
  0x6f   :  { %4761 = vmatprep.subr.bf16.mxu0 %v6806_v17  ;;  %8319 = vst [vmem:[#allocation24_spill] sm:$0xff] %v6820_v31  ;;  %8320 = vst [vmem:[#allocation25_spill] sm:$0xff] %v6823_v34  ;;  %v208_v37 = vld [vmem:[#allocation8 + $0x128] sm:$0xff]  ;;  %4789 = vmatprep.subr.bf16.mxu1 %v6823_v34  ;;  %v194_v40 = vld [vmem:[#allocation8 + $0xb8] sm:$0xff]  ;;  %v6832_v44 = vpack.c.bf16 %v199_v33, %v195_v32  ;;  %s107_s15 = scalar_lea.vmem [#allocation4], %s6836_s13  ;;  %s117_s2 = scalar_lea.vmem [#allocation4], %s6838_s14 }
  0x70   :  { %8321 = vst [vmem:[#allocation26_spill] sm:$0xff] %v6826_v38  ;;  %v189_v41 = vld [vmem:[#allocation8 + $0x90] sm:$0xff]  ;;  %v203_v45 = vld [vmem:[#allocation8 + $0x100] sm:$0xff]  ;;  %v6834_v47 = vpack.c.bf16 %v194_v40, %v190_v39  ;;  %v6841_v48 = vpack.c.bf16 %v208_v37, %v204_v36  ;;  %v212_v49 = vld [vmem:[#allocation8 + $0x148] sm:$0xff]  ;;  %s425_s20 = sshra.s32 %s4601_s19, 3  ;;  %s418_s22 = sand.u32 7, %s4598_s17 }
  0x71   :  { %v193_v42 = vld [vmem:[#allocation8 + $0xb0] sm:$0xff]  ;;  %8322 = vst [vmem:[#allocation27_spill] sm:$0xff] %v6832_v44  ;;  %v207_v46 = vld [vmem:[#allocation8 + $0x120] sm:$0xff]  ;;  %4791 = vmatpush1.bf16.msra.mxu1 %v6826_v38  ;;  %v198_v51 = vld [vmem:[#allocation8 + $0xd8] sm:$0xff]  ;;  %s428_s0 = sand.u32 7, %s4601_s19  ;;  %s4686_s24 = sshll.u32 %s425_s20, 5 }
  0x72   :  { %4763 = vmatpush1.bf16.msra.mxu0 %v6815_v27  ;;  %8323 = vst [vmem:[#allocation28_spill] sm:$0xff] %v6834_v47  ;;  %8324 = vst [vmem:[#allocation29_spill] sm:$0xff] %v6841_v48  ;;  %v6844_v50 = vpack.c.bf16 %v193_v42, %v189_v41  ;;  %v202_v52 = vld [vmem:[#allocation8 + $0xf8] sm:$0xff]  ;;  %v216_v53 = vld [vmem:[#allocation8 + $0x168] sm:$0xff]  ;;  %4793 = vmatprep.subr.bf16.mxu1 %v6834_v47  ;;  %v6853_v60 = vpack.c.bf16 %v207_v46, %v203_v45  ;;  %v6898_v42 = vsub.s32 2, %v6829_v43  ;;  %s431_s28 = sadd.s32 %s4686_s24, %s428_s0  ;;  %s1091_s21 = sshra.s32 %s4610_s26, 3 }
  0x73   :  { %4765 = vmatprep.subr.bf16.mxu0 %v6820_v31  ;;  %v6847_v54 = vpack.c.bf16 %v202_v52, %v198_v51  ;;  %v197_v55 = vld [vmem:[#allocation8 + $0xd0] sm:$0xff]  ;;  %v211_v57 = vld [vmem:[#allocation8 + $0x140] sm:$0xff]  ;;  %v220_v61 = vld [vmem:[#allocation8 + $0x188] sm:$0xff]  ;;  %v6859_v2 = vpack.c.bf16 %v216_v53, %v212_v49  ;;  %s432_s3 = scalar_lea.vmem [#allocation4], %s431_s28  ;;  %s1101_s4 = sshra.s32 %s4613_s27, 3 }
  0x74   :  { %8325 = vst [vmem:[#allocation30_spill] sm:$0xff] %v6844_v50  ;;  %v201_v56 = vld [vmem:[#allocation8 + $0xf0] sm:$0xff]  ;;  %v215_v58 = vld [vmem:[#allocation8 + $0x160] sm:$0xff]  ;;  %8328 = vst [vmem:[#allocation33_spill] sm:$0xff] %v6853_v60  ;;  %s1094_s18 = sand.u32 7, %s4610_s26  ;;  %s4687_s6 = sshll.u32 %s1091_s21, 5 }
  0x75   :  { %8326 = vst [vmem:[#allocation31_spill] sm:$0xff] %v6847_v54  ;;  %v206_v62 = vld [vmem:[#allocation8 + $0x118] sm:$0xff]  ;;  %8329 = vst [vmem:[#allocation34_spill] sm:$0xff] %v6859_v2  ;;  %4795 = vmatpush1.bf16.msra.mxu1 %v6844_v50  ;;  %v224_v3 = vld [vmem:[#allocation8 + $0x1a8] sm:$0xff]  ;;  %v6862_v5 = vpack.c.bf16 %v201_v56, %v197_v55  ;;  %v6878_v19 = vpack.c.bf16 %v215_v58, %v211_v57  ;;  %s1104_s30 = sand.u32 7, %s4613_s27  ;;  %s4688_s9 = sshll.u32 %s1101_s4, 5 }
  0x76   :  { %4767 = vmatpush1.bf16.msra.mxu0 %v6832_v44  ;;  %v210_v63 = vld [vmem:[#allocation8 + $0x138] sm:$0xff]  ;;  %v205_v6 = vld [vmem:[#allocation8 + $0x110] sm:$0xff]  ;;  %4797 = vmatprep.subr.bf16.mxu1 %v6847_v54  ;;  %v6885_v23 = vpack.c.bf16 %v224_v3, %v220_v61  ;;  %v219_v24 = vld [vmem:[#allocation8 + $0x180] sm:$0xff]  ;;  %s1097_s10 = sadd.s32 %s4687_s6, %s1094_s18  ;;  %s1107_s11 = sadd.s32 %s4688_s9, %s1104_s30 }
  0x77   :  { %4769 = vmatprep.subr.bf16.mxu0 %v6841_v48  ;;  %8330 = vst [vmem:[#allocation35_spill] sm:$0xff] %v6862_v5  ;;  %v209_v7 = vld [vmem:[#allocation8 + $0x130] sm:$0xff]  ;;  %v6865_v10 = vpack.c.bf16 %v210_v63, %v206_v62  ;;  %v214_v16 = vld [vmem:[#allocation8 + $0x158] sm:$0xff]  ;;  %8332 = vst [vmem:[#allocation37_spill] sm:$0xff] %v6878_v19  ;;  %s1098_s12 = scalar_lea.vmem [#allocation4], %s1097_s10  ;;  %s1108_s13 = scalar_lea.vmem [#allocation4], %s1107_s11 }
  0x78   :  { %v6868_v11 = vld [vmem:[%s107_s15] ss:$8 sm:$0xf]  ;;  %8333 = vst [vmem:[#allocation38_spill] sm:$0xff] %v6885_v23  ;;  %v6888_v29 = vpack.c.bf16 %v209_v7, %v205_v6  ;;  %s4622_s14 = sld [smem:[#allocation3 + $0x3]]  ;;  %s4634_s24 = sld [smem:[#allocation3 + $0x4]] }
  0x79   :  { %8331 = vst [vmem:[#allocation36_spill] sm:$0xff] %v6865_v10  ;;  %v6871_v12 = vld [vmem:[%s117_s2] ss:$8 sm:$0xf]  ;;  %v123_v13 = vrot.slane %v6868_v11, %v6850_v59  ;;  %v131_v20 = vrot.slane %v6868_v11, %v6856_v1  ;;  %4799 = vmatpush1.bf16.msra.mxu1 %v6862_v5  ;;  %v127_v6 = vrot.slane %v6868_v11, %v6898_v42  ;;  %s4625_s15 = sld [smem:[#allocation3 + $0x83]]  ;;  %s4646_s9 = sld [smem:[#allocation3 + $0x5]] }
  0x7a   :  { %v139_v15 = vrot.slane %v6871_v12, %v6850_v59  ;;  %v218_v18 = vld [vmem:[#allocation8 + $0x178] sm:$0xff]  ;;  %4771 = vmatpush1.bf16.msra.mxu0 %v6853_v60  ;;  %v147_v21 = vrot.slane %v6871_v12, %v6856_v1  ;;  %v223_v26 = vld [vmem:[#allocation8 + $0x1a0] sm:$0xff]  ;;  %v228_v28 = vld [vmem:[#allocation8 + $0x1c8] sm:$0xff]  ;;  %8334 = vst [vmem:[#allocation39_spill] sm:$0xff] %v6888_v29  ;;  %4801 = vmatprep.subr.bf16.mxu1 %v6865_v10  ;;  %s4649_s10 = sld [smem:[#allocation3 + $0x85]] }
  0x7b   :  { %4773 = vmatprep.subr.bf16.mxu0 %v6859_v2  ;;  %v232_v32 = vld [vmem:[#allocation8 + $0x1e8] sm:$0xff]  ;;  %v6892_v35 = vpack.c.bf16 %v218_v18, %v214_v16  ;;  %v213_v36 = vld [vmem:[#allocation8 + $0x150] sm:$0xff]  ;;  %v222_v39 = vld [vmem:[#allocation8 + $0x198] sm:$0xff]  ;;  %v6895_v41 = vpack.c.bf16 %v223_v26, %v219_v24  ;;  %v143_v7 = vrot.slane %v6871_v12, %v6898_v42 }
  0x7c   :  { %v152_v30 = vsel %vm151_vm0, %v123_v13, %v139_v15  ;;  %v217_v37 = vld [vmem:[#allocation8 + $0x170] sm:$0xff]  ;;  %v226_v40 = vld [vmem:[#allocation8 + $0x1b8] sm:$0xff]  ;;  %v154_v45 = vsel %vm151_vm0, %v131_v20, %v147_v21  ;;  %v6902_v46 = vpack.c.bf16 %v232_v32, %v228_v28  ;;  %v227_v49 = vld [vmem:[#allocation8 + $0x1c0] sm:$0xff] }
  0x7d   :  { %v4594_v33 = vmul.f32 -1.442695, %v152_v30  ;;  %8335 = vst [vmem:[#allocation40_spill] sm:$0xff] %v6892_v35  ;;  %8336 = vst [vmem:[#allocation41_spill] sm:$0xff] %v6895_v41  ;;  %v231_v51 = vld [vmem:[#allocation8 + $0x1e0] sm:$0xff]  ;;  %4803 = vmatpush1.bf16.msra.mxu1 %v6888_v29  ;;  %v481_v52 = vld [vmem:[#allocation6 + $0x8] sm:$0xff]  ;;  %v6905_v53 = vpack.c.bf16 %v217_v37, %v213_v36  ;;  %v6908_v56 = vpack.c.bf16 %v226_v40, %v222_v39 }
  0x7e   :  { %4775 = vmatpush1.bf16.msra.mxu0 %v6878_v19  ;;  %8337 = vst [vmem:[#allocation42_spill] sm:$0xff] %v6902_v46  ;;  %v485_v55 = vld [vmem:[#allocation6 + $0x28] sm:$0xff]  ;;  %4805 = vmatprep.subr.bf16.mxu1 %v6892_v35  ;;  %v221_v57 = vld [vmem:[#allocation8 + $0x190] sm:$0xff]  ;;  %v4595_v61 = vmul.f32 -1.442695, %v154_v45  ;;  %v230_v62 = vld [vmem:[#allocation8 + $0x1d8] sm:$0xff]  ;;  %v6911_v3 = vpack.c.bf16 %v231_v51, %v227_v49  ;;  %v153_v12 = vsel %vm151_vm0, %v127_v6, %v143_v7 }
  0x7f   :  { %6259 = vpow2.f32 %v4594_v33  ;;  %4777 = vmatprep.subr.bf16.mxu0 %v6885_v23  ;;  %8338 = vst [vmem:[#allocation43_spill] sm:$0xff] %v6905_v53  ;;  %8339 = vst [vmem:[#allocation44_spill] sm:$0xff] %v6908_v56  ;;  %v225_v58 = vld [vmem:[#allocation8 + $0x1b0] sm:$0xff]  ;;  %v234_v63 = vld [vmem:[#allocation8 + $0x1f8] sm:$0xff]  ;;  %v6918_v13 = vpack.c.bf16 %v485_v55, %v481_v52  ;;  %s1639_s2 = sshra.s32 %s4622_s14, 3  ;;  %s1649_s1 = sshra.s32 %s4625_s15, 3 }
  0x80   :  { %8340 = vst [vmem:[#allocation45_spill] sm:$0xff] %v6911_v3  ;;  %v6921_v15 = vpack.c.bf16 %v225_v58, %v221_v57  ;;  %v6924_v16 = vpack.c.bf16 %v234_v63, %v230_v62  ;;  %v229_v18 = vld [vmem:[#allocation8 + $0x1d0] sm:$0xff]  ;;  %6261 = vpow2.f32 %v4595_v61  ;;  %v483_v21 = vld [vmem:[#allocation6 + $0x18] sm:$0xff]  ;;  %v480_v40 = vld [vmem:[#allocation6] sm:$0xff]  ;;  %s1642_s16 = sand.u32 7, %s4622_s14  ;;  %s1652_s19 = sand.u32 7, %s4625_s15 }
  0x81   :  { %4807 = vmatpush1.bf16.msra.mxu1 %v6905_v53  ;;  %v233_v20 = vld [vmem:[#allocation8 + $0x1f0] sm:$0xff]  ;;  %v487_v11 = vld [vmem:[#allocation6 + $0x38] sm:$0xff]  ;;  %6263 = vtanh.f32 %v153_v12  ;;  %v484_v45 = vld [vmem:[#allocation6 + $0x20] sm:$0xff]  ;;  %s2187_s28 = sshra.s32 %s4634_s24, 3  ;;  %s2735_s11 = sshra.s32 %s4646_s9, 3 }
  0x82   :  { %4779 = vmatpush1.bf16.msra.mxu0 %v6895_v41  ;;  %8341 = vst [vmem:[#allocation46_spill] sm:$0xff] %v6921_v15  ;;  %4809 = vmatprep.subr.bf16.mxu1 %v6908_v56  ;;  %8342 = vst [vmem:[#allocation47_spill] sm:$0xff] %v6924_v16  ;;  %v6930_v24 = vpack.c.bf16 %v233_v20, %v229_v18  ;;  %v6933_v28 = vpack.c.bf16 %v487_v11, %v483_v21  ;;  %v489_v49 = vld [vmem:[#allocation6 + $0x48] sm:$0xff]  ;;  %v482_v51 = vld [vmem:[#allocation6 + $0x10] sm:$0xff]  ;;  %s4691_s26 = sshll.u32 %s2187_s28, 5  ;;  %s4693_s14 = sshll.u32 %s2735_s11, 5 }
  0x83   :  { %4781 = vmatprep.subr.bf16.mxu0 %v6902_v46  ;;  %v486_v52 = vld [vmem:[#allocation6 + $0x30] sm:$0xff]  ;;  %v493_v57 = vld [vmem:[#allocation6 + $0x68] sm:$0xff]  ;;  %v491_v58 = vld [vmem:[#allocation6 + $0x58] sm:$0xff]  ;;  %v6940_v63 = vpack.c.bf16 %v484_v45, %v480_v40  ;;  %s2748_s15 = sand.u32 7, %s4649_s10 }
  0x84   :  { %8343 = vst [vmem:[#allocation48_spill] sm:$0xff] %v6930_v24  ;;  %8344 = vst [vmem:[#allocation49_spill] sm:$0xff] %v6933_v28  ;;  %v495_v61 = vld [vmem:[#allocation6 + $0x78] sm:$0xff]  ;;  %v488_v6 = vld [vmem:[#allocation6 + $0x40] sm:$0xff]  ;;  %v6942_v18 = vpack.c.bf16 %v486_v52, %v482_v51  ;;  %v6946_v21 = vpack.c.bf16 %v493_v57, %v489_v49 }
  0x85   :  { %4811 = vmatpush1.bf16.msra.mxu1 %v6921_v15  ;;  %v492_v7 = vld [vmem:[#allocation6 + $0x60] sm:$0xff]  ;;  %v497_v11 = vld [vmem:[#allocation6 + $0x88] sm:$0xff]  ;;  %v6948_v12 = vpack.c.bf16 %v495_v61, %v491_v58  ;;  %v498_v57 = vld [vmem:[#allocation6 + $0x90] sm:$0xff] }
  0x86   :  { %4783 = vmatpush1.bf16.msra.mxu0 %v6911_v3  ;;  %4813 = vmatprep.subr.bf16.mxu1 %v6924_v16  ;;  %8345 = vst [vmem:[#allocation50_spill] sm:$0xff] %v6942_v18  ;;  %8346 = vst [vmem:[#allocation51_spill] sm:$0xff] %v6946_v21  ;;  %v496_v40 = vld [vmem:[#allocation6 + $0x80] sm:$0xff]  ;;  %v505_v52 = vld [vmem:[#allocation6 + $0xc8] sm:$0xff] }
  0x87   :  { %4817 = vmatprep.subr.bf16.mxu0 %v6918_v13  ;;  %8347 = vst [vmem:[#allocation52_spill] sm:$0xff] %v6948_v12  ;;  %v500_v45 = vld [vmem:[#allocation6 + $0xa0] sm:$0xff]  ;;  %v502_v58 = vld [vmem:[#allocation6 + $0xb0] sm:$0xff]  ;;  %v509_v61 = vld [vmem:[#allocation6 + $0xe8] sm:$0xff] }
  0x89   :  { %v6260_v26 = vpop.eup %6259  ;;  %4815 = vmatpush1.bf16.msra.mxu1 %v6930_v24 }
  0x8a   :  { %v158_v30 = vadd.f32 1.0, %v6260_v26  ;;  %4849 = vmatprep.subr.bf16.mxu1 %v6933_v28  ;;  %v6262_v32 = vpop.eup %6261  ;;  %v490_v26 = vld [vmem:[#allocation6 + $0x50] sm:$0xff] }
  0x8b   :  { %v165_v33 = vadd.f32 1.0, %v6262_v32  ;;  %v6264_v36 = vpop.eup %6263  ;;  %v501_v32 = vld [vmem:[#allocation6 + $0xa8] sm:$0xff] }
  0x8c   :  { %6265 = vrcp.f32 %v158_v30  ;;  %v494_v30 = vld [vmem:[#allocation6 + $0x70] sm:$0xff]  ;;  %v6959_v51 = vpack.c.bf16 %v501_v32, %v497_v11  ;;  %v504_v11 = vld [vmem:[#allocation6 + $0xc0] sm:$0xff]  ;;  %v6973_v32 = vpack.c.bf16 %v509_v61, %v505_v52 }
  0x8d   :  { %6267 = vrcp.f32 %v165_v33  ;;  %v499_v33 = vld [vmem:[#allocation6 + $0x98] sm:$0xff]  ;;  %v6956_v49 = vpack.c.bf16 %v494_v30, %v490_v26  ;;  %v508_v26 = vld [vmem:[#allocation6 + $0xe0] sm:$0xff]  ;;  %v6970_v30 = vpack.c.bf16 %v502_v58, %v498_v57 }
  0x8e   :  { %8350 = vst [vmem:[#allocation55_spill] sm:$0xff] %v6959_v51  ;;  %8354 = vst [vmem:[#allocation59_spill] sm:$0xff] %v6973_v32  ;;  %v512_v57 = vld [vmem:[#allocation6 + $0x100] sm:$0xff] }
  0x8f   :  { %8349 = vst [vmem:[#allocation54_spill] sm:$0xff] %v6956_v49  ;;  %8353 = vst [vmem:[#allocation58_spill] sm:$0xff] %v6970_v30  ;;  %v516_v58 = vld [vmem:[#allocation6 + $0x120] sm:$0xff] }
  0x96   :  { %v6266_v37 = vpop.eup %6265 }
  0x97   :  { %v6937_v39 = vmul.f32 %v6266_v37, %v6264_v36  ;;  %v6268_v55 = vpop.eup %6267  ;;  %v503_v36 = vld [vmem:[#allocation6 + $0xb8] sm:$0xff]  ;;  %v6953_v37 = vpack.c.bf16 %v492_v7, %v488_v6  ;;  %v6967_v7 = vpack.c.bf16 %v500_v45, %v496_v40 }
  0x98   :  { %v511_v6 = vld [vmem:[#allocation6 + $0xf8] sm:$0xff] }
  0x99   :  { %6269 = vtanh.f32 %v6937_v39  ;;  %8348 = vst [vmem:[#allocation53_spill] sm:$0xff] %v6953_v37  ;;  %8352 = vst [vmem:[#allocation57_spill] sm:$0xff] %v6967_v7  ;;  %v515_v40 = vld [vmem:[#allocation6 + $0x118] sm:$0xff] }
  0x9a   :  { %v519_v45 = vld [vmem:[#allocation6 + $0x138] sm:$0xff] }
  0xa3   :  { %v6270_v62 = vpop.eup %6269 }
  0xa4   :  { %v6944_v20 = vmul.f32 %v6270_v62, %v6268_v55  ;;  %v6962_v55 = vpack.c.bf16 %v503_v36, %v499_v33  ;;  %v507_v62 = vld [vmem:[#allocation6 + $0xd8] sm:$0xff]  ;;  %v513_v33 = vld [vmem:[#allocation6 + $0x108] sm:$0xff] }
  0xa5   :  { %v6976_v36 = vpack.c.bf16 %v511_v6, %v507_v62  ;;  %v521_v62 = vld [vmem:[#allocation6 + $0x148] sm:$0xff]  ;;  %v6988_v6 = vpack.c.bf16 %v519_v45, %v515_v40 }
  0xa6   :  { %322 = vmatmul.mubr.f32.vlgmr.msra.gmra.mrb[0].mxu0 %v6944_v20  ;;  %392 = vmatmul.mubr.f32.vlgmr.msra.gmra.mrb[0].mxu1 %v6944_v20  ;;  %8351 = vst [vmem:[#allocation56_spill] sm:$0xff] %v6962_v55  ;;  %v529_v40 = vld [vmem:[#allocation6 + $0x188] sm:$0xff] }
  0xa7   :  { %4819 = vmatpush1.bf16.msra.mxu0 %v6940_v63  ;;  %4851 = vmatpush1.bf16.msra.mxu1 %v6942_v18  ;;  %8355 = vst [vmem:[#allocation60_spill] sm:$0xff] %v6976_v36  ;;  %8359 = vst [vmem:[#allocation64_spill] sm:$0xff] %v6988_v6 }
  0xa8   :  { %4821 = vmatprep.subr.bf16.mxu0 %v6946_v21  ;;  %4853 = vmatprep.subr.bf16.mxu1 %v6948_v12  ;;  %v510_v12 = vld [vmem:[#allocation6 + $0xf0] sm:$0xff]  ;;  %v6979_v21 = vpack.c.bf16 %v508_v26, %v504_v11  ;;  %v523_v11 = vld [vmem:[#allocation6 + $0x158] sm:$0xff] }
  0xa9   :  { %608 = vmatprep.mubr.f32.mxu0 %v8102_v0  ;;  %679 = vmatprep.mubr.f32.mxu1 %v8102_v0  ;;  %v506_v0 = vld [vmem:[#allocation6 + $0xd0] sm:$0xff]  ;;  %v527_v26 = vld [vmem:[#allocation6 + $0x178] sm:$0xff] }
  0xaa   :  { %8356 = vst [vmem:[#allocation61_spill] sm:$0xff] %v6979_v21  ;;  %v6982_v52 = vpack.c.bf16 %v510_v12, %v506_v0  ;;  %v520_v0 = vld [vmem:[#allocation6 + $0x140] sm:$0xff]  ;;  %v7000_v45 = vpack.c.bf16 %v527_v26, %v523_v11  ;;  %v537_v11 = vld [vmem:[#allocation6 + $0x1c8] sm:$0xff] }
  0xab   :  { %4823 = vmatpush1.bf16.msra.mxu0 %v6953_v37  ;;  %4855 = vmatpush1.bf16.msra.mxu1 %v6956_v49  ;;  %v517_v37 = vld [vmem:[#allocation6 + $0x128] sm:$0xff]  ;;  %v6991_v49 = vpack.c.bf16 %v516_v58, %v512_v57  ;;  %v524_v12 = vld [vmem:[#allocation6 + $0x160] sm:$0xff]  ;;  %v531_v57 = vld [vmem:[#allocation6 + $0x198] sm:$0xff] }
  0xac   :  { %4825 = vmatprep.subr.bf16.mxu0 %v6959_v51  ;;  %4857 = vmatprep.subr.bf16.mxu1 %v6962_v55  ;;  %8357 = vst [vmem:[#allocation62_spill] sm:$0xff] %v6982_v52  ;;  %v6985_v61 = vpack.c.bf16 %v517_v37, %v513_v33  ;;  %v514_v55 = vld [vmem:[#allocation6 + $0x110] sm:$0xff]  ;;  %8363 = vst [vmem:[#allocation68_spill] sm:$0xff] %v7000_v45  ;;  %v535_v58 = vld [vmem:[#allocation6 + $0x1b8] sm:$0xff] }
  0xad   :  { %v518_v51 = vld [vmem:[#allocation6 + $0x130] sm:$0xff]  ;;  %8360 = vst [vmem:[#allocation65_spill] sm:$0xff] %v6991_v49  ;;  %v7012_v26 = vpack.c.bf16 %v535_v58, %v531_v57 }
  0xae   :  { %8358 = vst [vmem:[#allocation63_spill] sm:$0xff] %v6985_v61  ;;  %v6994_v37 = vpack.c.bf16 %v518_v51, %v514_v55  ;;  %v528_v51 = vld [vmem:[#allocation6 + $0x180] sm:$0xff]  ;;  %v538_v58 = vld [vmem:[#allocation6 + $0x1d0] sm:$0xff] }
  0xaf   :  { %4827 = vmatpush1.bf16.msra.mxu0 %v6967_v7  ;;  %4859 = vmatpush1.bf16.msra.mxu1 %v6970_v30  ;;  %v525_v7 = vld [vmem:[#allocation6 + $0x168] sm:$0xff]  ;;  %v7003_v30 = vpack.c.bf16 %v524_v12, %v520_v0  ;;  %v532_v55 = vld [vmem:[#allocation6 + $0x1a0] sm:$0xff]  ;;  %8367 = vst [vmem:[#allocation72_spill] sm:$0xff] %v7012_v26  ;;  %v539_v0 = vld [vmem:[#allocation6 + $0x1d8] sm:$0xff] }
  0xb0   :  { %4829 = vmatprep.subr.bf16.mxu0 %v6973_v32  ;;  %4861 = vmatprep.subr.bf16.mxu1 %v6976_v36  ;;  %8361 = vst [vmem:[#allocation66_spill] sm:$0xff] %v6994_v37  ;;  %v6997_v33 = vpack.c.bf16 %v525_v7, %v521_v62  ;;  %v522_v36 = vld [vmem:[#allocation6 + $0x150] sm:$0xff]  ;;  %v543_v12 = vld [vmem:[#allocation6 + $0x1f8] sm:$0xff] }
  0xb1   :  { %v526_v32 = vld [vmem:[#allocation6 + $0x170] sm:$0xff]  ;;  %8364 = vst [vmem:[#allocation69_spill] sm:$0xff] %v7003_v30  ;;  %v7024_v57 = vpack.c.bf16 %v543_v12, %v539_v0  ;;  %v7081_v12 = vld [vmem:[%s8098_s5] sm:$0xf]  ;;  %s415_s5 = sshra.s32 %s4598_s17, 3  ;;  %s4689_s17 = sshll.u32 %s1639_s2, 5 }
  0xb2   :  { %8362 = vst [vmem:[#allocation67_spill] sm:$0xff] %v6997_v33  ;;  %v7006_v7 = vpack.c.bf16 %v526_v32, %v522_v36  ;;  %v536_v32 = vld [vmem:[#allocation6 + $0x1c0] sm:$0xff]  ;;  %s4685_s23 = sshll.u32 %s415_s5, 5  ;;  %s4690_s5 = sshll.u32 %s1649_s1, 5 }
  0xb3   :  { %4831 = vmatpush1.bf16.msra.mxu0 %v6979_v21  ;;  %4863 = vmatpush1.bf16.msra.mxu1 %v6982_v52  ;;  %v533_v21 = vld [vmem:[#allocation6 + $0x1a8] sm:$0xff]  ;;  %v7015_v52 = vpack.c.bf16 %v532_v55, %v528_v51  ;;  %8371 = vst [vmem:[#allocation76_spill] sm:$0xff] %v7024_v57  ;;  %s421_s25 = sadd.s32 %s4685_s23, %s418_s22  ;;  %s1645_s20 = sadd.s32 %s4689_s17, %s1642_s16 }
  0xb4   :  { %4833 = vmatprep.subr.bf16.mxu0 %v6985_v61  ;;  %4865 = vmatprep.subr.bf16.mxu1 %v6988_v6  ;;  %8365 = vst [vmem:[#allocation70_spill] sm:$0xff] %v7006_v7  ;;  %v7009_v62 = vpack.c.bf16 %v533_v21, %v529_v40  ;;  %v530_v6 = vld [vmem:[#allocation6 + $0x190] sm:$0xff]  ;;  %v540_v40 = vld [vmem:[#allocation6 + $0x1e0] sm:$0xff]  ;;  %s422_s29 = scalar_lea.vmem [#allocation4], %s421_s25  ;;  %s1655_s22 = sadd.s32 %s4690_s5, %s1652_s19 }
  0xb5   :  { %v534_v61 = vld [vmem:[#allocation6 + $0x1b0] sm:$0xff]  ;;  %8368 = vst [vmem:[#allocation73_spill] sm:$0xff] %v7015_v52  ;;  %v7027_v51 = vpack.c.bf16 %v540_v40, %v536_v32  ;;  %v7085_v32 = vrot.slane %v7081_v12, %v6850_v59  ;;  %s1646_s23 = scalar_lea.vmem [#allocation4], %s1645_s20  ;;  %s1656_s0 = scalar_lea.vmem [#allocation4], %s1655_s22 }
  0xb6   :  { %8366 = vst [vmem:[#allocation71_spill] sm:$0xff] %v7009_v62  ;;  %v7018_v36 = vpack.c.bf16 %v534_v61, %v530_v6  ;;  %v861_v61 = vld [vmem:[#allocation9 + $0x28] sm:$0xff]  ;;  %v859_v6 = vld [vmem:[#allocation9 + $0x18] sm:$0xff]  ;;  %s4637_s25 = sld [smem:[#allocation3 + $0x84]]  ;;  %s4658_s5 = sld [smem:[#allocation3 + $0x6]] }
  0xb7   :  { %4835 = vmatpush1.bf16.msra.mxu0 %v6991_v49  ;;  %4867 = vmatpush1.bf16.msra.mxu1 %v6994_v37  ;;  %v541_v49 = vld [vmem:[#allocation6 + $0x1e8] sm:$0xff]  ;;  %8372 = vst [vmem:[#allocation77_spill] sm:$0xff] %v7027_v51  ;;  %8377 = vst [vmem:[#allocation81_spill] sm:$0xff] %v7085_v32  ;;  %s4661_s20 = sld [smem:[#allocation3 + $0x86]] }
  0xb8   :  { %4837 = vmatprep.subr.bf16.mxu0 %v6997_v33  ;;  %4869 = vmatprep.subr.bf16.mxu1 %v7000_v45  ;;  %8369 = vst [vmem:[#allocation74_spill] sm:$0xff] %v7018_v36  ;;  %v7021_v21 = vpack.c.bf16 %v541_v49, %v537_v11  ;;  %v542_v45 = vld [vmem:[#allocation6 + $0x1f0] sm:$0xff]  ;;  %v8374_v49 = vmov 0.0   ;;  %v863_v11 = vld [vmem:[#allocation9 + $0x38] sm:$0xff] }
  0xb9   :  { %v7030_v55 = vpack.c.bf16 %v542_v45, %v538_v58  ;;  %v7074_v0 = vpack.c.bf16 %v863_v11, %v859_v6 }
  0xba   :  { %8370 = vst [vmem:[#allocation75_spill] sm:$0xff] %v7021_v21 }
  0xbb   :  { %4839 = vmatpush1.bf16.msra.mxu0 %v7003_v30  ;;  %4871 = vmatpush1.bf16.msra.mxu1 %v7006_v7  ;;  %8373 = vst [vmem:[#allocation78_spill] sm:$0xff] %v7030_v55  ;;  %8376 = vst [vmem:[#allocation80_spill] sm:$0xff] %v7074_v0 }
  0xbc   :  { %4841 = vmatprep.subr.bf16.mxu0 %v7009_v62  ;;  %4873 = vmatprep.subr.bf16.mxu1 %v7012_v26  ;;  %s2200_s27 = sand.u32 7, %s4637_s25  ;;  %s3283_s22 = sshra.s32 %s4658_s5, 3 }
  0xbf   :  { %4843 = vmatpush1.bf16.msra.mxu0 %v7015_v52  ;;  %4875 = vmatpush1.bf16.msra.mxu1 %v7018_v36 }
  0xc0   :  { %4845 = vmatprep.subr.bf16.mxu0 %v7021_v21  ;;  %4877 = vmatprep.subr.bf16.mxu1 %v7024_v57 }
  0xc3   :  { %4847 = vmatpush1.bf16.msra.mxu0 %v7027_v51  ;;  %4879 = vmatpush1.bf16.msra.mxu1 %v7030_v55 }
  0xc4   :  { %4881 = vmatprep.subr.bf16.mxu0 %v6795_v4  ;;  %4913 = vmatprep.subr.bf16.mxu1 %v6809_v22 }
  0xc6   :  { %609 = vmatmul.mubr.f32.vlgmr.msra.gmra.mrb[2].mxu0 %v6944_v20  ;;  %680 = vmatmul.mubr.f32.vlgmr.msra.gmra.mrb[2].mxu1 %v6944_v20  ;;  %v857_v20 = vld [vmem:[#allocation9 + $0x8] sm:$0xff] }
  0xc7   :  { %4883 = vmatpush1.bf16.msra.mxu0 %v6797_v8  ;;  %4915 = vmatpush1.bf16.msra.mxu1 %v6812_v25  ;;  %v7072_v45 = vpack.c.bf16 %v861_v61, %v857_v20 }
  0xc8   :  { %4885 = vmatprep.subr.bf16.mxu0 %v6799_v9  ;;  %4917 = vmatprep.subr.bf16.mxu1 %v6823_v34 }
  0xc9   :  { %778 = vmatprep.mubr.f32.mxu0 %v8374_v49  ;;  %849 = vmatprep.mubr.f32.mxu1 %v8374_v49  ;;  %8375 = vst [vmem:[#allocation79_spill] sm:$0xff] %v7072_v45 }
  0xcb   :  { %4887 = vmatpush1.bf16.msra.mxu0 %v6803_v14  ;;  %4919 = vmatpush1.bf16.msra.mxu1 %v6826_v38 }
  0xcc   :  { %4889 = vmatprep.subr.bf16.mxu0 %v6806_v17  ;;  %4921 = vmatprep.subr.bf16.mxu1 %v6834_v47 }
  0xcf   :  { %4891 = vmatpush1.bf16.msra.mxu0 %v6815_v27  ;;  %4923 = vmatpush1.bf16.msra.mxu1 %v6844_v50 }
  0xd0   :  { %4893 = vmatprep.subr.bf16.mxu0 %v6820_v31  ;;  %4925 = vmatprep.subr.bf16.mxu1 %v6847_v54 }
  0xd3   :  { %4895 = vmatpush1.bf16.msra.mxu0 %v6832_v44  ;;  %4927 = vmatpush1.bf16.msra.mxu1 %v6862_v5 }
  0xd4   :  { %4897 = vmatprep.subr.bf16.mxu0 %v6841_v48  ;;  %4929 = vmatprep.subr.bf16.mxu1 %v6865_v10 }
  0xd7   :  { %4899 = vmatpush1.bf16.msra.mxu0 %v6853_v60  ;;  %4931 = vmatpush1.bf16.msra.mxu1 %v6888_v29 }
  0xd8   :  { %4901 = vmatprep.subr.bf16.mxu0 %v6859_v2  ;;  %4933 = vmatprep.subr.bf16.mxu1 %v6892_v35 }
  0xdb   :  { %4903 = vmatpush1.bf16.msra.mxu0 %v6878_v19  ;;  %4935 = vmatpush1.bf16.msra.mxu1 %v6905_v53 }
  0xdc   :  { %4905 = vmatprep.subr.bf16.mxu0 %v6885_v23  ;;  %4937 = vmatprep.subr.bf16.mxu1 %v6908_v56 }
  0xdf   :  { %4907 = vmatpush1.bf16.msra.mxu0 %v6895_v41  ;;  %4939 = vmatpush1.bf16.msra.mxu1 %v6921_v15 }
  0xe0   :  { %4909 = vmatprep.subr.bf16.mxu0 %v6902_v46  ;;  %4941 = vmatprep.subr.bf16.mxu1 %v6924_v16 }
  0xe3   :  { %4911 = vmatpush1.bf16.msra.mxu0 %v6911_v3  ;;  %4943 = vmatpush1.bf16.msra.mxu1 %v6930_v24 }
  0xe4   :  { %4945 = vmatprep.subr.bf16.mxu0 %v7072_v45  ;;  %4977 = vmatprep.subr.bf16.mxu1 %v7074_v0  ;;  %v7092_v0 = vrot.slane %v7081_v12, %v6898_v42 }
  0xe6   :  { %8378 = vst [vmem:[#allocation82_spill] sm:$0xff] %v7092_v0 }
 0x179   :  { %v323_v40 = vpop.f32.mrb[0].mxu0  ;;  %v393_v58 = vpop.f32.mrb[0].mxu1 }
 0x17a   :  { %v324_v20 = vadd.f32 %v323_v40, %v7085_v32  ;;  %v325_v61 = vpop.f32.mrb[1].mxu0  ;;  %v7088_v6 = vpop.f32.mrb[1].mxu1  ;;  %v394_v45 = vadd.f32 %v393_v58, %v7092_v0  ;;  %v7096_v32 = vsub.s32 1, %v6829_v43 }
 0x17c   :  { %v4596_v11 = vmul.f32 -1.442695, %v324_v20  ;;  %v423_v20 = vld [vmem:[%s422_s29] ss:$8 sm:$0xf]  ;;  %8379 = vst [vmem:[#allocation83_spill] sm:$0xff] %v7096_v32 }
 0x17d   :  { %v438_v58 = vrot.slane %v423_v20, %v6850_v59  ;;  %v442_v3 = vrot.slane %v423_v20, %v7096_v32  ;;  %v450_v43 = vrot.slane %v423_v20, %v6856_v1  ;;  %s2197_s29 = sshra.s32 %s4637_s25, 3  ;;  %s3296_s25 = sand.u32 7, %s4661_s20 }
 0x17e   :  { %6271 = vpow2.f32 %v4596_v11  ;;  %v433_v11 = vld [vmem:[%s432_s3] ss:$8 sm:$0xf]  ;;  %s2190_s3 = sand.u32 7, %s4634_s24  ;;  %s4692_s21 = sshll.u32 %s2197_s29, 5 }
 0x17f   :  { %6273 = vtanh.f32 %v394_v45  ;;  %v459_v0 = vrot.slane %v433_v11, %v6850_v59  ;;  %v471_v56 = vrot.slane %v433_v11, %v6856_v1  ;;  %s2193_s4 = sadd.s32 %s4691_s26, %s2190_s3  ;;  %s2203_s18 = sadd.s32 %s4692_s21, %s2200_s27 }
 0x180   :  { %s2194_s6 = scalar_lea.vmem [#allocation4], %s2193_s4  ;;  %s2204_s30 = scalar_lea.vmem [#allocation4], %s2203_s18 }
 0x181   :  { %s4695_s24 = sshll.u32 %s3283_s22, 5  ;;  %s4670_s21 = sld [smem:[#allocation3 + $0x7]] }
 0x182   :  { %s4673_s4 = sld [smem:[#allocation3 + $0x87]] }
 0x187   :  { %s3831_s18 = sshra.s32 %s4670_s21, 3 }
 0x188   :  { %v6272_v40 = vpop.eup %6271 }
 0x189   :  { %v401_v61 = vadd.f32 1.0, %v6272_v40  ;;  %v6274_v24 = vpop.eup %6273  ;;  %v463_v40 = vrot.slane %v433_v11, %v7096_v32  ;;  %v479_v32 = vsel %vm151_vm0, %v450_v43, %v471_v56  ;;  %v858_v43 = vld [vmem:[#allocation9 + $0x10] sm:$0xff] }
 0x18b   :  { %6275 = vrcp.f32 %v401_v61  ;;  %v476_v61 = vsel %vm151_vm0, %v438_v58, %v459_v0  ;;  %v477_v46 = vsel %vm151_vm0, %v442_v3, %v463_v40  ;;  %v467_v0 = vrot.slane %v433_v11, %v6898_v42  ;;  %v860_v11 = vld [vmem:[#allocation9 + $0x20] sm:$0xff] }
 0x195   :  { %v6276_v45 = vpop.eup %6275 }
 0x196   :  { %v7102_v16 = vmul.f32 %v6276_v45, %v6274_v24  ;;  %v446_v24 = vrot.slane %v423_v20, %v6898_v42 }
 0x198   :  { %v478_v58 = vsel %vm151_vm0, %v446_v24, %v467_v0  ;;  %v862_v24 = vld [vmem:[#allocation9 + $0x30] sm:$0xff]  ;;  %v865_v0 = vld [vmem:[#allocation9 + $0x48] sm:$0xff] }
 0x199   :  { %v610_v15 = vpop.f32.mrb[2].mxu0  ;;  %v681_v41 = vpop.f32.mrb[2].mxu1 }
 0x19a   :  { %v686_v23 = vadd.f32 %v610_v15, %v476_v61  ;;  %v612_v53 = vpop.f32.mrb[3].mxu0  ;;  %v683_v59 = vpop.f32.mrb[3].mxu1  ;;  %v688_v45 = vadd.f32 %v681_v41, %v478_v58  ;;  %v7117_v41 = vrot.slane %v7081_v12, %v6856_v1 }
 0x19b   :  { %v687_v19 = vadd.f32 %v612_v53, %v477_v46  ;;  %v689_v3 = vadd.f32 %v683_v59, %v479_v32  ;;  %v856_v32 = vld [vmem:[#allocation9] sm:$0xff] }
 0x19c   :  { %v4604_v35 = vmul.f32 -1.442695, %v686_v23  ;;  %8381 = vst [vmem:[#allocation85_spill] sm:$0xff] %v7117_v41 }
 0x19d   :  { %v4605_v2 = vmul.f32 -1.442695, %v687_v19  ;;  %v4606_v40 = vmul.f32 -1.442695, %v689_v3 }
 0x19e   :  { %6277 = vpow2.f32 %v4604_v35 }
 0x19f   :  { %6279 = vpow2.f32 %v4605_v2 }
 0x1a0   :  { %6281 = vpow2.f32 %v4606_v40  ;;  %v867_v40 = vld [vmem:[#allocation9 + $0x58] sm:$0xff] }
 0x1a1   :  { %6283 = vtanh.f32 %v688_v45  ;;  %v871_v45 = vld [vmem:[#allocation9 + $0x78] sm:$0xff] }
 0x1a8   :  { %v6278_v29 = vpop.eup %6277 }
 0x1a9   :  { %v6280_v15 = vpop.eup %6279  ;;  %v693_v61 = vadd.f32 1.0, %v6278_v29  ;;  %v396_v29 = vadd.f32 %v7088_v6, %v7117_v41  ;;  %v875_v41 = vld [vmem:[#allocation9 + $0x98] sm:$0xff] }
 0x1aa   :  { %v699_v23 = vadd.f32 1.0, %v6280_v15  ;;  %v6282_v19 = vpop.eup %6281 }
 0x1ab   :  { %6285 = vrcp.f32 %v693_v61  ;;  %v6284_v35 = vpop.eup %6283  ;;  %v706_v53 = vadd.f32 1.0, %v6282_v19  ;;  %v4597_v58 = vmul.f32 -1.442695, %v396_v29  ;;  %v7122_v61 = vpack.c.bf16 %v860_v11, %v856_v32  ;;  %v864_v19 = vld [vmem:[#allocation9 + $0x40] sm:$0xff]  ;;  %v877_v29 = vld [vmem:[#allocation9 + $0xa8] sm:$0xff] }
 0x1ac   :  { %6287 = vrcp.f32 %v699_v23  ;;  %v7124_v23 = vpack.c.bf16 %v862_v24, %v858_v43  ;;  %v872_v43 = vld [vmem:[#allocation9 + $0x80] sm:$0xff] }
 0x1ad   :  { %6289 = vrcp.f32 %v706_v53  ;;  %8382 = vst [vmem:[#allocation86_spill] sm:$0xff] %v7122_v61  ;;  %v7130_v53 = vpack.c.bf16 %v871_v45, %v867_v40  ;;  %v876_v24 = vld [vmem:[#allocation9 + $0xa0] sm:$0xff]  ;;  %v881_v40 = vld [vmem:[#allocation9 + $0xc8] sm:$0xff] }
 0x1ae   :  { %8383 = vst [vmem:[#allocation87_spill] sm:$0xff] %v7124_v23  ;;  %v885_v45 = vld [vmem:[#allocation9 + $0xe8] sm:$0xff] }
 0x1af   :  { %8385 = vst [vmem:[#allocation89_spill] sm:$0xff] %v7130_v53 }
 0x1b5   :  { %v6286_v46 = vpop.eup %6285 }
 0x1b6   :  { %v6288_v56 = vpop.eup %6287  ;;  %v710_v20 = vmul.f32 %v6286_v46, %v6284_v35  ;;  %v868_v35 = vld [vmem:[#allocation9 + $0x60] sm:$0xff] }
 0x1b7   :  { %v709_v59 = vmul.f32 %v6288_v56, %v6937_v39  ;;  %v6290_v3 = vpop.eup %6289  ;;  %v869_v39 = vld [vmem:[#allocation9 + $0x68] sm:$0xff]  ;;  %v866_v56 = vld [vmem:[#allocation9 + $0x50] sm:$0xff]  ;;  %v7136_v32 = vpack.c.bf16 %v868_v35, %v864_v19  ;;  %v7150_v19 = vpack.c.bf16 %v876_v24, %v872_v43 }
 0x1b8   :  { %v7128_v6 = vpack.c.bf16 %v869_v39, %v865_v0  ;;  %v878_v39 = vld [vmem:[#allocation9 + $0xb0] sm:$0xff] }
 0x1b9   :  { %v7113_v2 = vadd.f32 %v710_v20, %v709_v59  ;;  %v870_v20 = vld [vmem:[#allocation9 + $0x70] sm:$0xff]  ;;  %v873_v59 = vld [vmem:[#allocation9 + $0x88] sm:$0xff]  ;;  %8386 = vst [vmem:[#allocation90_spill] sm:$0xff] %v7136_v32  ;;  %8390 = vst [vmem:[#allocation94_spill] sm:$0xff] %v7150_v19 }
 0x1ba   :  { %8384 = vst [vmem:[#allocation88_spill] sm:$0xff] %v7128_v6  ;;  %v7138_v11 = vpack.c.bf16 %v870_v20, %v866_v56  ;;  %v7142_v0 = vpack.c.bf16 %v877_v29, %v873_v59  ;;  %v7156_v56 = vpack.c.bf16 %v885_v45, %v881_v40  ;;  %v882_v59 = vld [vmem:[#allocation9 + $0xd0] sm:$0xff]  ;;  %v892_v40 = vld [vmem:[#allocation9 + $0x120] sm:$0xff] }
 0x1bb   :  { %8380 = vst [vmem:[#allocation84_spill] sm:$0xff] %v7113_v2  ;;  %6291 = vtanh.f32 %v7113_v2  ;;  %v879_v2 = vld [vmem:[#allocation9 + $0xb8] sm:$0xff]  ;;  %v886_v29 = vld [vmem:[#allocation9 + $0xf0] sm:$0xff] }
 0x1bc   :  { %6293 = vpow2.f32 %v4597_v58  ;;  %8387 = vst [vmem:[#allocation91_spill] sm:$0xff] %v7138_v11  ;;  %8388 = vst [vmem:[#allocation92_spill] sm:$0xff] %v7142_v0  ;;  %v874_v58 = vld [vmem:[#allocation9 + $0x90] sm:$0xff] }
 0x1bd   :  { %v7152_v35 = vpack.c.bf16 %v878_v39, %v874_v58  ;;  %8392 = vst [vmem:[#allocation96_spill] sm:$0xff] %v7156_v56  ;;  %v7164_v58 = vpack.c.bf16 %v886_v29, %v882_v59  ;;  %v888_v39 = vld [vmem:[#allocation9 + $0x100] sm:$0xff] }
 0x1be   :  { %v896_v29 = vld [vmem:[#allocation9 + $0x140] sm:$0xff] }
 0x1bf   :  { %8391 = vst [vmem:[#allocation95_spill] sm:$0xff] %v7152_v35  ;;  %8395 = vst [vmem:[#allocation99_spill] sm:$0xff] %v7164_v58 }
 0x1c5   :  { %v6292_v15 = vpop.eup %6291 }
 0x1c6   :  { %v7126_v46 = vmul.f32 %v6292_v15, %v6290_v3  ;;  %v7144_v3 = vpack.c.bf16 %v879_v2, %v875_v41  ;;  %v883_v15 = vld [vmem:[#allocation9 + $0xd8] sm:$0xff]  ;;  %v880_v2 = vld [vmem:[#allocation9 + $0xc0] sm:$0xff]  ;;  %v6294_v43 = vpop.eup %6293 }
 0x1c7   :  { %v884_v41 = vld [vmem:[#allocation9 + $0xe0] sm:$0xff] }
 0x1c8   :  { %779 = vmatmul.mubr.f32.vlgmr.msra.gmra.mrb[4].mxu0 %v7126_v46  ;;  %850 = vmatmul.mubr.f32.vlgmr.msra.gmra.mrb[4].mxu1 %v7126_v46  ;;  %8389 = vst [vmem:[#allocation93_spill] sm:$0xff] %v7144_v3  ;;  %v7162_v24 = vpack.c.bf16 %v884_v41, %v880_v2  ;;  %v408_v2 = vadd.f32 1.0, %v6294_v43  ;;  %v7174_v41 = vpack.c.bf16 %v892_v40, %v888_v39  ;;  %v902_v43 = vld [vmem:[#allocation9 + $0x170] sm:$0xff] }
 0x1c9   :  { %4947 = vmatpush1.bf16.msra.mxu0 %v7122_v61  ;;  %4979 = vmatpush1.bf16.msra.mxu1 %v7124_v23  ;;  %v887_v23 = vld [vmem:[#allocation9 + $0xf8] sm:$0xff]  ;;  %v906_v40 = vld [vmem:[#allocation9 + $0x190] sm:$0xff] }
 0x1ca   :  { %4949 = vmatprep.subr.bf16.mxu0 %v7128_v6  ;;  %4981 = vmatprep.subr.bf16.mxu1 %v7130_v53  ;;  %v7158_v20 = vpack.c.bf16 %v887_v23, %v883_v15  ;;  %v889_v53 = vld [vmem:[#allocation9 + $0x108] sm:$0xff]  ;;  %v891_v6 = vld [vmem:[#allocation9 + $0x118] sm:$0xff]  ;;  %8394 = vst [vmem:[#allocation98_spill] sm:$0xff] %v7162_v24  ;;  %v890_v15 = vld [vmem:[#allocation9 + $0x110] sm:$0xff]  ;;  %6295 = vrcp.f32 %v408_v2 }
 0x1cb   :  { %984 = vmatprep.mubr.f32.mxu0 %v8374_v49  ;;  %1055 = vmatprep.mubr.f32.mxu1 %v8374_v49  ;;  %v899_v61 = vld [vmem:[#allocation9 + $0x158] sm:$0xff]  ;;  %8397 = vst [vmem:[#allocation101_spill] sm:$0xff] %v7174_v41  ;;  %6297 = vtanh.f32 %v7102_v16  ;;  %v913_v2 = vld [vmem:[#allocation9 + $0x1c8] sm:$0xff] }
 0x1cc   :  { %8393 = vst [vmem:[#allocation97_spill] sm:$0xff] %v7158_v20 }
 0x1cd   :  { %4951 = vmatpush1.bf16.msra.mxu0 %v7136_v32  ;;  %4983 = vmatpush1.bf16.msra.mxu1 %v7138_v11  ;;  %v893_v32 = vld [vmem:[#allocation9 + $0x128] sm:$0xff]  ;;  %v895_v11 = vld [vmem:[#allocation9 + $0x138] sm:$0xff] }
 0x1ce   :  { %4953 = vmatprep.subr.bf16.mxu0 %v7142_v0  ;;  %4985 = vmatprep.subr.bf16.mxu1 %v7144_v3  ;;  %v7168_v23 = vpack.c.bf16 %v893_v32, %v889_v53  ;;  %v7170_v45 = vpack.c.bf16 %v895_v11, %v891_v6  ;;  %v894_v3 = vld [vmem:[#allocation9 + $0x130] sm:$0xff]  ;;  %v897_v0 = vld [vmem:[#allocation9 + $0x148] sm:$0xff]  ;;  %v900_v53 = vld [vmem:[#allocation9 + $0x160] sm:$0xff] }
 0x1cf   :  { %v7176_v59 = vpack.c.bf16 %v894_v3, %v890_v15  ;;  %v898_v11 = vld [vmem:[#allocation9 + $0x150] sm:$0xff]  ;;  %v7187_v3 = vpack.c.bf16 %v900_v53, %v896_v29 }
 0x1d0   :  { %8396 = vst [vmem:[#allocation100_spill] sm:$0xff] %v7170_v45  ;;  %v7189_v39 = vpack.c.bf16 %v902_v43, %v898_v11  ;;  %v910_v15 = vld [vmem:[#allocation9 + $0x1b0] sm:$0xff]  ;;  %v912_v11 = vld [vmem:[#allocation9 + $0x1c0] sm:$0xff] }
 0x1d1   :  { %4955 = vmatpush1.bf16.msra.mxu0 %v7150_v19  ;;  %4987 = vmatpush1.bf16.msra.mxu1 %v7152_v35  ;;  %v901_v19 = vld [vmem:[#allocation9 + $0x168] sm:$0xff]  ;;  %v903_v35 = vld [vmem:[#allocation9 + $0x178] sm:$0xff]  ;;  %8398 = vst [vmem:[#allocation102_spill] sm:$0xff] %v7176_v59  ;;  %v7201_v53 = vpack.c.bf16 %v910_v15, %v906_v40  ;;  %v918_v43 = vld [vmem:[#allocation9 + $0x1f0] sm:$0xff] }
 0x1d2   :  { %4957 = vmatprep.subr.bf16.mxu0 %v7156_v56  ;;  %4989 = vmatprep.subr.bf16.mxu1 %v7158_v20  ;;  %v7180_v6 = vpack.c.bf16 %v901_v19, %v897_v0  ;;  %v7182_v32 = vpack.c.bf16 %v903_v35, %v899_v61  ;;  %v905_v20 = vld [vmem:[#allocation9 + $0x188] sm:$0xff]  ;;  %v907_v56 = vld [vmem:[#allocation9 + $0x198] sm:$0xff]  ;;  %v904_v0 = vld [vmem:[#allocation9 + $0x180] sm:$0xff] }
 0x1d3   :  { %v908_v61 = vld [vmem:[#allocation9 + $0x1a0] sm:$0xff] }
 0x1d4   :  { %v7199_v29 = vpack.c.bf16 %v908_v61, %v904_v0  ;;  %v6296_v40 = vpop.eup %6295  ;;  %v8403_v15 = vld [vmem:[#allocation52_spill] sm:$0xff] }
 0x1d5   :  { %4959 = vmatpush1.bf16.msra.mxu0 %v7162_v24  ;;  %4991 = vmatpush1.bf16.msra.mxu1 %v7164_v58  ;;  %v909_v24 = vld [vmem:[#allocation9 + $0x1a8] sm:$0xff]  ;;  %v911_v58 = vld [vmem:[#allocation9 + $0x1b8] sm:$0xff] }
 0x1d6   :  { %4961 = vmatprep.subr.bf16.mxu0 %v7168_v23  ;;  %4993 = vmatprep.subr.bf16.mxu1 %v7170_v45  ;;  %v7193_v19 = vpack.c.bf16 %v909_v24, %v905_v20  ;;  %v7195_v35 = vpack.c.bf16 %v911_v58, %v907_v56  ;;  %v915_v45 = vld [vmem:[#allocation9 + $0x1d8] sm:$0xff]  ;;  %v916_v24 = vld [vmem:[#allocation9 + $0x1e0] sm:$0xff]  ;;  %v914_v58 = vld [vmem:[#allocation9 + $0x1d0] sm:$0xff] }
 0x1d7   :  { %v7211_v0 = vpack.c.bf16 %v916_v24, %v912_v11  ;;  %v7213_v61 = vpack.c.bf16 %v918_v43, %v914_v58  ;;  %v8405_v11 = vld [vmem:[#allocation54_spill] sm:$0xff]  ;;  %v8406_v24 = vld [vmem:[#allocation55_spill] sm:$0xff]  ;;  %v8407_v58 = vld [vmem:[#allocation56_spill] sm:$0xff] }
 0x1d8   :  { %v8408_v43 = vld [vmem:[#allocation57_spill] sm:$0xff] }
 0x1d9   :  { %4963 = vmatpush1.bf16.msra.mxu0 %v7174_v41  ;;  %4995 = vmatpush1.bf16.msra.mxu1 %v7176_v59  ;;  %v917_v41 = vld [vmem:[#allocation9 + $0x1e8] sm:$0xff]  ;;  %v919_v59 = vld [vmem:[#allocation9 + $0x1f8] sm:$0xff] }
 0x1da   :  { %4965 = vmatprep.subr.bf16.mxu0 %v7180_v6  ;;  %4997 = vmatprep.subr.bf16.mxu1 %v7182_v32  ;;  %v7205_v56 = vpack.c.bf16 %v917_v41, %v913_v2  ;;  %v7207_v20 = vpack.c.bf16 %v919_v59, %v915_v45  ;;  %v6298_v41 = vpop.eup %6297  ;;  %v8402_v59 = vld [vmem:[#allocation51_spill] sm:$0xff]  ;;  %v8404_v2 = vld [vmem:[#allocation53_spill] sm:$0xff] }
 0x1db   :  { %v7219_v45 = vmul.f32 %v6298_v41, %v6296_v40  ;;  %v8409_v40 = vld [vmem:[#allocation58_spill] sm:$0xff]  ;;  %v8410_v41 = vld [vmem:[#allocation59_spill] sm:$0xff] }
 0x1dc   :  { %8399 = vst [vmem:[#allocation103_spill] sm:$0xff] %v7205_v56  ;;  %8400 = vst [vmem:[#allocation104_spill] sm:$0xff] %v7207_v20 }
 0x1dd   :  { %4967 = vmatpush1.bf16.msra.mxu0 %v7187_v3  ;;  %4999 = vmatpush1.bf16.msra.mxu1 %v7189_v39  ;;  %8401 = vst [vmem:[#allocation105_spill] sm:$0xff] %v7219_v45 }
 0x1de   :  { %4969 = vmatprep.subr.bf16.mxu0 %v7193_v19  ;;  %5001 = vmatprep.subr.bf16.mxu1 %v7195_v35 }
 0x1e1   :  { %4971 = vmatpush1.bf16.msra.mxu0 %v7199_v29  ;;  %5003 = vmatpush1.bf16.msra.mxu1 %v7201_v53 }
 0x1e2   :  { %4973 = vmatprep.subr.bf16.mxu0 %v7205_v56  ;;  %5005 = vmatprep.subr.bf16.mxu1 %v7207_v20 }
 0x1e5   :  { %4975 = vmatpush1.bf16.msra.mxu0 %v7211_v0  ;;  %5007 = vmatpush1.bf16.msra.mxu1 %v7213_v61 }
 0x1e6   :  { %5009 = vmatprep.subr.bf16.mxu0 %v6918_v13  ;;  %5041 = vmatprep.subr.bf16.mxu1 %v6933_v28 }
 0x1e8   :  { %985 = vmatmul.mubr.f32.vlgmr.msra.gmra.mrb[4].mxu0 %v7219_v45  ;;  %1056 = vmatmul.mubr.f32.vlgmr.msra.gmra.mrb[4].mxu1 %v7219_v45  ;;  %v8411_v45 = vld [vmem:[#allocation60_spill] sm:$0xff] }
 0x1e9   :  { %5011 = vmatpush1.bf16.msra.mxu0 %v6940_v63  ;;  %5043 = vmatpush1.bf16.msra.mxu1 %v6942_v18  ;;  %v8414_v18 = vld [vmem:[#allocation63_spill] sm:$0xff] }
 0x1ea   :  { %5013 = vmatprep.subr.bf16.mxu0 %v8402_v59  ;;  %5045 = vmatprep.subr.bf16.mxu1 %v8403_v15  ;;  %v8412_v15 = vld [vmem:[#allocation61_spill] sm:$0xff]  ;;  %v8413_v59 = vld [vmem:[#allocation62_spill] sm:$0xff] }
 0x1eb   :  { %1220 = vmatprep.mubr.f32.mxu0 %v8374_v49  ;;  %1291 = vmatprep.mubr.f32.mxu1 %v8374_v49 }
 0x1ed   :  { %5015 = vmatpush1.bf16.msra.mxu0 %v8404_v2  ;;  %5047 = vmatpush1.bf16.msra.mxu1 %v8405_v11  ;;  %v8415_v2 = vld [vmem:[#allocation64_spill] sm:$0xff]  ;;  %v8416_v11 = vld [vmem:[#allocation65_spill] sm:$0xff] }
 0x1ee   :  { %5017 = vmatprep.subr.bf16.mxu0 %v8406_v24  ;;  %5049 = vmatprep.subr.bf16.mxu1 %v8407_v58 }
 0x1f1   :  { %5019 = vmatpush1.bf16.msra.mxu0 %v8408_v43  ;;  %5051 = vmatpush1.bf16.msra.mxu1 %v8409_v40  ;;  %v8417_v43 = vld [vmem:[#allocation68_spill] sm:$0xff] }
 0x1f2   :  { %5021 = vmatprep.subr.bf16.mxu0 %v8410_v41  ;;  %5053 = vmatprep.subr.bf16.mxu1 %v8411_v45 }
 0x1f5   :  { %5023 = vmatpush1.bf16.msra.mxu0 %v8412_v15  ;;  %5055 = vmatpush1.bf16.msra.mxu1 %v8413_v59 }
 0x1f6   :  { %5025 = vmatprep.subr.bf16.mxu0 %v8414_v18  ;;  %5057 = vmatprep.subr.bf16.mxu1 %v8415_v2 }
 0x1f9   :  { %5027 = vmatpush1.bf16.msra.mxu0 %v8416_v11  ;;  %5059 = vmatpush1.bf16.msra.mxu1 %v6994_v37 }
 0x1fa   :  { %5029 = vmatprep.subr.bf16.mxu0 %v6997_v33  ;;  %5061 = vmatprep.subr.bf16.mxu1 %v8417_v43 }
 0x1fd   :  { %5031 = vmatpush1.bf16.msra.mxu0 %v7003_v30  ;;  %5063 = vmatpush1.bf16.msra.mxu1 %v7006_v7 }
 0x1fe   :  { %5033 = vmatprep.subr.bf16.mxu0 %v7009_v62  ;;  %5065 = vmatprep.subr.bf16.mxu1 %v7012_v26 }
 0x201   :  { %5035 = vmatpush1.bf16.msra.mxu0 %v7015_v52  ;;  %5067 = vmatpush1.bf16.msra.mxu1 %v7018_v36 }
 0x202   :  { %5037 = vmatprep.subr.bf16.mxu0 %v7021_v21  ;;  %5069 = vmatprep.subr.bf16.mxu1 %v7024_v57 }
 0x205   :  { %5039 = vmatpush1.bf16.msra.mxu0 %v7027_v51  ;;  %5071 = vmatpush1.bf16.msra.mxu1 %v7030_v55 }
 0x206   :  { %5073 = vmatprep.subr.bf16.mxu0 %v6795_v4  ;;  %5105 = vmatprep.subr.bf16.mxu1 %v6809_v22 }
 0x208   :  { %1221 = vmatmul.mubr.f32.vlgmr.msra.gmra.mrb[6].mxu0 %v7126_v46  ;;  %1292 = vmatmul.mubr.f32.vlgmr.msra.gmra.mrb[6].mxu1 %v7126_v46  ;;  %v8418_v46 = vld [vmem:[#allocation39_spill] sm:$0xff] }
 0x209   :  { %5075 = vmatpush1.bf16.msra.mxu0 %v6797_v8  ;;  %5107 = vmatpush1.bf16.msra.mxu1 %v6812_v25 }
 0x20a   :  { %5077 = vmatprep.subr.bf16.mxu0 %v6799_v9  ;;  %5109 = vmatprep.subr.bf16.mxu1 %v6823_v34 }
 0x20b   :  { %1390 = vmatprep.mubr.f32.mxu0 %v8374_v49  ;;  %1461 = vmatprep.mubr.f32.mxu1 %v8374_v49 }
 0x20d   :  { %5079 = vmatpush1.bf16.msra.mxu0 %v6803_v14  ;;  %5111 = vmatpush1.bf16.msra.mxu1 %v6826_v38 }
 0x20e   :  { %5081 = vmatprep.subr.bf16.mxu0 %v6806_v17  ;;  %5113 = vmatprep.subr.bf16.mxu1 %v6834_v47  ;;  %v8419_v47 = vld [vmem:[#allocation34_spill] sm:$0xff]  ;;  %v8435_v17 = vld [vmem:[#allocation81_spill] sm:$0xff] }
 0x211   :  { %5083 = vmatpush1.bf16.msra.mxu0 %v6815_v27  ;;  %5115 = vmatpush1.bf16.msra.mxu1 %v6844_v50  ;;  %v8420_v27 = vld [vmem:[#allocation40_spill] sm:$0xff]  ;;  %v8421_v50 = vld [vmem:[#allocation37_spill] sm:$0xff] }
 0x212   :  { %5085 = vmatprep.subr.bf16.mxu0 %v6820_v31  ;;  %5117 = vmatprep.subr.bf16.mxu1 %v6847_v54  ;;  %v8422_v31 = vld [vmem:[#allocation43_spill] sm:$0xff]  ;;  %v8423_v54 = vld [vmem:[#allocation38_spill] sm:$0xff] }
 0x215   :  { %5087 = vmatpush1.bf16.msra.mxu0 %v6832_v44  ;;  %5119 = vmatpush1.bf16.msra.mxu1 %v6862_v5  ;;  %v8424_v44 = vld [vmem:[#allocation44_spill] sm:$0xff]  ;;  %v8425_v5 = vld [vmem:[#allocation41_spill] sm:$0xff] }
 0x216   :  { %5089 = vmatprep.subr.bf16.mxu0 %v6841_v48  ;;  %5121 = vmatprep.subr.bf16.mxu1 %v6865_v10  ;;  %v8426_v48 = vld [vmem:[#allocation46_spill] sm:$0xff] }
 0x217   :  { %v8427_v10 = vld [vmem:[#allocation42_spill] sm:$0xff] }
 0x219   :  { %5091 = vmatpush1.bf16.msra.mxu0 %v6853_v60  ;;  %5123 = vmatpush1.bf16.msra.mxu1 %v8418_v46  ;;  %v8428_v60 = vld [vmem:[#allocation47_spill] sm:$0xff]  ;;  %v8429_v46 = vld [vmem:[#allocation45_spill] sm:$0xff] }
 0x21a   :  { %5093 = vmatprep.subr.bf16.mxu0 %v8419_v47  ;;  %5125 = vmatprep.subr.bf16.mxu1 %v8420_v27  ;;  %v8430_v47 = vld [vmem:[#allocation48_spill] sm:$0xff]  ;;  %v8431_v27 = vld [vmem:[#allocation79_spill] sm:$0xff] }
 0x21d   :  { %5095 = vmatpush1.bf16.msra.mxu0 %v8421_v50  ;;  %5127 = vmatpush1.bf16.msra.mxu1 %v8422_v31  ;;  %v8432_v50 = vld [vmem:[#allocation80_spill] sm:$0xff]  ;;  %v8433_v31 = vld [vmem:[#allocation83_spill] sm:$0xff] }
 0x21e   :  { %5097 = vmatprep.subr.bf16.mxu0 %v8423_v54  ;;  %5129 = vmatprep.subr.bf16.mxu1 %v8424_v44  ;;  %v7297_v54 = vrot.slane %v7081_v12, %v8433_v31 }
 0x220   :  { %8434 = vst [vmem:[#allocation106_spill] sm:$0xff] %v7297_v54 }
 0x221   :  { %5099 = vmatpush1.bf16.msra.mxu0 %v8425_v5  ;;  %5131 = vmatpush1.bf16.msra.mxu1 %v8426_v48 }
 0x222   :  { %5101 = vmatprep.subr.bf16.mxu0 %v8427_v10  ;;  %5133 = vmatprep.subr.bf16.mxu1 %v8428_v60 }
 0x225   :  { %5103 = vmatpush1.bf16.msra.mxu0 %v8429_v46  ;;  %5135 = vmatpush1.bf16.msra.mxu1 %v8430_v47 }
 0x226   :  { %5137 = vmatprep.subr.bf16.mxu0 %v8431_v27  ;;  %5169 = vmatprep.subr.bf16.mxu1 %v8432_v50  ;;  %v8436_v50 = vld [vmem:[#allocation82_spill] sm:$0xff] }
 0x2bb   :  { %v986_v44 = vpop.f32.mrb[4].mxu0  ;;  %v1057_v5 = vpop.f32.mrb[4].mxu1 }
 0x2bc   :  { %v6192_v48 = vadd.f32 %v986_v44, %v8435_v17  ;;  %v988_v38 = vpop.f32.mrb[5].mxu0  ;;  %v7300_v10 = vpop.f32.mrb[5].mxu1  ;;  %v6194_v12 = vadd.f32 %v1057_v5, %v8436_v50 }
 0x2bd   :  { %v6193_v60 = vadd.f32 %v988_v38, %v7297_v54  ;;  %v1099_v38 = vld [vmem:[%s1098_s12] ss:$8 sm:$0xf]  ;;  %s2745_s12 = sshra.s32 %s4649_s10, 3  ;;  %s3844_s10 = sand.u32 7, %s4673_s4 }
 0x2be   :  { %v4607_v46 = vmul.f32 -1.442695, %v6192_v48  ;;  %v8437_v48 = vld [vmem:[#allocation32_spill] sm:$0xff]  ;;  %v1118_v50 = vrot.slane %v1099_v38, %v8433_v31  ;;  %v1126_v4 = vrot.slane %v1099_v38, %v6856_v1  ;;  %s4694_s2 = sshll.u32 %s2745_s12, 5 }
 0x2bf   :  { %v4608_v47 = vmul.f32 -1.442695, %v6193_v60  ;;  %v1114_v60 = vrot.slane %v1099_v38, %v8437_v48  ;;  %s2751_s16 = sadd.s32 %s4694_s2, %s2748_s15 }
 0x2c0   :  { %6299 = vpow2.f32 %v4607_v46  ;;  %s2752_s19 = scalar_lea.vmem [#allocation4], %s2751_s16 }
 0x2c1   :  { %6301 = vpow2.f32 %v4608_v47  ;;  %v1109_v47 = vld [vmem:[%s1108_s13] ss:$8 sm:$0xf]  ;;  %s2738_s13 = sand.u32 7, %s4646_s9  ;;  %s4697_s9 = sshll.u32 %s3831_s18, 5 }
 0x2c2   :  { %6303 = vtanh.f32 %v6194_v12  ;;  %v1135_v5 = vrot.slane %v1109_v47, %v8437_v48  ;;  %v1139_v54 = vrot.slane %v1109_v47, %v8433_v31  ;;  %v1147_v55 = vrot.slane %v1109_v47, %v6856_v1  ;;  %s2741_s1 = sadd.s32 %s4693_s14, %s2738_s13 }
 0x2c3   :  { %s2742_s17 = scalar_lea.vmem [#allocation4], %s2741_s1 }
 0x2ca   :  { %v6300_v44 = vpop.eup %6299 }
 0x2cb   :  { %v6302_v17 = vpop.eup %6301  ;;  %v1069_v27 = vadd.f32 1.0, %v6300_v44 }
 0x2cc   :  { %v1075_v14 = vadd.f32 1.0, %v6302_v17  ;;  %v6304_v46 = vpop.eup %6303 }
 0x2cd   :  { %6305 = vrcp.f32 %v1069_v27  ;;  %v1153_v27 = vsel %vm151_vm0, %v1118_v50, %v1139_v54 }
 0x2ce   :  { %6307 = vrcp.f32 %v1075_v14  ;;  %v1152_v14 = vsel %vm151_vm0, %v1114_v60, %v1135_v5  ;;  %v1122_v60 = vrot.slane %v1099_v38, %v6898_v42 }
 0x2d7   :  { %v6306_v44 = vpop.eup %6305 }
 0x2d8   :  { %v6308_v12 = vpop.eup %6307  ;;  %v1086_v17 = vmul.f32 %v6306_v44, %v6304_v46 }
 0x2d9   :  { %v1085_v34 = vmul.f32 %v6308_v12, %v7102_v16  ;;  %v1155_v16 = vsel %vm151_vm0, %v1126_v4, %v1147_v55 }
 0x2db   :  { %v7311_v9 = vadd.f32 %v1086_v17, %v1085_v34  ;;  %v1222_v25 = vpop.f32.mrb[6].mxu0  ;;  %v1293_v8 = vpop.f32.mrb[6].mxu1  ;;  %v1143_v34 = vrot.slane %v1109_v47, %v6898_v42 }
 0x2dc   :  { %v1298_v22 = vadd.f32 %v1222_v25, %v1152_v14  ;;  %v1224_v48 = vpop.f32.mrb[7].mxu0  ;;  %v1295_v31 = vpop.f32.mrb[7].mxu1 }
 0x2dd   :  { %v1299_v51 = vadd.f32 %v1224_v48, %v1153_v27  ;;  %v1301_v50 = vadd.f32 %v1295_v31, %v1155_v16  ;;  %v1154_v25 = vsel %vm151_vm0, %v1122_v60, %v1143_v34  ;;  %v8438_v48 = vld [vmem:[#allocation84_spill] sm:$0xff] }
 0x2de   :  { %v4616_v57 = vmul.f32 -1.442695, %v1298_v22  ;;  %v1300_v5 = vadd.f32 %v1293_v8, %v1154_v25  ;;  %v8439_v8 = vld [vmem:[#allocation85_spill] sm:$0xff]  ;;  %v8441_v25 = vld [vmem:[#allocation87_spill] sm:$0xff] }
 0x2df   :  { %v4617_v46 = vmul.f32 -1.442695, %v1299_v51  ;;  %v4618_v54 = vmul.f32 -1.442695, %v1301_v50  ;;  %v6195_v27 = vadd.f32 %v7300_v10, %v8439_v8  ;;  %v8440_v50 = vld [vmem:[#allocation86_spill] sm:$0xff] }
 0x2e0   :  { %6309 = vpow2.f32 %v4616_v57  ;;  %v8444_v10 = vld [vmem:[#allocation90_spill] sm:$0xff] }
 0x2e1   :  { %6311 = vpow2.f32 %v4617_v46  ;;  %v4609_v60 = vmul.f32 -1.442695, %v6195_v27  ;;  %v8455_v27 = vld [vmem:[#allocation101_spill] sm:$0xff] }
 0x2e2   :  { %6313 = vpow2.f32 %v4618_v54  ;;  %v8442_v54 = vld [vmem:[#allocation88_spill] sm:$0xff] }
 0x2e3   :  { %6315 = vtanh.f32 %v1300_v5  ;;  %v8443_v5 = vld [vmem:[#allocation89_spill] sm:$0xff] }
 0x2ea   :  { %v6310_v44 = vpop.eup %6309 }
 0x2eb   :  { %v6312_v12 = vpop.eup %6311  ;;  %v1305_v17 = vadd.f32 1.0, %v6310_v44  ;;  %v8445_v44 = vld [vmem:[#allocation91_spill] sm:$0xff] }
 0x2ec   :  { %v1311_v22 = vadd.f32 1.0, %v6312_v12  ;;  %v6314_v57 = vpop.eup %6313  ;;  %v8446_v12 = vld [vmem:[#allocation92_spill] sm:$0xff] }
 0x2ed   :  { %6317 = vrcp.f32 %v1305_v17  ;;  %v6316_v4 = vpop.eup %6315  ;;  %v1318_v47 = vadd.f32 1.0, %v6314_v57  ;;  %v8447_v17 = vld [vmem:[#allocation93_spill] sm:$0xff]  ;;  %v8449_v57 = vld [vmem:[#allocation95_spill] sm:$0xff] }
 0x2ee   :  { %6319 = vrcp.f32 %v1311_v22  ;;  %v8448_v22 = vld [vmem:[#allocation94_spill] sm:$0xff] }
 0x2ef   :  { %6321 = vrcp.f32 %v1318_v47  ;;  %v8453_v47 = vld [vmem:[#allocation99_spill] sm:$0xff] }
 0x2f7   :  { %v6318_v51 = vpop.eup %6317 }
 0x2f8   :  { %v6320_v55 = vpop.eup %6319  ;;  %v1322_v38 = vmul.f32 %v6318_v51, %v6316_v4  ;;  %v8450_v4 = vld [vmem:[#allocation96_spill] sm:$0xff]  ;;  %v8451_v51 = vld [vmem:[#allocation97_spill] sm:$0xff] }
 0x2f9   :  { %v1321_v31 = vmul.f32 %v6320_v55, %v8438_v48  ;;  %v6322_v46 = vpop.eup %6321  ;;  %v8454_v48 = vld [vmem:[#allocation100_spill] sm:$0xff] }
 0x2fb   :  { %v7320_v14 = vadd.f32 %v1322_v38, %v1321_v31  ;;  %v8452_v38 = vld [vmem:[#allocation98_spill] sm:$0xff] }
 0x2fd   :  { %6323 = vtanh.f32 %v7320_v14 }
 0x2fe   :  { %6325 = vpow2.f32 %v4609_v60 }
 0x2ff   :  { %6327 = vtanh.f32 %v7311_v9 }
 0x307   :  { %v6324_v16 = vpop.eup %6323 }
 0x308   :  { %v7325_v34 = vmul.f32 %v6324_v16, %v6322_v46  ;;  %v6326_v55 = vpop.eup %6325  ;;  %v8456_v46 = vld [vmem:[#allocation102_spill] sm:$0xff] }
 0x309   :  { %v1082_v31 = vadd.f32 1.0, %v6326_v55  ;;  %v6328_v16 = vpop.eup %6327 }
 0x30a   :  { %1391 = vmatmul.mubr.f32.vlgmr.msra.gmra.mrb[8].mxu0 %v7325_v34  ;;  %1462 = vmatmul.mubr.f32.vlgmr.msra.gmra.mrb[8].mxu1 %v7325_v34 }
 0x30b   :  { %5139 = vmatpush1.bf16.msra.mxu0 %v8440_v50  ;;  %5171 = vmatpush1.bf16.msra.mxu1 %v8441_v25  ;;  %6329 = vrcp.f32 %v1082_v31  ;;  %v8457_v31 = vld [vmem:[#allocation50_spill] sm:$0xff] }
 0x30c   :  { %5141 = vmatprep.subr.bf16.mxu0 %v8442_v54  ;;  %5173 = vmatprep.subr.bf16.mxu1 %v8443_v5 }
 0x30d   :  { %1532 = vmatprep.mubr.f32.mxu0 %v8374_v49  ;;  %1603 = vmatprep.mubr.f32.mxu1 %v8374_v49 }
 0x30f   :  { %5143 = vmatpush1.bf16.msra.mxu0 %v8444_v10  ;;  %5175 = vmatpush1.bf16.msra.mxu1 %v8445_v44 }
 0x310   :  { %5145 = vmatprep.subr.bf16.mxu0 %v8446_v12  ;;  %5177 = vmatprep.subr.bf16.mxu1 %v8447_v17 }
 0x313   :  { %5147 = vmatpush1.bf16.msra.mxu0 %v8448_v22  ;;  %5179 = vmatpush1.bf16.msra.mxu1 %v8449_v57 }
 0x314   :  { %5149 = vmatprep.subr.bf16.mxu0 %v8450_v4  ;;  %5181 = vmatprep.subr.bf16.mxu1 %v8451_v51 }
 0x315   :  { %v6330_v60 = vpop.eup %6329 }
 0x316   :  { %v7362_v55 = vmul.f32 %v6330_v60, %v6328_v16  ;;  %v8460_v16 = vld [vmem:[#allocation53_spill] sm:$0xff]  ;;  %v8461_v60 = vld [vmem:[#allocation54_spill] sm:$0xff] }
 0x317   :  { %5151 = vmatpush1.bf16.msra.mxu0 %v8452_v38  ;;  %5183 = vmatpush1.bf16.msra.mxu1 %v8453_v47 }
 0x318   :  { %5153 = vmatprep.subr.bf16.mxu0 %v7168_v23  ;;  %5185 = vmatprep.subr.bf16.mxu1 %v8454_v48 }
 0x31b   :  { %5155 = vmatpush1.bf16.msra.mxu0 %v8455_v27  ;;  %5187 = vmatpush1.bf16.msra.mxu1 %v8456_v46 }
 0x31c   :  { %5157 = vmatprep.subr.bf16.mxu0 %v7180_v6  ;;  %5189 = vmatprep.subr.bf16.mxu1 %v7182_v32 }
 0x31f   :  { %5159 = vmatpush1.bf16.msra.mxu0 %v7187_v3  ;;  %5191 = vmatpush1.bf16.msra.mxu1 %v7189_v39 }
 0x320   :  { %5161 = vmatprep.subr.bf16.mxu0 %v7193_v19  ;;  %5193 = vmatprep.subr.bf16.mxu1 %v7195_v35 }
 0x323   :  { %5163 = vmatpush1.bf16.msra.mxu0 %v7199_v29  ;;  %5195 = vmatpush1.bf16.msra.mxu1 %v7201_v53 }
 0x324   :  { %5165 = vmatprep.subr.bf16.mxu0 %v7205_v56  ;;  %5197 = vmatprep.subr.bf16.mxu1 %v7207_v20  ;;  %v8458_v20 = vld [vmem:[#allocation51_spill] sm:$0xff]  ;;  %v8459_v56 = vld [vmem:[#allocation52_spill] sm:$0xff] }
 0x327   :  { %5167 = vmatpush1.bf16.msra.mxu0 %v7211_v0  ;;  %5199 = vmatpush1.bf16.msra.mxu1 %v7213_v61 }
 0x328   :  { %5201 = vmatprep.subr.bf16.mxu0 %v6918_v13  ;;  %5233 = vmatprep.subr.bf16.mxu1 %v6933_v28  ;;  %v8462_v28 = vld [vmem:[#allocation57_spill] sm:$0xff] }
 0x32a   :  { %1533 = vmatmul.mubr.f32.vlgmr.msra.gmra.mrb[8].mxu0 %v7362_v55  ;;  %1604 = vmatmul.mubr.f32.vlgmr.msra.gmra.mrb[8].mxu1 %v7362_v55 }
 0x32b   :  { %5203 = vmatpush1.bf16.msra.mxu0 %v6940_v63  ;;  %5235 = vmatpush1.bf16.msra.mxu1 %v8457_v31 }
 0x32c   :  { %5205 = vmatprep.subr.bf16.mxu0 %v8458_v20  ;;  %5237 = vmatprep.subr.bf16.mxu1 %v8459_v56 }
 0x32d   :  { %1768 = vmatprep.mubr.f32.mxu0 %v8374_v49  ;;  %1839 = vmatprep.mubr.f32.mxu1 %v8374_v49 }
 0x32f   :  { %5207 = vmatpush1.bf16.msra.mxu0 %v8460_v16  ;;  %5239 = vmatpush1.bf16.msra.mxu1 %v8461_v60 }
 0x330   :  { %5209 = vmatprep.subr.bf16.mxu0 %v8406_v24  ;;  %5241 = vmatprep.subr.bf16.mxu1 %v8407_v58 }
 0x333   :  { %5211 = vmatpush1.bf16.msra.mxu0 %v8462_v28  ;;  %5243 = vmatpush1.bf16.msra.mxu1 %v8409_v40 }
 0x334   :  { %5213 = vmatprep.subr.bf16.mxu0 %v8410_v41  ;;  %5245 = vmatprep.subr.bf16.mxu1 %v8411_v45 }
 0x337   :  { %5215 = vmatpush1.bf16.msra.mxu0 %v8412_v15  ;;  %5247 = vmatpush1.bf16.msra.mxu1 %v8413_v59 }
 0x338   :  { %5217 = vmatprep.subr.bf16.mxu0 %v8414_v18  ;;  %5249 = vmatprep.subr.bf16.mxu1 %v8415_v2  ;;  %v8501_v18 = vld [vmem:[#allocation106_spill] sm:$0xff] }
 0x33b   :  { %5219 = vmatpush1.bf16.msra.mxu0 %v8416_v11  ;;  %5251 = vmatpush1.bf16.msra.mxu1 %v6994_v37  ;;  %v8463_v11 = vld [vmem:[#allocation76_spill] sm:$0xff]  ;;  %v8464_v37 = vld [vmem:[#allocation77_spill] sm:$0xff] }
 0x33c   :  { %5221 = vmatprep.subr.bf16.mxu0 %v6997_v33  ;;  %5253 = vmatprep.subr.bf16.mxu1 %v8417_v43  ;;  %v8465_v33 = vld [vmem:[#allocation78_spill] sm:$0xff]  ;;  %v8466_v43 = vld [vmem:[#allocation16_spill] sm:$0xff] }
 0x33f   :  { %5223 = vmatpush1.bf16.msra.mxu0 %v7003_v30  ;;  %5255 = vmatpush1.bf16.msra.mxu1 %v7006_v7  ;;  %v8467_v30 = vld [vmem:[#allocation21_spill] sm:$0xff] }
 0x340   :  { %5225 = vmatprep.subr.bf16.mxu0 %v7009_v62  ;;  %5257 = vmatprep.subr.bf16.mxu1 %v7012_v26  ;;  %v8468_v26 = vld [vmem:[#allocation17_spill] sm:$0xff] }
 0x341   :  { %v8482_v62 = vld [vmem:[#allocation29_spill] sm:$0xff] }
 0x342   :  { %v8500_v7 = vld [vmem:[#allocation81_spill] sm:$0xff] }
 0x343   :  { %5227 = vmatpush1.bf16.msra.mxu0 %v7015_v52  ;;  %5259 = vmatpush1.bf16.msra.mxu1 %v7018_v36  ;;  %v8469_v52 = vld [vmem:[#allocation22_spill] sm:$0xff] }
 0x344   :  { %5229 = vmatprep.subr.bf16.mxu0 %v7021_v21  ;;  %5261 = vmatprep.subr.bf16.mxu1 %v8463_v11  ;;  %v8470_v36 = vld [vmem:[#allocation18_spill] sm:$0xff]  ;;  %v8471_v21 = vld [vmem:[#allocation25_spill] sm:$0xff]  ;;  %v8481_v11 = vld [vmem:[#allocation35_spill] sm:$0xff] }
 0x347   :  { %5231 = vmatpush1.bf16.msra.mxu0 %v8464_v37  ;;  %5263 = vmatpush1.bf16.msra.mxu1 %v8465_v33  ;;  %v8472_v33 = vld [vmem:[#allocation19_spill] sm:$0xff]  ;;  %v8475_v37 = vld [vmem:[#allocation28_spill] sm:$0xff] }
 0x348   :  { %5265 = vmatprep.subr.bf16.mxu0 %v8466_v43  ;;  %5297 = vmatprep.subr.bf16.mxu1 %v8467_v30  ;;  %v8473_v43 = vld [vmem:[#allocation26_spill] sm:$0xff]  ;;  %v8474_v30 = vld [vmem:[#allocation20_spill] sm:$0xff] }
 0x34a   :  { %1769 = vmatmul.mubr.f32.vlgmr.msra.gmra.mrb[10].mxu0 %v7325_v34  ;;  %1840 = vmatmul.mubr.f32.vlgmr.msra.gmra.mrb[10].mxu1 %v7325_v34  ;;  %v8476_v34 = vld [vmem:[#allocation23_spill] sm:$0xff] }
 0x34b   :  { %5267 = vmatpush1.bf16.msra.mxu0 %v8468_v26  ;;  %5299 = vmatpush1.bf16.msra.mxu1 %v8469_v52  ;;  %v8477_v26 = vld [vmem:[#allocation30_spill] sm:$0xff]  ;;  %v8478_v52 = vld [vmem:[#allocation24_spill] sm:$0xff] }
 0x34c   :  { %5269 = vmatprep.subr.bf16.mxu0 %v8470_v36  ;;  %5301 = vmatprep.subr.bf16.mxu1 %v8471_v21  ;;  %v8479_v36 = vld [vmem:[#allocation31_spill] sm:$0xff] }
 0x34d   :  { %1938 = vmatprep.mubr.f32.mxu0 %v8374_v49  ;;  %2009 = vmatprep.mubr.f32.mxu1 %v8374_v49  ;;  %v8480_v21 = vld [vmem:[#allocation27_spill] sm:$0xff] }
 0x34f   :  { %5271 = vmatpush1.bf16.msra.mxu0 %v8472_v33  ;;  %5303 = vmatpush1.bf16.msra.mxu1 %v8473_v43  ;;  %v8483_v33 = vld [vmem:[#allocation36_spill] sm:$0xff]  ;;  %v8484_v43 = vld [vmem:[#allocation33_spill] sm:$0xff] }
 0x350   :  { %5273 = vmatprep.subr.bf16.mxu0 %v8474_v30  ;;  %5305 = vmatprep.subr.bf16.mxu1 %v8475_v37  ;;  %v8485_v30 = vld [vmem:[#allocation39_spill] sm:$0xff]  ;;  %v8486_v37 = vld [vmem:[#allocation34_spill] sm:$0xff] }
 0x353   :  { %5275 = vmatpush1.bf16.msra.mxu0 %v8476_v34  ;;  %5307 = vmatpush1.bf16.msra.mxu1 %v8477_v26  ;;  %v8487_v34 = vld [vmem:[#allocation40_spill] sm:$0xff]  ;;  %v8488_v26 = vld [vmem:[#allocation37_spill] sm:$0xff] }
 0x354   :  { %5277 = vmatprep.subr.bf16.mxu0 %v8478_v52  ;;  %5309 = vmatprep.subr.bf16.mxu1 %v8479_v36  ;;  %v8489_v52 = vld [vmem:[#allocation43_spill] sm:$0xff]  ;;  %v8490_v36 = vld [vmem:[#allocation38_spill] sm:$0xff] }
 0x357   :  { %5279 = vmatpush1.bf16.msra.mxu0 %v8480_v21  ;;  %5311 = vmatpush1.bf16.msra.mxu1 %v8481_v11  ;;  %v8491_v21 = vld [vmem:[#allocation44_spill] sm:$0xff]  ;;  %v8492_v11 = vld [vmem:[#allocation41_spill] sm:$0xff] }
 0x358   :  { %5281 = vmatprep.subr.bf16.mxu0 %v8482_v62  ;;  %5313 = vmatprep.subr.bf16.mxu1 %v8483_v33  ;;  %v8493_v62 = vld [vmem:[#allocation46_spill] sm:$0xff] }
 0x359   :  { %v8494_v33 = vld [vmem:[#allocation42_spill] sm:$0xff] }
 0x35b   :  { %5283 = vmatpush1.bf16.msra.mxu0 %v8484_v43  ;;  %5315 = vmatpush1.bf16.msra.mxu1 %v8485_v30  ;;  %v8495_v43 = vld [vmem:[#allocation47_spill] sm:$0xff]  ;;  %v8496_v30 = vld [vmem:[#allocation45_spill] sm:$0xff] }
 0x35c   :  { %5285 = vmatprep.subr.bf16.mxu0 %v8486_v37  ;;  %5317 = vmatprep.subr.bf16.mxu1 %v8487_v34  ;;  %v8497_v37 = vld [vmem:[#allocation48_spill] sm:$0xff]  ;;  %v8498_v34 = vld [vmem:[#allocation79_spill] sm:$0xff] }
 0x35f   :  { %5287 = vmatpush1.bf16.msra.mxu0 %v8488_v26  ;;  %5319 = vmatpush1.bf16.msra.mxu1 %v8489_v52  ;;  %v8499_v26 = vld [vmem:[#allocation80_spill] sm:$0xff] }
 0x360   :  { %5289 = vmatprep.subr.bf16.mxu0 %v8490_v36  ;;  %5321 = vmatprep.subr.bf16.mxu1 %v8491_v21 }
 0x363   :  { %5291 = vmatpush1.bf16.msra.mxu0 %v8492_v11  ;;  %5323 = vmatpush1.bf16.msra.mxu1 %v8493_v62 }
 0x364   :  { %5293 = vmatprep.subr.bf16.mxu0 %v8494_v33  ;;  %5325 = vmatprep.subr.bf16.mxu1 %v8495_v43 }
 0x367   :  { %5295 = vmatpush1.bf16.msra.mxu0 %v8496_v30  ;;  %5327 = vmatpush1.bf16.msra.mxu1 %v8497_v37 }
 0x368   :  { %5329 = vmatprep.subr.bf16.mxu0 %v8498_v34  ;;  %5361 = vmatprep.subr.bf16.mxu1 %v8499_v26  ;;  %v8502_v26 = vld [vmem:[#allocation82_spill] sm:$0xff] }
 0x3fd   :  { %v1534_v52 = vpop.f32.mrb[8].mxu0  ;;  %v1605_v36 = vpop.f32.mrb[8].mxu1 }
 0x3fe   :  { %v6196_v21 = vadd.f32 %v1534_v52, %v8500_v7  ;;  %v1536_v2 = vpop.f32.mrb[9].mxu0  ;;  %v1607_v11 = vpop.f32.mrb[9].mxu1  ;;  %v6198_v30 = vadd.f32 %v1605_v36, %v8502_v26  ;;  %v8503_v36 = vld [vmem:[#allocation32_spill] sm:$0xff] }
 0x3ff   :  { %v6197_v62 = vadd.f32 %v1536_v2, %v8501_v18  ;;  %v6199_v37 = vadd.f32 %v1607_v11, %v8439_v8  ;;  %v8504_v8 = vld [vmem:[#allocation83_spill] sm:$0xff] }
 0x400   :  { %v4619_v33 = vmul.f32 -1.442695, %v6196_v21 }
 0x401   :  { %v4620_v43 = vmul.f32 -1.442695, %v6197_v62  ;;  %v4621_v34 = vmul.f32 -1.442695, %v6199_v37 }
 0x402   :  { %6331 = vpow2.f32 %v4619_v33  ;;  %v1647_v33 = vld [vmem:[%s1646_s23] ss:$8 sm:$0xf]  ;;  %s3293_s23 = sshra.s32 %s4661_s20, 3 }
 0x403   :  { %6333 = vpow2.f32 %v4620_v43  ;;  %v1657_v37 = vld [vmem:[%s1656_s0] ss:$8 sm:$0xf]  ;;  %v1662_v11 = vrot.slane %v1647_v33, %v8503_v36  ;;  %v1666_v18 = vrot.slane %v1647_v33, %v8504_v8  ;;  %v1674_v58 = vrot.slane %v1647_v33, %v6856_v1  ;;  %s3286_s0 = sand.u32 7, %s4658_s5  ;;  %s4696_s28 = sshll.u32 %s3293_s23, 5 }
 0x404   :  { %6335 = vpow2.f32 %v4621_v34  ;;  %v1683_v43 = vrot.slane %v1657_v37, %v8503_v36  ;;  %v1687_v34 = vrot.slane %v1657_v37, %v8504_v8  ;;  %v1695_v8 = vrot.slane %v1657_v37, %v6856_v1  ;;  %s3289_s29 = sadd.s32 %s4695_s24, %s3286_s0  ;;  %s3299_s3 = sadd.s32 %s4696_s28, %s3296_s25 }
 0x405   :  { %6337 = vtanh.f32 %v6198_v30  ;;  %s3290_s26 = scalar_lea.vmem [#allocation4], %s3289_s29  ;;  %s3300_s27 = scalar_lea.vmem [#allocation4], %s3299_s3 }
 0x406   :  { %v1701_v15 = vsel %vm151_vm0, %v1666_v18, %v1687_v34  ;;  %v1703_v18 = vsel %vm151_vm0, %v1674_v58, %v1695_v8 }
 0x40c   :  { %v6332_v52 = vpop.eup %6331 }
 0x40d   :  { %v6334_v7 = vpop.eup %6333  ;;  %v1617_v2 = vadd.f32 1.0, %v6332_v52 }
 0x40e   :  { %v1623_v21 = vadd.f32 1.0, %v6334_v7  ;;  %v6336_v62 = vpop.eup %6335 }
 0x40f   :  { %6339 = vrcp.f32 %v1617_v2  ;;  %v6338_v26 = vpop.eup %6337  ;;  %v1630_v59 = vadd.f32 1.0, %v6336_v62 }
 0x410   :  { %6341 = vrcp.f32 %v1623_v21  ;;  %v1700_v21 = vsel %vm151_vm0, %v1662_v11, %v1683_v43  ;;  %v1670_v11 = vrot.slane %v1647_v33, %v6898_v42  ;;  %v1691_v43 = vrot.slane %v1657_v37, %v6898_v42 }
 0x411   :  { %6343 = vrcp.f32 %v1630_v59 }
 0x419   :  { %v6340_v30 = vpop.eup %6339 }
 0x41a   :  { %v6342_v7 = vpop.eup %6341  ;;  %v1634_v52 = vmul.f32 %v6340_v30, %v6338_v26 }
 0x41b   :  { %v1633_v2 = vmul.f32 %v6342_v7, %v7311_v9  ;;  %v6344_v34 = vpop.eup %6343  ;;  %v4379_v7 = vrot.slane %v7362_v55, 7 }
 0x41d   :  { %v7449_v45 = vadd.f32 %v1634_v52, %v1633_v2  ;;  %v1770_v41 = vpop.f32.mrb[10].mxu0  ;;  %v1841_v40 = vpop.f32.mrb[10].mxu1 }
 0x41e   :  { %v1846_v36 = vadd.f32 %v1770_v41, %v1700_v21  ;;  %v1772_v28 = vpop.f32.mrb[11].mxu0  ;;  %v1843_v24 = vpop.f32.mrb[11].mxu1  ;;  %v1702_v41 = vsel %vm151_vm0, %v1670_v11, %v1691_v43 }
 0x41f   :  { %v1847_v26 = vadd.f32 %v1772_v28, %v1701_v15  ;;  %6345 = vtanh.f32 %v7449_v45  ;;  %v1849_v59 = vadd.f32 %v1843_v24, %v1703_v18  ;;  %v1848_v15 = vadd.f32 %v1841_v40, %v1702_v41 }
 0x420   :  { %v4628_v9 = vmul.f32 -1.442695, %v1846_v36  ;;  %v8505_v36 = vld [vmem:[#allocation105_spill] sm:$0xff] }
 0x421   :  { %v4629_v62 = vmul.f32 -1.442695, %v1847_v26  ;;  %v4630_v28 = vmul.f32 -1.442695, %v1849_v59  ;;  %v4413_v2 = vrot.slane %v8505_v36, 1  ;;  %v4399_v26 = vsel %vm151_vm0, %v8505_v36, %v4379_v7  ;;  %v8507_v36 = vld [vmem:[#allocation104_spill] sm:$0xff] }
 0x422   :  { %6347 = vpow2.f32 %v4628_v9 }
 0x423   :  { %6349 = vpow2.f32 %v4629_v62  ;;  %v4427_v24 = vsel %vm151_vm0, %v4413_v2, %v7362_v55  ;;  %v8508_v2 = vld [vmem:[#allocation49_spill] sm:$0xff] }
 0x424   :  { %6351 = vpow2.f32 %v4630_v28 }
 0x425   :  { %6353 = vtanh.f32 %v1848_v15 }
 0x429   :  { %v6346_v30 = vpop.eup %6345 }
 0x42a   :  { %v7459_v52 = vmul.f32 %v6346_v30, %v6344_v34 }
 0x42c   :  { %v6348_v58 = vpop.eup %6347  ;;  %v4382_v8 = vrot.slane %v7459_v52, 6  ;;  %v4415_v33 = vrot.slane %v7459_v52, 7 }
 0x42d   :  { %v6350_v37 = vpop.eup %6349  ;;  %v1853_v21 = vadd.f32 1.0, %v6348_v58  ;;  %v8509_v58 = vld [vmem:[#allocation55_spill] sm:$0xff] }
 0x42e   :  { %v1859_v40 = vadd.f32 1.0, %v6350_v37  ;;  %v7468_v9 = vsel %vm4400_vm1, %v4399_v26, %v4382_v8  ;;  %v7470_v62 = vsel %vm4400_vm1, %v4427_v24, %v4415_v33  ;;  %v6352_v18 = vpop.eup %6351  ;;  %v8510_v8 = vld [vmem:[#allocation56_spill] sm:$0xff]  ;;  %v8512_v33 = vld [vmem:[#allocation58_spill] sm:$0xff]  ;;  %v8513_v37 = vld [vmem:[#allocation59_spill] sm:$0xff] }
 0x42f   :  { %6355 = vrcp.f32 %v1853_v21  ;;  %v6354_v11 = vpop.eup %6353  ;;  %v1866_v34 = vadd.f32 1.0, %v6352_v18  ;;  %v8514_v24 = vld [vmem:[#allocation60_spill] sm:$0xff]  ;;  %v8515_v21 = vld [vmem:[#allocation61_spill] sm:$0xff]  ;;  %v8516_v26 = vld [vmem:[#allocation62_spill] sm:$0xff] }
 0x430   :  { %6357 = vrcp.f32 %v1859_v40  ;;  %v8517_v40 = vld [vmem:[#allocation63_spill] sm:$0xff]  ;;  %v8518_v18 = vld [vmem:[#allocation64_spill] sm:$0xff] }
 0x431   :  { %6359 = vrcp.f32 %v1866_v34  ;;  %v8523_v34 = vld [vmem:[#allocation69_spill] sm:$0xff] }
 0x439   :  { %v6356_v43 = vpop.eup %6355 }
 0x43a   :  { %v6358_v59 = vpop.eup %6357  ;;  %v1870_v41 = vmul.f32 %v6356_v43, %v6354_v11  ;;  %v8519_v11 = vld [vmem:[#allocation65_spill] sm:$0xff]  ;;  %v8520_v43 = vld [vmem:[#allocation66_spill] sm:$0xff] }
 0x43b   :  { %v1869_v55 = vmul.f32 %v6358_v59, %v7320_v14  ;;  %v6360_v7 = vpop.eup %6359  ;;  %v8506_v14 = vld [vmem:[#allocation103_spill] sm:$0xff] }
 0x43c   :  { %v8521_v59 = vld [vmem:[#allocation67_spill] sm:$0xff] }
 0x43d   :  { %v7473_v30 = vadd.f32 %v1870_v41, %v1869_v55  ;;  %v8522_v41 = vld [vmem:[#allocation68_spill] sm:$0xff]  ;;  %v8524_v55 = vld [vmem:[#allocation70_spill] sm:$0xff] }
 0x43f   :  { %6361 = vtanh.f32 %v7473_v30 }
 0x449   :  { %v6362_v28 = vpop.eup %6361 }
 0x44a   :  { %v7476_v15 = vmul.f32 %v6362_v28, %v6360_v7  ;;  %v8525_v7 = vld [vmem:[#allocation71_spill] sm:$0xff]  ;;  %v8526_v28 = vld [vmem:[#allocation72_spill] sm:$0xff] }
 0x44c   :  { %1939 = vmatmul.mubr.f32.vlgmr.msra.gmra.mrb[12].mxu0 %v7476_v15  ;;  %2010 = vmatmul.mubr.f32.vlgmr.msra.gmra.mrb[12].mxu1 %v7476_v15 }
 0x44d   :  { %5331 = vmatpush1.bf16.msra.mxu0 %v8440_v50  ;;  %5363 = vmatpush1.bf16.msra.mxu1 %v8441_v25 }
 0x44e   :  { %5333 = vmatprep.subr.bf16.mxu0 %v8442_v54  ;;  %5365 = vmatprep.subr.bf16.mxu1 %v8443_v5 }
 0x44f   :  { %2080 = vmatprep.mubr.f32.mxu0 %v8374_v49  ;;  %2151 = vmatprep.mubr.f32.mxu1 %v8374_v49 }
 0x451   :  { %5335 = vmatpush1.bf16.msra.mxu0 %v8444_v10  ;;  %5367 = vmatpush1.bf16.msra.mxu1 %v8445_v44 }
 0x452   :  { %5337 = vmatprep.subr.bf16.mxu0 %v8446_v12  ;;  %5369 = vmatprep.subr.bf16.mxu1 %v8447_v17 }
 0x455   :  { %5339 = vmatpush1.bf16.msra.mxu0 %v8448_v22  ;;  %5371 = vmatpush1.bf16.msra.mxu1 %v8449_v57 }
 0x456   :  { %5341 = vmatprep.subr.bf16.mxu0 %v8450_v4  ;;  %5373 = vmatprep.subr.bf16.mxu1 %v8451_v51 }
 0x459   :  { %5343 = vmatpush1.bf16.msra.mxu0 %v8452_v38  ;;  %5375 = vmatpush1.bf16.msra.mxu1 %v8453_v47 }
 0x45a   :  { %5345 = vmatprep.subr.bf16.mxu0 %v7168_v23  ;;  %5377 = vmatprep.subr.bf16.mxu1 %v8454_v48 }
 0x45d   :  { %5347 = vmatpush1.bf16.msra.mxu0 %v8455_v27  ;;  %5379 = vmatpush1.bf16.msra.mxu1 %v8456_v46 }
 0x45e   :  { %5349 = vmatprep.subr.bf16.mxu0 %v7180_v6  ;;  %5381 = vmatprep.subr.bf16.mxu1 %v7182_v32 }
 0x461   :  { %5351 = vmatpush1.bf16.msra.mxu0 %v7187_v3  ;;  %5383 = vmatpush1.bf16.msra.mxu1 %v7189_v39 }
 0x462   :  { %5353 = vmatprep.subr.bf16.mxu0 %v7193_v19  ;;  %5385 = vmatprep.subr.bf16.mxu1 %v7195_v35 }
 0x465   :  { %5355 = vmatpush1.bf16.msra.mxu0 %v7199_v29  ;;  %5387 = vmatpush1.bf16.msra.mxu1 %v7201_v53 }
 0x466   :  { %5357 = vmatprep.subr.bf16.mxu0 %v8506_v14  ;;  %5389 = vmatprep.subr.bf16.mxu1 %v8507_v36 }
 0x469   :  { %5359 = vmatpush1.bf16.msra.mxu0 %v7211_v0  ;;  %5391 = vmatpush1.bf16.msra.mxu1 %v7213_v61 }
 0x46a   :  { %5393 = vmatprep.subr.bf16.mxu0 %v6918_v13  ;;  %5425 = vmatprep.subr.bf16.mxu1 %v8508_v2 }
 0x46c   :  { %2081 = vmatmul.mubr.f32.vlgmr.msra.gmra.mrb[12].mxu0 %v7459_v52  ;;  %2152 = vmatmul.mubr.f32.vlgmr.msra.gmra.mrb[12].mxu1 %v7459_v52  ;;  %v8511_v52 = vld [vmem:[#allocation57_spill] sm:$0xff] }
 0x46d   :  { %5395 = vmatpush1.bf16.msra.mxu0 %v6940_v63  ;;  %5427 = vmatpush1.bf16.msra.mxu1 %v8457_v31 }
 0x46e   :  { %5397 = vmatprep.subr.bf16.mxu0 %v8458_v20  ;;  %5429 = vmatprep.subr.bf16.mxu1 %v8459_v56 }
 0x46f   :  { %2316 = vmatprep.mubr.f32.mxu0 %v8374_v49  ;;  %2387 = vmatprep.mubr.f32.mxu1 %v8374_v49 }
 0x471   :  { %5399 = vmatpush1.bf16.msra.mxu0 %v8460_v16  ;;  %5431 = vmatpush1.bf16.msra.mxu1 %v8461_v60 }
 0x472   :  { %5401 = vmatprep.subr.bf16.mxu0 %v8509_v58  ;;  %5433 = vmatprep.subr.bf16.mxu1 %v8510_v8 }
 0x475   :  { %5403 = vmatpush1.bf16.msra.mxu0 %v8511_v52  ;;  %5435 = vmatpush1.bf16.msra.mxu1 %v8512_v33 }
 0x476   :  { %5405 = vmatprep.subr.bf16.mxu0 %v8513_v37  ;;  %5437 = vmatprep.subr.bf16.mxu1 %v8514_v24  ;;  %v8568_v24 = vld [vmem:[#allocation106_spill] sm:$0xff] }
 0x479   :  { %5407 = vmatpush1.bf16.msra.mxu0 %v8515_v21  ;;  %5439 = vmatpush1.bf16.msra.mxu1 %v8516_v26  ;;  %v8527_v26 = vld [vmem:[#allocation73_spill] sm:$0xff] }
 0x47a   :  { %5409 = vmatprep.subr.bf16.mxu0 %v8517_v40  ;;  %5441 = vmatprep.subr.bf16.mxu1 %v8518_v18  ;;  %v8528_v40 = vld [vmem:[#allocation74_spill] sm:$0xff]  ;;  %v8529_v18 = vld [vmem:[#allocation75_spill] sm:$0xff] }
 0x47d   :  { %5411 = vmatpush1.bf16.msra.mxu0 %v8519_v11  ;;  %5443 = vmatpush1.bf16.msra.mxu1 %v8520_v43  ;;  %v8530_v11 = vld [vmem:[#allocation76_spill] sm:$0xff]  ;;  %v8531_v43 = vld [vmem:[#allocation77_spill] sm:$0xff] }
 0x47e   :  { %5413 = vmatprep.subr.bf16.mxu0 %v8521_v59  ;;  %5445 = vmatprep.subr.bf16.mxu1 %v8522_v41  ;;  %v8532_v59 = vld [vmem:[#allocation78_spill] sm:$0xff]  ;;  %v8533_v41 = vld [vmem:[#allocation16_spill] sm:$0xff] }
 0x481   :  { %5415 = vmatpush1.bf16.msra.mxu0 %v8523_v34  ;;  %5447 = vmatpush1.bf16.msra.mxu1 %v8524_v55  ;;  %v8534_v34 = vld [vmem:[#allocation21_spill] sm:$0xff] }
 0x482   :  { %5417 = vmatprep.subr.bf16.mxu0 %v8525_v7  ;;  %5449 = vmatprep.subr.bf16.mxu1 %v8526_v28  ;;  %v8535_v28 = vld [vmem:[#allocation17_spill] sm:$0xff] }
 0x483   :  { %v8549_v7 = vld [vmem:[#allocation29_spill] sm:$0xff] }
 0x484   :  { %v8567_v55 = vld [vmem:[#allocation81_spill] sm:$0xff] }
 0x485   :  { %5419 = vmatpush1.bf16.msra.mxu0 %v8527_v26  ;;  %5451 = vmatpush1.bf16.msra.mxu1 %v8528_v40  ;;  %v8536_v26 = vld [vmem:[#allocation22_spill] sm:$0xff] }
 0x486   :  { %5421 = vmatprep.subr.bf16.mxu0 %v8529_v18  ;;  %5453 = vmatprep.subr.bf16.mxu1 %v8530_v11  ;;  %v8537_v40 = vld [vmem:[#allocation18_spill] sm:$0xff]  ;;  %v8538_v18 = vld [vmem:[#allocation25_spill] sm:$0xff]  ;;  %v8548_v11 = vld [vmem:[#allocation35_spill] sm:$0xff] }
 0x489   :  { %5423 = vmatpush1.bf16.msra.mxu0 %v8531_v43  ;;  %5455 = vmatpush1.bf16.msra.mxu1 %v8532_v59  ;;  %v8539_v59 = vld [vmem:[#allocation19_spill] sm:$0xff]  ;;  %v8542_v43 = vld [vmem:[#allocation28_spill] sm:$0xff] }
 0x48a   :  { %5457 = vmatprep.subr.bf16.mxu0 %v8533_v41  ;;  %5489 = vmatprep.subr.bf16.mxu1 %v8534_v34  ;;  %v8540_v41 = vld [vmem:[#allocation26_spill] sm:$0xff]  ;;  %v8541_v34 = vld [vmem:[#allocation20_spill] sm:$0xff] }
 0x48c   :  { %2317 = vmatmul.mubr.f32.vlgmr.msra.gmra.mrb[14].mxu0 %v7476_v15  ;;  %2388 = vmatmul.mubr.f32.vlgmr.msra.gmra.mrb[14].mxu1 %v7476_v15  ;;  %v8543_v15 = vld [vmem:[#allocation23_spill] sm:$0xff] }
 0x48d   :  { %5459 = vmatpush1.bf16.msra.mxu0 %v8535_v28  ;;  %5491 = vmatpush1.bf16.msra.mxu1 %v8536_v26  ;;  %v8544_v28 = vld [vmem:[#allocation30_spill] sm:$0xff]  ;;  %v8545_v26 = vld [vmem:[#allocation24_spill] sm:$0xff] }
 0x48e   :  { %5461 = vmatprep.subr.bf16.mxu0 %v8537_v40  ;;  %5493 = vmatprep.subr.bf16.mxu1 %v8538_v18  ;;  %v8546_v40 = vld [vmem:[#allocation31_spill] sm:$0xff] }
 0x48f   :  { %2486 = vmatprep.mubr.f32.mxu0 %v8374_v49  ;;  %2557 = vmatprep.mubr.f32.mxu1 %v8374_v49  ;;  %v8547_v18 = vld [vmem:[#allocation27_spill] sm:$0xff] }
 0x491   :  { %5463 = vmatpush1.bf16.msra.mxu0 %v8539_v59  ;;  %5495 = vmatpush1.bf16.msra.mxu1 %v8540_v41  ;;  %v8550_v59 = vld [vmem:[#allocation36_spill] sm:$0xff]  ;;  %v8551_v41 = vld [vmem:[#allocation33_spill] sm:$0xff] }
 0x492   :  { %5465 = vmatprep.subr.bf16.mxu0 %v8541_v34  ;;  %5497 = vmatprep.subr.bf16.mxu1 %v8542_v43  ;;  %v8552_v34 = vld [vmem:[#allocation39_spill] sm:$0xff]  ;;  %v8553_v43 = vld [vmem:[#allocation34_spill] sm:$0xff] }
 0x495   :  { %5467 = vmatpush1.bf16.msra.mxu0 %v8543_v15  ;;  %5499 = vmatpush1.bf16.msra.mxu1 %v8544_v28  ;;  %v8554_v15 = vld [vmem:[#allocation40_spill] sm:$0xff]  ;;  %v8555_v28 = vld [vmem:[#allocation37_spill] sm:$0xff] }
 0x496   :  { %5469 = vmatprep.subr.bf16.mxu0 %v8545_v26  ;;  %5501 = vmatprep.subr.bf16.mxu1 %v8546_v40  ;;  %v8556_v26 = vld [vmem:[#allocation43_spill] sm:$0xff]  ;;  %v8557_v40 = vld [vmem:[#allocation38_spill] sm:$0xff] }
 0x499   :  { %5471 = vmatpush1.bf16.msra.mxu0 %v8547_v18  ;;  %5503 = vmatpush1.bf16.msra.mxu1 %v8548_v11  ;;  %v8558_v18 = vld [vmem:[#allocation44_spill] sm:$0xff]  ;;  %v8559_v11 = vld [vmem:[#allocation41_spill] sm:$0xff] }
 0x49a   :  { %5473 = vmatprep.subr.bf16.mxu0 %v8549_v7  ;;  %5505 = vmatprep.subr.bf16.mxu1 %v8550_v59  ;;  %v8560_v7 = vld [vmem:[#allocation46_spill] sm:$0xff] }
 0x49b   :  { %v8561_v59 = vld [vmem:[#allocation42_spill] sm:$0xff] }
 0x49d   :  { %5475 = vmatpush1.bf16.msra.mxu0 %v8551_v41  ;;  %5507 = vmatpush1.bf16.msra.mxu1 %v8552_v34  ;;  %v8562_v41 = vld [vmem:[#allocation47_spill] sm:$0xff]  ;;  %v8563_v34 = vld [vmem:[#allocation45_spill] sm:$0xff] }
 0x49e   :  { %5477 = vmatprep.subr.bf16.mxu0 %v8553_v43  ;;  %5509 = vmatprep.subr.bf16.mxu1 %v8554_v15  ;;  %v8564_v43 = vld [vmem:[#allocation48_spill] sm:$0xff]  ;;  %v8565_v15 = vld [vmem:[#allocation79_spill] sm:$0xff] }
 0x4a1   :  { %5479 = vmatpush1.bf16.msra.mxu0 %v8555_v28  ;;  %5511 = vmatpush1.bf16.msra.mxu1 %v8556_v26  ;;  %v8566_v28 = vld [vmem:[#allocation80_spill] sm:$0xff] }
 0x4a2   :  { %5481 = vmatprep.subr.bf16.mxu0 %v8557_v40  ;;  %5513 = vmatprep.subr.bf16.mxu1 %v8558_v18 }
 0x4a5   :  { %5483 = vmatpush1.bf16.msra.mxu0 %v8559_v11  ;;  %5515 = vmatpush1.bf16.msra.mxu1 %v8560_v7 }
 0x4a6   :  { %5485 = vmatprep.subr.bf16.mxu0 %v8561_v59  ;;  %5517 = vmatprep.subr.bf16.mxu1 %v8562_v41 }
 0x4a9   :  { %5487 = vmatpush1.bf16.msra.mxu0 %v8563_v34  ;;  %5519 = vmatpush1.bf16.msra.mxu1 %v8564_v43  ;;  %v8569_v34 = vld [vmem:[#allocation85_spill] sm:$0xff] }
 0x4aa   :  { %5521 = vmatprep.subr.bf16.mxu0 %v8565_v15  ;;  %5553 = vmatprep.subr.bf16.mxu1 %v8566_v28  ;;  %v8570_v28 = vld [vmem:[#allocation82_spill] sm:$0xff] }
 0x53f   :  { %v2082_v26 = vpop.f32.mrb[12].mxu0  ;;  %v2153_v40 = vpop.f32.mrb[12].mxu1 }
 0x540   :  { %v6200_v18 = vadd.f32 %v2082_v26, %v8567_v55  ;;  %v2084_v21 = vpop.f32.mrb[13].mxu0  ;;  %v2155_v11 = vpop.f32.mrb[13].mxu1  ;;  %v6202_v37 = vadd.f32 %v2153_v40, %v8570_v28  ;;  %v8571_v40 = vld [vmem:[#allocation32_spill] sm:$0xff] }
 0x541   :  { %v6201_v7 = vadd.f32 %v2084_v21, %v8568_v24  ;;  %v6203_v43 = vadd.f32 %v2155_v11, %v8569_v34  ;;  %v2195_v11 = vld [vmem:[%s2194_s6] ss:$8 sm:$0xf]  ;;  %s3841_s6 = sshra.s32 %s4673_s4, 3 }
 0x542   :  { %v4631_v59 = vmul.f32 -1.442695, %v6200_v18  ;;  %v8572_v34 = vld [vmem:[#allocation83_spill] sm:$0xff]  ;;  %v2222_v56 = vrot.slane %v2195_v11, %v6856_v1  ;;  %s4698_s11 = sshll.u32 %s3841_s6, 5 }
 0x543   :  { %v4632_v41 = vmul.f32 -1.442695, %v6201_v7  ;;  %v4633_v15 = vmul.f32 -1.442695, %v6203_v43  ;;  %v2214_v24 = vrot.slane %v2195_v11, %v8572_v34  ;;  %s3847_s13 = sadd.s32 %s4698_s11, %s3844_s10 }
 0x544   :  { %6363 = vpow2.f32 %v4631_v59  ;;  %v2205_v43 = vld [vmem:[%s2204_s30] ss:$8 sm:$0xf]  ;;  %s3834_s30 = sand.u32 7, %s4670_s21  ;;  %s3848_s15 = scalar_lea.vmem [#allocation4], %s3847_s13 }
 0x545   :  { %6365 = vpow2.f32 %v4632_v41  ;;  %v2210_v41 = vrot.slane %v2195_v11, %v8571_v40  ;;  %v2231_v7 = vrot.slane %v2205_v43, %v8571_v40  ;;  %s3837_s12 = sadd.s32 %s4697_s9, %s3834_s30 }
 0x546   :  { %6367 = vpow2.f32 %v4633_v15  ;;  %v2235_v15 = vrot.slane %v2205_v43, %v8572_v34  ;;  %v2243_v34 = vrot.slane %v2205_v43, %v6856_v1  ;;  %s3838_s14 = scalar_lea.vmem [#allocation4], %s3837_s12 }
 0x547   :  { %6369 = vtanh.f32 %v6202_v37 }
 0x548   :  { %v2249_v52 = vsel %vm151_vm0, %v2214_v24, %v2235_v15  ;;  %v2251_v24 = vsel %vm151_vm0, %v2222_v56, %v2243_v34 }
 0x54e   :  { %v6364_v26 = vpop.eup %6363 }
 0x54f   :  { %v6366_v55 = vpop.eup %6365  ;;  %v2165_v21 = vadd.f32 1.0, %v6364_v26 }
 0x550   :  { %v2171_v18 = vadd.f32 1.0, %v6366_v55  ;;  %v6368_v59 = vpop.eup %6367 }
 0x551   :  { %6371 = vrcp.f32 %v2165_v21  ;;  %v6370_v28 = vpop.eup %6369  ;;  %v2178_v33 = vadd.f32 1.0, %v6368_v59 }
 0x552   :  { %6373 = vrcp.f32 %v2171_v18  ;;  %v2248_v18 = vsel %vm151_vm0, %v2210_v41, %v2231_v7  ;;  %v2218_v41 = vrot.slane %v2195_v11, %v6898_v42  ;;  %v2239_v7 = vrot.slane %v2205_v43, %v6898_v42 }
 0x553   :  { %6375 = vrcp.f32 %v2178_v33 }
 0x554   :  { %v2250_v33 = vsel %vm151_vm0, %v2218_v41, %v2239_v7 }
 0x55b   :  { %v6372_v37 = vpop.eup %6371 }
 0x55c   :  { %v6374_v55 = vpop.eup %6373  ;;  %v2182_v26 = vmul.f32 %v6372_v37, %v6370_v28 }
 0x55d   :  { %v2181_v21 = vmul.f32 %v6374_v55, %v7449_v45  ;;  %v6376_v15 = vpop.eup %6375 }
 0x55f   :  { %v7597_v8 = vadd.f32 %v2182_v26, %v2181_v21  ;;  %v2318_v58 = vpop.f32.mrb[14].mxu0  ;;  %v2389_v60 = vpop.f32.mrb[14].mxu1 }
 0x560   :  { %v2394_v40 = vadd.f32 %v2318_v58, %v2248_v18  ;;  %v2320_v16 = vpop.f32.mrb[15].mxu0  ;;  %v2391_v20 = vpop.f32.mrb[15].mxu1  ;;  %v2396_v26 = vadd.f32 %v2389_v60, %v2250_v33 }
 0x561   :  { %v2395_v28 = vadd.f32 %v2320_v16, %v2249_v52  ;;  %6377 = vtanh.f32 %v7597_v8  ;;  %v2397_v58 = vadd.f32 %v2391_v20, %v2251_v24 }
 0x562   :  { %v4640_v45 = vmul.f32 -1.442695, %v2394_v40 }
 0x563   :  { %v4641_v59 = vmul.f32 -1.442695, %v2395_v28  ;;  %v4642_v55 = vmul.f32 -1.442695, %v2397_v58 }
 0x564   :  { %6379 = vpow2.f32 %v4640_v45 }
 0x565   :  { %6381 = vpow2.f32 %v4641_v59 }
 0x566   :  { %6383 = vpow2.f32 %v4642_v55  ;;  %v8577_v55 = vld [vmem:[#allocation55_spill] sm:$0xff] }
 0x567   :  { %6385 = vtanh.f32 %v2396_v26  ;;  %v8578_v26 = vld [vmem:[#allocation56_spill] sm:$0xff] }
 0x56b   :  { %v6378_v37 = vpop.eup %6377 }
 0x56c   :  { %v7606_v16 = vmul.f32 %v6378_v37, %v6376_v15  ;;  %v8575_v15 = vld [vmem:[#allocation53_spill] sm:$0xff]  ;;  %v8576_v37 = vld [vmem:[#allocation54_spill] sm:$0xff] }
 0x56e   :  { %v6380_v52 = vpop.eup %6379  ;;  %v4417_v40 = vrot.slane %v7606_v16, 6  ;;  %v4385_v56 = vrot.slane %v7606_v16, 5 }
 0x56f   :  { %v6382_v34 = vpop.eup %6381  ;;  %v2401_v11 = vadd.f32 1.0, %v6380_v52  ;;  %v8580_v52 = vld [vmem:[#allocation58_spill] sm:$0xff] }
 0x570   :  { %v2407_v43 = vadd.f32 1.0, %v6382_v34  ;;  %v7611_v20 = vsel %vm4402_vm2, %v7468_v9, %v4385_v56  ;;  %v7614_v21 = vsel %vm4402_vm2, %v7470_v62, %v4417_v40  ;;  %v6384_v60 = vpop.eup %6383  ;;  %v8573_v62 = vld [vmem:[#allocation51_spill] sm:$0xff]  ;;  %v8582_v56 = vld [vmem:[#allocation60_spill] sm:$0xff]  ;;  %v8583_v34 = vld [vmem:[#allocation61_spill] sm:$0xff] }
 0x571   :  { %6387 = vrcp.f32 %v2401_v11  ;;  %v6386_v18 = vpop.eup %6385  ;;  %v2414_v24 = vadd.f32 1.0, %v6384_v60  ;;  %v8581_v40 = vld [vmem:[#allocation59_spill] sm:$0xff]  ;;  %v8584_v11 = vld [vmem:[#allocation62_spill] sm:$0xff]  ;;  %v8586_v60 = vld [vmem:[#allocation64_spill] sm:$0xff] }
 0x572   :  { %6389 = vrcp.f32 %v2407_v43  ;;  %v8585_v43 = vld [vmem:[#allocation63_spill] sm:$0xff] }
 0x573   :  { %6391 = vrcp.f32 %v2414_v24  ;;  %v8591_v24 = vld [vmem:[#allocation69_spill] sm:$0xff] }
 0x57b   :  { %v6388_v28 = vpop.eup %6387 }
 0x57c   :  { %v6390_v45 = vpop.eup %6389  ;;  %v2418_v59 = vmul.f32 %v6388_v28, %v6386_v18  ;;  %v8587_v18 = vld [vmem:[#allocation65_spill] sm:$0xff]  ;;  %v8588_v28 = vld [vmem:[#allocation66_spill] sm:$0xff] }
 0x57d   :  { %v2417_v41 = vmul.f32 %v6390_v45, %v7473_v30  ;;  %v6392_v9 = vpop.eup %6391  ;;  %v8574_v30 = vld [vmem:[#allocation52_spill] sm:$0xff]  ;;  %v8589_v45 = vld [vmem:[#allocation67_spill] sm:$0xff] }
 0x57f   :  { %v7617_v7 = vadd.f32 %v2418_v59, %v2417_v41  ;;  %v8590_v59 = vld [vmem:[#allocation68_spill] sm:$0xff]  ;;  %v8592_v41 = vld [vmem:[#allocation70_spill] sm:$0xff] }
 0x581   :  { %6393 = vtanh.f32 %v7617_v7 }
 0x58b   :  { %v6394_v58 = vpop.eup %6393 }
 0x58c   :  { %v7620_v33 = vmul.f32 %v6394_v58, %v6392_v9  ;;  %v8593_v9 = vld [vmem:[#allocation71_spill] sm:$0xff]  ;;  %v8594_v58 = vld [vmem:[#allocation72_spill] sm:$0xff] }
 0x58e   :  { %2487 = vmatmul.mubr.f32.vlgmr.msra.gmra.mrb[16].mxu0 %v7620_v33  ;;  %2558 = vmatmul.mubr.f32.vlgmr.msra.gmra.mrb[16].mxu1 %v7620_v33 }
 0x58f   :  { %5523 = vmatpush1.bf16.msra.mxu0 %v8440_v50  ;;  %5555 = vmatpush1.bf16.msra.mxu1 %v8441_v25 }
 0x590   :  { %5525 = vmatprep.subr.bf16.mxu0 %v8442_v54  ;;  %5557 = vmatprep.subr.bf16.mxu1 %v8443_v5 }
 0x591   :  { %2628 = vmatprep.mubr.f32.mxu0 %v8374_v49  ;;  %2699 = vmatprep.mubr.f32.mxu1 %v8374_v49 }
 0x593   :  { %5527 = vmatpush1.bf16.msra.mxu0 %v8444_v10  ;;  %5559 = vmatpush1.bf16.msra.mxu1 %v8445_v44 }
 0x594   :  { %5529 = vmatprep.subr.bf16.mxu0 %v8446_v12  ;;  %5561 = vmatprep.subr.bf16.mxu1 %v8447_v17 }
 0x597   :  { %5531 = vmatpush1.bf16.msra.mxu0 %v8448_v22  ;;  %5563 = vmatpush1.bf16.msra.mxu1 %v8449_v57 }
 0x598   :  { %5533 = vmatprep.subr.bf16.mxu0 %v8450_v4  ;;  %5565 = vmatprep.subr.bf16.mxu1 %v8451_v51 }
 0x59b   :  { %5535 = vmatpush1.bf16.msra.mxu0 %v8452_v38  ;;  %5567 = vmatpush1.bf16.msra.mxu1 %v8453_v47 }
 0x59c   :  { %5537 = vmatprep.subr.bf16.mxu0 %v7168_v23  ;;  %5569 = vmatprep.subr.bf16.mxu1 %v8454_v48 }
 0x59f   :  { %5539 = vmatpush1.bf16.msra.mxu0 %v8455_v27  ;;  %5571 = vmatpush1.bf16.msra.mxu1 %v8456_v46 }
 0x5a0   :  { %5541 = vmatprep.subr.bf16.mxu0 %v7180_v6  ;;  %5573 = vmatprep.subr.bf16.mxu1 %v7182_v32 }
 0x5a3   :  { %5543 = vmatpush1.bf16.msra.mxu0 %v7187_v3  ;;  %5575 = vmatpush1.bf16.msra.mxu1 %v7189_v39 }
 0x5a4   :  { %5545 = vmatprep.subr.bf16.mxu0 %v7193_v19  ;;  %5577 = vmatprep.subr.bf16.mxu1 %v7195_v35 }
 0x5a7   :  { %5547 = vmatpush1.bf16.msra.mxu0 %v7199_v29  ;;  %5579 = vmatpush1.bf16.msra.mxu1 %v7201_v53 }
 0x5a8   :  { %5549 = vmatprep.subr.bf16.mxu0 %v8506_v14  ;;  %5581 = vmatprep.subr.bf16.mxu1 %v8507_v36 }
 0x5ab   :  { %5551 = vmatpush1.bf16.msra.mxu0 %v7211_v0  ;;  %5583 = vmatpush1.bf16.msra.mxu1 %v7213_v61 }
 0x5ac   :  { %5585 = vmatprep.subr.bf16.mxu0 %v6918_v13  ;;  %5617 = vmatprep.subr.bf16.mxu1 %v8508_v2 }
 0x5ae   :  { %2629 = vmatmul.mubr.f32.vlgmr.msra.gmra.mrb[16].mxu0 %v7606_v16  ;;  %2700 = vmatmul.mubr.f32.vlgmr.msra.gmra.mrb[16].mxu1 %v7606_v16  ;;  %v8579_v16 = vld [vmem:[#allocation57_spill] sm:$0xff] }
 0x5af   :  { %5587 = vmatpush1.bf16.msra.mxu0 %v6940_v63  ;;  %5619 = vmatpush1.bf16.msra.mxu1 %v8457_v31 }
 0x5b0   :  { %5589 = vmatprep.subr.bf16.mxu0 %v8573_v62  ;;  %5621 = vmatprep.subr.bf16.mxu1 %v8574_v30 }
 0x5b1   :  { %2864 = vmatprep.mubr.f32.mxu0 %v8374_v49  ;;  %2935 = vmatprep.mubr.f32.mxu1 %v8374_v49 }
 0x5b3   :  { %5591 = vmatpush1.bf16.msra.mxu0 %v8575_v15  ;;  %5623 = vmatpush1.bf16.msra.mxu1 %v8576_v37 }
 0x5b4   :  { %5593 = vmatprep.subr.bf16.mxu0 %v8577_v55  ;;  %5625 = vmatprep.subr.bf16.mxu1 %v8578_v26 }
 0x5b7   :  { %5595 = vmatpush1.bf16.msra.mxu0 %v8579_v16  ;;  %5627 = vmatpush1.bf16.msra.mxu1 %v8580_v52 }
 0x5b8   :  { %5597 = vmatprep.subr.bf16.mxu0 %v8581_v40  ;;  %5629 = vmatprep.subr.bf16.mxu1 %v8582_v56  ;;  %v8636_v56 = vld [vmem:[#allocation106_spill] sm:$0xff] }
 0x5bb   :  { %5599 = vmatpush1.bf16.msra.mxu0 %v8583_v34  ;;  %5631 = vmatpush1.bf16.msra.mxu1 %v8584_v11  ;;  %v8595_v11 = vld [vmem:[#allocation73_spill] sm:$0xff] }
 0x5bc   :  { %5601 = vmatprep.subr.bf16.mxu0 %v8585_v43  ;;  %5633 = vmatprep.subr.bf16.mxu1 %v8586_v60  ;;  %v8596_v43 = vld [vmem:[#allocation74_spill] sm:$0xff]  ;;  %v8597_v60 = vld [vmem:[#allocation75_spill] sm:$0xff] }
 0x5bf   :  { %5603 = vmatpush1.bf16.msra.mxu0 %v8587_v18  ;;  %5635 = vmatpush1.bf16.msra.mxu1 %v8588_v28  ;;  %v8598_v18 = vld [vmem:[#allocation76_spill] sm:$0xff]  ;;  %v8599_v28 = vld [vmem:[#allocation77_spill] sm:$0xff] }
 0x5c0   :  { %5605 = vmatprep.subr.bf16.mxu0 %v8589_v45  ;;  %5637 = vmatprep.subr.bf16.mxu1 %v8590_v59  ;;  %v8600_v45 = vld [vmem:[#allocation78_spill] sm:$0xff]  ;;  %v8601_v59 = vld [vmem:[#allocation16_spill] sm:$0xff] }
 0x5c3   :  { %5607 = vmatpush1.bf16.msra.mxu0 %v8591_v24  ;;  %5639 = vmatpush1.bf16.msra.mxu1 %v8592_v41  ;;  %v8602_v24 = vld [vmem:[#allocation21_spill] sm:$0xff] }
 0x5c4   :  { %5609 = vmatprep.subr.bf16.mxu0 %v8593_v9  ;;  %5641 = vmatprep.subr.bf16.mxu1 %v8594_v58  ;;  %v8603_v58 = vld [vmem:[#allocation17_spill] sm:$0xff] }
 0x5c5   :  { %v8617_v9 = vld [vmem:[#allocation29_spill] sm:$0xff] }
 0x5c6   :  { %v8635_v41 = vld [vmem:[#allocation81_spill] sm:$0xff] }
 0x5c7   :  { %5611 = vmatpush1.bf16.msra.mxu0 %v8595_v11  ;;  %5643 = vmatpush1.bf16.msra.mxu1 %v8596_v43  ;;  %v8604_v11 = vld [vmem:[#allocation22_spill] sm:$0xff] }
 0x5c8   :  { %5613 = vmatprep.subr.bf16.mxu0 %v8597_v60  ;;  %5645 = vmatprep.subr.bf16.mxu1 %v8598_v18  ;;  %v8605_v43 = vld [vmem:[#allocation18_spill] sm:$0xff]  ;;  %v8606_v60 = vld [vmem:[#allocation25_spill] sm:$0xff]  ;;  %v8616_v18 = vld [vmem:[#allocation35_spill] sm:$0xff] }
 0x5cb   :  { %5615 = vmatpush1.bf16.msra.mxu0 %v8599_v28  ;;  %5647 = vmatpush1.bf16.msra.mxu1 %v8600_v45  ;;  %v8607_v45 = vld [vmem:[#allocation19_spill] sm:$0xff]  ;;  %v8610_v28 = vld [vmem:[#allocation28_spill] sm:$0xff] }
 0x5cc   :  { %5649 = vmatprep.subr.bf16.mxu0 %v8601_v59  ;;  %5681 = vmatprep.subr.bf16.mxu1 %v8602_v24  ;;  %v8608_v59 = vld [vmem:[#allocation26_spill] sm:$0xff]  ;;  %v8609_v24 = vld [vmem:[#allocation20_spill] sm:$0xff] }
 0x5ce   :  { %2865 = vmatmul.mubr.f32.vlgmr.msra.gmra.mrb[18].mxu0 %v7620_v33  ;;  %2936 = vmatmul.mubr.f32.vlgmr.msra.gmra.mrb[18].mxu1 %v7620_v33  ;;  %v8611_v33 = vld [vmem:[#allocation23_spill] sm:$0xff] }
 0x5cf   :  { %5651 = vmatpush1.bf16.msra.mxu0 %v8603_v58  ;;  %5683 = vmatpush1.bf16.msra.mxu1 %v8604_v11  ;;  %v8612_v58 = vld [vmem:[#allocation30_spill] sm:$0xff]  ;;  %v8613_v11 = vld [vmem:[#allocation24_spill] sm:$0xff] }
 0x5d0   :  { %5653 = vmatprep.subr.bf16.mxu0 %v8605_v43  ;;  %5685 = vmatprep.subr.bf16.mxu1 %v8606_v60  ;;  %v8614_v43 = vld [vmem:[#allocation31_spill] sm:$0xff] }
 0x5d1   :  { %3034 = vmatprep.mubr.f32.mxu0 %v8374_v49  ;;  %3105 = vmatprep.mubr.f32.mxu1 %v8374_v49  ;;  %v8615_v60 = vld [vmem:[#allocation27_spill] sm:$0xff] }
 0x5d3   :  { %5655 = vmatpush1.bf16.msra.mxu0 %v8607_v45  ;;  %5687 = vmatpush1.bf16.msra.mxu1 %v8608_v59  ;;  %v8618_v45 = vld [vmem:[#allocation36_spill] sm:$0xff]  ;;  %v8619_v59 = vld [vmem:[#allocation33_spill] sm:$0xff] }
 0x5d4   :  { %5657 = vmatprep.subr.bf16.mxu0 %v8609_v24  ;;  %5689 = vmatprep.subr.bf16.mxu1 %v8610_v28  ;;  %v8620_v24 = vld [vmem:[#allocation39_spill] sm:$0xff]  ;;  %v8621_v28 = vld [vmem:[#allocation34_spill] sm:$0xff] }
 0x5d7   :  { %5659 = vmatpush1.bf16.msra.mxu0 %v8611_v33  ;;  %5691 = vmatpush1.bf16.msra.mxu1 %v8612_v58  ;;  %v8622_v33 = vld [vmem:[#allocation40_spill] sm:$0xff]  ;;  %v8623_v58 = vld [vmem:[#allocation37_spill] sm:$0xff] }
 0x5d8   :  { %5661 = vmatprep.subr.bf16.mxu0 %v8613_v11  ;;  %5693 = vmatprep.subr.bf16.mxu1 %v8614_v43  ;;  %v8624_v11 = vld [vmem:[#allocation43_spill] sm:$0xff]  ;;  %v8625_v43 = vld [vmem:[#allocation38_spill] sm:$0xff] }
 0x5db   :  { %5663 = vmatpush1.bf16.msra.mxu0 %v8615_v60  ;;  %5695 = vmatpush1.bf16.msra.mxu1 %v8616_v18  ;;  %v8626_v60 = vld [vmem:[#allocation44_spill] sm:$0xff]  ;;  %v8627_v18 = vld [vmem:[#allocation41_spill] sm:$0xff] }
 0x5dc   :  { %5665 = vmatprep.subr.bf16.mxu0 %v8617_v9  ;;  %5697 = vmatprep.subr.bf16.mxu1 %v8618_v45  ;;  %v8628_v9 = vld [vmem:[#allocation46_spill] sm:$0xff] }
 0x5dd   :  { %v8629_v45 = vld [vmem:[#allocation42_spill] sm:$0xff] }
 0x5df   :  { %5667 = vmatpush1.bf16.msra.mxu0 %v8619_v59  ;;  %5699 = vmatpush1.bf16.msra.mxu1 %v8620_v24  ;;  %v8630_v59 = vld [vmem:[#allocation47_spill] sm:$0xff]  ;;  %v8631_v24 = vld [vmem:[#allocation45_spill] sm:$0xff] }
 0x5e0   :  { %5669 = vmatprep.subr.bf16.mxu0 %v8621_v28  ;;  %5701 = vmatprep.subr.bf16.mxu1 %v8622_v33  ;;  %v8632_v28 = vld [vmem:[#allocation48_spill] sm:$0xff]  ;;  %v8633_v33 = vld [vmem:[#allocation79_spill] sm:$0xff] }
 0x5e3   :  { %5671 = vmatpush1.bf16.msra.mxu0 %v8623_v58  ;;  %5703 = vmatpush1.bf16.msra.mxu1 %v8624_v11  ;;  %v8634_v58 = vld [vmem:[#allocation80_spill] sm:$0xff] }
 0x5e4   :  { %5673 = vmatprep.subr.bf16.mxu0 %v8625_v43  ;;  %5705 = vmatprep.subr.bf16.mxu1 %v8626_v60 }
 0x5e7   :  { %5675 = vmatpush1.bf16.msra.mxu0 %v8627_v18  ;;  %5707 = vmatpush1.bf16.msra.mxu1 %v8628_v9 }
 0x5e8   :  { %5677 = vmatprep.subr.bf16.mxu0 %v8629_v45  ;;  %5709 = vmatprep.subr.bf16.mxu1 %v8630_v59 }
 0x5eb   :  { %5679 = vmatpush1.bf16.msra.mxu0 %v8631_v24  ;;  %5711 = vmatpush1.bf16.msra.mxu1 %v8632_v28  ;;  %v8637_v24 = vld [vmem:[#allocation85_spill] sm:$0xff] }
 0x5ec   :  { %5713 = vmatprep.subr.bf16.mxu0 %v8633_v33  ;;  %5745 = vmatprep.subr.bf16.mxu1 %v8634_v58  ;;  %v8638_v58 = vld [vmem:[#allocation82_spill] sm:$0xff] }
 0x681   :  { %v2630_v11 = vpop.f32.mrb[16].mxu0  ;;  %v2701_v43 = vpop.f32.mrb[16].mxu1 }
 0x682   :  { %v6204_v60 = vadd.f32 %v2630_v11, %v8635_v41  ;;  %v2632_v34 = vpop.f32.mrb[17].mxu0  ;;  %v2703_v18 = vpop.f32.mrb[17].mxu1  ;;  %v6206_v40 = vadd.f32 %v2701_v43, %v8638_v58  ;;  %v8639_v43 = vld [vmem:[#allocation32_spill] sm:$0xff] }
 0x683   :  { %v6205_v9 = vadd.f32 %v2632_v34, %v8636_v56  ;;  %v6207_v28 = vadd.f32 %v2703_v18, %v8637_v24  ;;  %v2743_v18 = vld [vmem:[%s2742_s17] ss:$8 sm:$0xf] }
 0x684   :  { %v4643_v45 = vmul.f32 -1.442695, %v6204_v60  ;;  %v8640_v24 = vld [vmem:[#allocation83_spill] sm:$0xff]  ;;  %v2770_v30 = vrot.slane %v2743_v18, %v6856_v1 }
 0x685   :  { %v4644_v59 = vmul.f32 -1.442695, %v6205_v9  ;;  %v4645_v33 = vmul.f32 -1.442695, %v6207_v28  ;;  %v2762_v56 = vrot.slane %v2743_v18, %v8640_v24 }
 0x686   :  { %6395 = vpow2.f32 %v4643_v45  ;;  %v2753_v28 = vld [vmem:[%s2752_s19] ss:$8 sm:$0xf] }
 0x687   :  { %6397 = vpow2.f32 %v4644_v59  ;;  %v2758_v59 = vrot.slane %v2743_v18, %v8639_v43  ;;  %v2779_v9 = vrot.slane %v2753_v28, %v8639_v43 }
 0x688   :  { %6399 = vpow2.f32 %v4645_v33  ;;  %v2783_v33 = vrot.slane %v2753_v28, %v8640_v24  ;;  %v2791_v24 = vrot.slane %v2753_v28, %v6856_v1 }
 0x689   :  { %6401 = vtanh.f32 %v6206_v40 }
 0x68a   :  { %v2797_v16 = vsel %vm151_vm0, %v2762_v56, %v2783_v33  ;;  %v2799_v56 = vsel %vm151_vm0, %v2770_v30, %v2791_v24 }
 0x690   :  { %v6396_v11 = vpop.eup %6395 }
 0x691   :  { %v6398_v41 = vpop.eup %6397  ;;  %v2713_v34 = vadd.f32 1.0, %v6396_v11 }
 0x692   :  { %v2719_v60 = vadd.f32 1.0, %v6398_v41  ;;  %v6400_v45 = vpop.eup %6399 }
 0x693   :  { %6403 = vrcp.f32 %v2713_v34  ;;  %v6402_v58 = vpop.eup %6401  ;;  %v2726_v52 = vadd.f32 1.0, %v6400_v45 }
 0x694   :  { %6405 = vrcp.f32 %v2719_v60  ;;  %v2796_v60 = vsel %vm151_vm0, %v2758_v59, %v2779_v9  ;;  %v2766_v59 = vrot.slane %v2743_v18, %v6898_v42  ;;  %v2787_v9 = vrot.slane %v2753_v28, %v6898_v42 }
 0x695   :  { %6407 = vrcp.f32 %v2726_v52 }
 0x696   :  { %v2798_v52 = vsel %vm151_vm0, %v2766_v59, %v2787_v9 }
 0x69d   :  { %v6404_v40 = vpop.eup %6403 }
 0x69e   :  { %v6406_v41 = vpop.eup %6405  ;;  %v2730_v11 = vmul.f32 %v6404_v40, %v6402_v58 }
 0x69f   :  { %v2729_v34 = vmul.f32 %v6406_v41, %v7597_v8  ;;  %v6408_v33 = vpop.eup %6407 }
 0x6a1   :  { %v7741_v26 = vadd.f32 %v2730_v11, %v2729_v34  ;;  %v2866_v55 = vpop.f32.mrb[18].mxu0  ;;  %v2937_v37 = vpop.f32.mrb[18].mxu1 }
 0x6a2   :  { %v2942_v43 = vadd.f32 %v2866_v55, %v2796_v60  ;;  %v2868_v15 = vpop.f32.mrb[19].mxu0  ;;  %v2939_v62 = vpop.f32.mrb[19].mxu1  ;;  %v2944_v11 = vadd.f32 %v2937_v37, %v2798_v52 }
 0x6a3   :  { %v2943_v58 = vadd.f32 %v2868_v15, %v2797_v16  ;;  %6409 = vtanh.f32 %v7741_v26  ;;  %v2945_v55 = vadd.f32 %v2939_v62, %v2799_v56 }
 0x6a4   :  { %v4652_v8 = vmul.f32 -1.442695, %v2942_v43 }
 0x6a5   :  { %v4653_v45 = vmul.f32 -1.442695, %v2943_v58  ;;  %v4654_v41 = vmul.f32 -1.442695, %v2945_v55 }
 0x6a6   :  { %6411 = vpow2.f32 %v4652_v8 }
 0x6a7   :  { %6413 = vpow2.f32 %v4653_v45 }
 0x6a8   :  { %6415 = vpow2.f32 %v4654_v41  ;;  %v8645_v41 = vld [vmem:[#allocation55_spill] sm:$0xff] }
 0x6a9   :  { %6417 = vtanh.f32 %v2944_v11  ;;  %v8646_v11 = vld [vmem:[#allocation56_spill] sm:$0xff] }
 0x6ad   :  { %v6410_v40 = vpop.eup %6409 }
 0x6ae   :  { %v7750_v15 = vmul.f32 %v6410_v40, %v6408_v33  ;;  %v8643_v33 = vld [vmem:[#allocation53_spill] sm:$0xff]  ;;  %v8644_v40 = vld [vmem:[#allocation54_spill] sm:$0xff] }
 0x6b0   :  { %v6412_v16 = vpop.eup %6411  ;;  %v4388_v43 = vrot.slane %v7750_v15, 4  ;;  %v4419_v30 = vrot.slane %v7750_v15, 5 }
 0x6b1   :  { %v6414_v24 = vpop.eup %6413  ;;  %v2949_v18 = vadd.f32 1.0, %v6412_v16  ;;  %v8648_v16 = vld [vmem:[#allocation58_spill] sm:$0xff] }
 0x6b2   :  { %v2955_v28 = vadd.f32 1.0, %v6414_v24  ;;  %v7755_v62 = vsel %vm4404_vm3, %v7611_v20, %v4388_v43  ;;  %v7758_v34 = vsel %vm4404_vm3, %v7614_v21, %v4419_v30  ;;  %v6416_v37 = vpop.eup %6415  ;;  %v8641_v21 = vld [vmem:[#allocation51_spill] sm:$0xff]  ;;  %v8650_v30 = vld [vmem:[#allocation60_spill] sm:$0xff]  ;;  %v8651_v24 = vld [vmem:[#allocation61_spill] sm:$0xff] }
 0x6b3   :  { %6419 = vrcp.f32 %v2949_v18  ;;  %v6418_v60 = vpop.eup %6417  ;;  %v2962_v56 = vadd.f32 1.0, %v6416_v37  ;;  %v8649_v43 = vld [vmem:[#allocation59_spill] sm:$0xff]  ;;  %v8652_v18 = vld [vmem:[#allocation62_spill] sm:$0xff]  ;;  %v8654_v37 = vld [vmem:[#allocation64_spill] sm:$0xff] }
 0x6b4   :  { %6421 = vrcp.f32 %v2955_v28  ;;  %v8653_v28 = vld [vmem:[#allocation63_spill] sm:$0xff] }
 0x6b5   :  { %6423 = vrcp.f32 %v2962_v56  ;;  %v8659_v56 = vld [vmem:[#allocation69_spill] sm:$0xff] }
 0x6bd   :  { %v6420_v58 = vpop.eup %6419 }
 0x6be   :  { %v6422_v8 = vpop.eup %6421  ;;  %v2966_v45 = vmul.f32 %v6420_v58, %v6418_v60  ;;  %v8655_v60 = vld [vmem:[#allocation65_spill] sm:$0xff]  ;;  %v8656_v58 = vld [vmem:[#allocation66_spill] sm:$0xff] }
 0x6bf   :  { %v2965_v59 = vmul.f32 %v6422_v8, %v7617_v7  ;;  %v6424_v20 = vpop.eup %6423  ;;  %v8642_v7 = vld [vmem:[#allocation52_spill] sm:$0xff]  ;;  %v8657_v8 = vld [vmem:[#allocation67_spill] sm:$0xff] }
 0x6c1   :  { %v7761_v9 = vadd.f32 %v2966_v45, %v2965_v59  ;;  %v8658_v45 = vld [vmem:[#allocation68_spill] sm:$0xff]  ;;  %v8660_v59 = vld [vmem:[#allocation70_spill] sm:$0xff] }
 0x6c3   :  { %6425 = vtanh.f32 %v7761_v9 }
 0x6cd   :  { %v6426_v55 = vpop.eup %6425 }
 0x6ce   :  { %v7764_v52 = vmul.f32 %v6426_v55, %v6424_v20  ;;  %v8661_v20 = vld [vmem:[#allocation71_spill] sm:$0xff]  ;;  %v8662_v55 = vld [vmem:[#allocation72_spill] sm:$0xff] }
 0x6d0   :  { %3035 = vmatmul.mubr.f32.vlgmr.msra.gmra.mrb[20].mxu0 %v7764_v52  ;;  %3106 = vmatmul.mubr.f32.vlgmr.msra.gmra.mrb[20].mxu1 %v7764_v52 }
 0x6d1   :  { %5715 = vmatpush1.bf16.msra.mxu0 %v8440_v50  ;;  %5747 = vmatpush1.bf16.msra.mxu1 %v8441_v25 }
 0x6d2   :  { %5717 = vmatprep.subr.bf16.mxu0 %v8442_v54  ;;  %5749 = vmatprep.subr.bf16.mxu1 %v8443_v5 }
 0x6d3   :  { %3176 = vmatprep.mubr.f32.mxu0 %v8374_v49  ;;  %3247 = vmatprep.mubr.f32.mxu1 %v8374_v49 }
 0x6d5   :  { %5719 = vmatpush1.bf16.msra.mxu0 %v8444_v10  ;;  %5751 = vmatpush1.bf16.msra.mxu1 %v8445_v44 }
 0x6d6   :  { %5721 = vmatprep.subr.bf16.mxu0 %v8446_v12  ;;  %5753 = vmatprep.subr.bf16.mxu1 %v8447_v17 }
 0x6d9   :  { %5723 = vmatpush1.bf16.msra.mxu0 %v8448_v22  ;;  %5755 = vmatpush1.bf16.msra.mxu1 %v8449_v57 }
 0x6da   :  { %5725 = vmatprep.subr.bf16.mxu0 %v8450_v4  ;;  %5757 = vmatprep.subr.bf16.mxu1 %v8451_v51 }
 0x6dd   :  { %5727 = vmatpush1.bf16.msra.mxu0 %v8452_v38  ;;  %5759 = vmatpush1.bf16.msra.mxu1 %v8453_v47 }
 0x6de   :  { %5729 = vmatprep.subr.bf16.mxu0 %v7168_v23  ;;  %5761 = vmatprep.subr.bf16.mxu1 %v8454_v48 }
 0x6e1   :  { %5731 = vmatpush1.bf16.msra.mxu0 %v8455_v27  ;;  %5763 = vmatpush1.bf16.msra.mxu1 %v8456_v46 }
 0x6e2   :  { %5733 = vmatprep.subr.bf16.mxu0 %v7180_v6  ;;  %5765 = vmatprep.subr.bf16.mxu1 %v7182_v32 }
 0x6e5   :  { %5735 = vmatpush1.bf16.msra.mxu0 %v7187_v3  ;;  %5767 = vmatpush1.bf16.msra.mxu1 %v7189_v39 }
 0x6e6   :  { %5737 = vmatprep.subr.bf16.mxu0 %v7193_v19  ;;  %5769 = vmatprep.subr.bf16.mxu1 %v7195_v35 }
 0x6e9   :  { %5739 = vmatpush1.bf16.msra.mxu0 %v7199_v29  ;;  %5771 = vmatpush1.bf16.msra.mxu1 %v7201_v53 }
 0x6ea   :  { %5741 = vmatprep.subr.bf16.mxu0 %v8506_v14  ;;  %5773 = vmatprep.subr.bf16.mxu1 %v8507_v36 }
 0x6ed   :  { %5743 = vmatpush1.bf16.msra.mxu0 %v7211_v0  ;;  %5775 = vmatpush1.bf16.msra.mxu1 %v7213_v61 }
 0x6ee   :  { %5777 = vmatprep.subr.bf16.mxu0 %v6918_v13  ;;  %5809 = vmatprep.subr.bf16.mxu1 %v8508_v2 }
 0x6f0   :  { %3177 = vmatmul.mubr.f32.vlgmr.msra.gmra.mrb[20].mxu0 %v7750_v15  ;;  %3248 = vmatmul.mubr.f32.vlgmr.msra.gmra.mrb[20].mxu1 %v7750_v15  ;;  %v8647_v15 = vld [vmem:[#allocation57_spill] sm:$0xff] }
 0x6f1   :  { %5779 = vmatpush1.bf16.msra.mxu0 %v6940_v63  ;;  %5811 = vmatpush1.bf16.msra.mxu1 %v8457_v31 }
 0x6f2   :  { %5781 = vmatprep.subr.bf16.mxu0 %v8641_v21  ;;  %5813 = vmatprep.subr.bf16.mxu1 %v8642_v7 }
 0x6f3   :  { %3412 = vmatprep.mubr.f32.mxu0 %v8374_v49  ;;  %3483 = vmatprep.mubr.f32.mxu1 %v8374_v49 }
 0x6f5   :  { %5783 = vmatpush1.bf16.msra.mxu0 %v8643_v33  ;;  %5815 = vmatpush1.bf16.msra.mxu1 %v8644_v40 }
 0x6f6   :  { %5785 = vmatprep.subr.bf16.mxu0 %v8645_v41  ;;  %5817 = vmatprep.subr.bf16.mxu1 %v8646_v11 }
 0x6f9   :  { %5787 = vmatpush1.bf16.msra.mxu0 %v8647_v15  ;;  %5819 = vmatpush1.bf16.msra.mxu1 %v8648_v16 }
 0x6fa   :  { %5789 = vmatprep.subr.bf16.mxu0 %v8649_v43  ;;  %5821 = vmatprep.subr.bf16.mxu1 %v8650_v30  ;;  %v8704_v30 = vld [vmem:[#allocation106_spill] sm:$0xff] }
 0x6fd   :  { %5791 = vmatpush1.bf16.msra.mxu0 %v8651_v24  ;;  %5823 = vmatpush1.bf16.msra.mxu1 %v8652_v18  ;;  %v8663_v18 = vld [vmem:[#allocation73_spill] sm:$0xff] }
 0x6fe   :  { %5793 = vmatprep.subr.bf16.mxu0 %v8653_v28  ;;  %5825 = vmatprep.subr.bf16.mxu1 %v8654_v37  ;;  %v8664_v28 = vld [vmem:[#allocation74_spill] sm:$0xff]  ;;  %v8665_v37 = vld [vmem:[#allocation75_spill] sm:$0xff] }
 0x701   :  { %5795 = vmatpush1.bf16.msra.mxu0 %v8655_v60  ;;  %5827 = vmatpush1.bf16.msra.mxu1 %v8656_v58  ;;  %v8666_v60 = vld [vmem:[#allocation76_spill] sm:$0xff]  ;;  %v8667_v58 = vld [vmem:[#allocation77_spill] sm:$0xff] }
 0x702   :  { %5797 = vmatprep.subr.bf16.mxu0 %v8657_v8  ;;  %5829 = vmatprep.subr.bf16.mxu1 %v8658_v45  ;;  %v8668_v8 = vld [vmem:[#allocation78_spill] sm:$0xff]  ;;  %v8669_v45 = vld [vmem:[#allocation16_spill] sm:$0xff] }
 0x705   :  { %5799 = vmatpush1.bf16.msra.mxu0 %v8659_v56  ;;  %5831 = vmatpush1.bf16.msra.mxu1 %v8660_v59  ;;  %v8670_v56 = vld [vmem:[#allocation21_spill] sm:$0xff] }
 0x706   :  { %5801 = vmatprep.subr.bf16.mxu0 %v8661_v20  ;;  %5833 = vmatprep.subr.bf16.mxu1 %v8662_v55  ;;  %v8671_v55 = vld [vmem:[#allocation17_spill] sm:$0xff] }
 0x707   :  { %v8685_v20 = vld [vmem:[#allocation29_spill] sm:$0xff] }
 0x708   :  { %v8703_v59 = vld [vmem:[#allocation81_spill] sm:$0xff] }
 0x709   :  { %5803 = vmatpush1.bf16.msra.mxu0 %v8663_v18  ;;  %5835 = vmatpush1.bf16.msra.mxu1 %v8664_v28  ;;  %v8672_v18 = vld [vmem:[#allocation22_spill] sm:$0xff] }
 0x70a   :  { %5805 = vmatprep.subr.bf16.mxu0 %v8665_v37  ;;  %5837 = vmatprep.subr.bf16.mxu1 %v8666_v60  ;;  %v8673_v28 = vld [vmem:[#allocation18_spill] sm:$0xff]  ;;  %v8674_v37 = vld [vmem:[#allocation25_spill] sm:$0xff]  ;;  %v8684_v60 = vld [vmem:[#allocation35_spill] sm:$0xff] }
 0x70d   :  { %5807 = vmatpush1.bf16.msra.mxu0 %v8667_v58  ;;  %5839 = vmatpush1.bf16.msra.mxu1 %v8668_v8  ;;  %v8675_v8 = vld [vmem:[#allocation19_spill] sm:$0xff]  ;;  %v8678_v58 = vld [vmem:[#allocation28_spill] sm:$0xff] }
 0x70e   :  { %5841 = vmatprep.subr.bf16.mxu0 %v8669_v45  ;;  %5873 = vmatprep.subr.bf16.mxu1 %v8670_v56  ;;  %v8676_v45 = vld [vmem:[#allocation26_spill] sm:$0xff]  ;;  %v8677_v56 = vld [vmem:[#allocation20_spill] sm:$0xff] }
 0x710   :  { %3413 = vmatmul.mubr.f32.vlgmr.msra.gmra.mrb[22].mxu0 %v7764_v52  ;;  %3484 = vmatmul.mubr.f32.vlgmr.msra.gmra.mrb[22].mxu1 %v7764_v52  ;;  %v8679_v52 = vld [vmem:[#allocation23_spill] sm:$0xff] }
 0x711   :  { %5843 = vmatpush1.bf16.msra.mxu0 %v8671_v55  ;;  %5875 = vmatpush1.bf16.msra.mxu1 %v8672_v18  ;;  %v8680_v55 = vld [vmem:[#allocation30_spill] sm:$0xff]  ;;  %v8681_v18 = vld [vmem:[#allocation24_spill] sm:$0xff] }
 0x712   :  { %5845 = vmatprep.subr.bf16.mxu0 %v8673_v28  ;;  %5877 = vmatprep.subr.bf16.mxu1 %v8674_v37  ;;  %v8682_v28 = vld [vmem:[#allocation31_spill] sm:$0xff] }
 0x713   :  { %3582 = vmatprep.mubr.f32.mxu0 %v8374_v49  ;;  %3653 = vmatprep.mubr.f32.mxu1 %v8374_v49  ;;  %v8683_v37 = vld [vmem:[#allocation27_spill] sm:$0xff] }
 0x715   :  { %5847 = vmatpush1.bf16.msra.mxu0 %v8675_v8  ;;  %5879 = vmatpush1.bf16.msra.mxu1 %v8676_v45  ;;  %v8686_v8 = vld [vmem:[#allocation36_spill] sm:$0xff]  ;;  %v8687_v45 = vld [vmem:[#allocation33_spill] sm:$0xff] }
 0x716   :  { %5849 = vmatprep.subr.bf16.mxu0 %v8677_v56  ;;  %5881 = vmatprep.subr.bf16.mxu1 %v8678_v58  ;;  %v8688_v56 = vld [vmem:[#allocation39_spill] sm:$0xff]  ;;  %v8689_v58 = vld [vmem:[#allocation34_spill] sm:$0xff] }
 0x719   :  { %5851 = vmatpush1.bf16.msra.mxu0 %v8679_v52  ;;  %5883 = vmatpush1.bf16.msra.mxu1 %v8680_v55  ;;  %v8690_v52 = vld [vmem:[#allocation40_spill] sm:$0xff]  ;;  %v8691_v55 = vld [vmem:[#allocation37_spill] sm:$0xff] }
 0x71a   :  { %5853 = vmatprep.subr.bf16.mxu0 %v8681_v18  ;;  %5885 = vmatprep.subr.bf16.mxu1 %v8682_v28  ;;  %v8692_v18 = vld [vmem:[#allocation43_spill] sm:$0xff]  ;;  %v8693_v28 = vld [vmem:[#allocation38_spill] sm:$0xff] }
 0x71d   :  { %5855 = vmatpush1.bf16.msra.mxu0 %v8683_v37  ;;  %5887 = vmatpush1.bf16.msra.mxu1 %v8684_v60  ;;  %v8694_v37 = vld [vmem:[#allocation44_spill] sm:$0xff]  ;;  %v8695_v60 = vld [vmem:[#allocation41_spill] sm:$0xff] }
 0x71e   :  { %5857 = vmatprep.subr.bf16.mxu0 %v8685_v20  ;;  %5889 = vmatprep.subr.bf16.mxu1 %v8686_v8  ;;  %v8696_v20 = vld [vmem:[#allocation46_spill] sm:$0xff] }
 0x71f   :  { %v8697_v8 = vld [vmem:[#allocation42_spill] sm:$0xff] }
 0x721   :  { %5859 = vmatpush1.bf16.msra.mxu0 %v8687_v45  ;;  %5891 = vmatpush1.bf16.msra.mxu1 %v8688_v56  ;;  %v8698_v45 = vld [vmem:[#allocation47_spill] sm:$0xff]  ;;  %v8699_v56 = vld [vmem:[#allocation45_spill] sm:$0xff] }
 0x722   :  { %5861 = vmatprep.subr.bf16.mxu0 %v8689_v58  ;;  %5893 = vmatprep.subr.bf16.mxu1 %v8690_v52  ;;  %v8700_v58 = vld [vmem:[#allocation48_spill] sm:$0xff]  ;;  %v8701_v52 = vld [vmem:[#allocation79_spill] sm:$0xff] }
 0x725   :  { %5863 = vmatpush1.bf16.msra.mxu0 %v8691_v55  ;;  %5895 = vmatpush1.bf16.msra.mxu1 %v8692_v18  ;;  %v8702_v55 = vld [vmem:[#allocation80_spill] sm:$0xff] }
 0x726   :  { %5865 = vmatprep.subr.bf16.mxu0 %v8693_v28  ;;  %5897 = vmatprep.subr.bf16.mxu1 %v8694_v37 }
 0x729   :  { %5867 = vmatpush1.bf16.msra.mxu0 %v8695_v60  ;;  %5899 = vmatpush1.bf16.msra.mxu1 %v8696_v20 }
 0x72a   :  { %5869 = vmatprep.subr.bf16.mxu0 %v8697_v8  ;;  %5901 = vmatprep.subr.bf16.mxu1 %v8698_v45 }
 0x72d   :  { %5871 = vmatpush1.bf16.msra.mxu0 %v8699_v56  ;;  %5903 = vmatpush1.bf16.msra.mxu1 %v8700_v58  ;;  %v8705_v56 = vld [vmem:[#allocation85_spill] sm:$0xff] }
 0x72e   :  { %5905 = vmatprep.subr.bf16.mxu0 %v8701_v52  ;;  %5937 = vmatprep.subr.bf16.mxu1 %v8702_v55  ;;  %v8706_v55 = vld [vmem:[#allocation82_spill] sm:$0xff] }
 0x7c3   :  { %v3178_v18 = vpop.f32.mrb[20].mxu0  ;;  %v3249_v28 = vpop.f32.mrb[20].mxu1 }
 0x7c4   :  { %v6208_v37 = vadd.f32 %v3178_v18, %v8703_v59  ;;  %v3180_v24 = vpop.f32.mrb[21].mxu0  ;;  %v3251_v60 = vpop.f32.mrb[21].mxu1  ;;  %v6210_v43 = vadd.f32 %v3249_v28, %v8706_v55  ;;  %v8707_v28 = vld [vmem:[#allocation32_spill] sm:$0xff] }
 0x7c5   :  { %v6209_v20 = vadd.f32 %v3180_v24, %v8704_v30  ;;  %v6211_v58 = vadd.f32 %v3251_v60, %v8705_v56  ;;  %v3291_v60 = vld [vmem:[%s3290_s26] ss:$8 sm:$0xf] }
 0x7c6   :  { %v4655_v8 = vmul.f32 -1.442695, %v6208_v37  ;;  %v8708_v56 = vld [vmem:[#allocation83_spill] sm:$0xff]  ;;  %v3318_v7 = vrot.slane %v3291_v60, %v6856_v1 }
 0x7c7   :  { %v4656_v45 = vmul.f32 -1.442695, %v6209_v20  ;;  %v4657_v52 = vmul.f32 -1.442695, %v6211_v58  ;;  %v3310_v30 = vrot.slane %v3291_v60, %v8708_v56 }
 0x7c8   :  { %6427 = vpow2.f32 %v4655_v8  ;;  %v3301_v58 = vld [vmem:[%s3300_s27] ss:$8 sm:$0xf] }
 0x7c9   :  { %6429 = vpow2.f32 %v4656_v45  ;;  %v3306_v45 = vrot.slane %v3291_v60, %v8707_v28  ;;  %v3327_v20 = vrot.slane %v3301_v58, %v8707_v28 }
 0x7ca   :  { %6431 = vpow2.f32 %v4657_v52  ;;  %v3331_v52 = vrot.slane %v3301_v58, %v8708_v56  ;;  %v3339_v56 = vrot.slane %v3301_v58, %v6856_v1 }
 0x7cb   :  { %6433 = vtanh.f32 %v6210_v43 }
 0x7cc   :  { %v3345_v15 = vsel %vm151_vm0, %v3310_v30, %v3331_v52  ;;  %v3347_v30 = vsel %vm151_vm0, %v3318_v7, %v3339_v56 }
 0x7d2   :  { %v6428_v18 = vpop.eup %6427 }
 0x7d3   :  { %v6430_v59 = vpop.eup %6429  ;;  %v3261_v24 = vadd.f32 1.0, %v6428_v18 }
 0x7d4   :  { %v3267_v37 = vadd.f32 1.0, %v6430_v59  ;;  %v6432_v8 = vpop.eup %6431 }
 0x7d5   :  { %6435 = vrcp.f32 %v3261_v24  ;;  %v6434_v55 = vpop.eup %6433  ;;  %v3274_v16 = vadd.f32 1.0, %v6432_v8 }
 0x7d6   :  { %6437 = vrcp.f32 %v3267_v37  ;;  %v3344_v37 = vsel %vm151_vm0, %v3306_v45, %v3327_v20  ;;  %v3314_v45 = vrot.slane %v3291_v60, %v6898_v42  ;;  %v3335_v20 = vrot.slane %v3301_v58, %v6898_v42 }
 0x7d7   :  { %6439 = vrcp.f32 %v3274_v16 }
 0x7d8   :  { %v3346_v16 = vsel %vm151_vm0, %v3314_v45, %v3335_v20 }
 0x7df   :  { %v6436_v43 = vpop.eup %6435 }
 0x7e0   :  { %v6438_v59 = vpop.eup %6437  ;;  %v3278_v18 = vmul.f32 %v6436_v43, %v6434_v55 }
 0x7e1   :  { %v3277_v24 = vmul.f32 %v6438_v59, %v7741_v26  ;;  %v6440_v52 = vpop.eup %6439 }
 0x7e3   :  { %v7885_v11 = vadd.f32 %v3278_v18, %v3277_v24  ;;  %v3414_v41 = vpop.f32.mrb[22].mxu0  ;;  %v3485_v40 = vpop.f32.mrb[22].mxu1 }
 0x7e4   :  { %v3490_v28 = vadd.f32 %v3414_v41, %v3344_v37  ;;  %v3416_v33 = vpop.f32.mrb[23].mxu0  ;;  %v3487_v21 = vpop.f32.mrb[23].mxu1  ;;  %v3492_v18 = vadd.f32 %v3485_v40, %v3346_v16 }
 0x7e5   :  { %v3491_v55 = vadd.f32 %v3416_v33, %v3345_v15  ;;  %6441 = vtanh.f32 %v7885_v11  ;;  %v3493_v41 = vadd.f32 %v3487_v21, %v3347_v30 }
 0x7e6   :  { %v4664_v26 = vmul.f32 -1.442695, %v3490_v28 }
 0x7e7   :  { %v4665_v8 = vmul.f32 -1.442695, %v3491_v55  ;;  %v4666_v59 = vmul.f32 -1.442695, %v3493_v41 }
 0x7e8   :  { %6443 = vpow2.f32 %v4664_v26 }
 0x7e9   :  { %6445 = vpow2.f32 %v4665_v8 }
 0x7ea   :  { %6447 = vpow2.f32 %v4666_v59  ;;  %v8715_v59 = vld [vmem:[#allocation57_spill] sm:$0xff] }
 0x7eb   :  { %6449 = vtanh.f32 %v3492_v18  ;;  %v8718_v18 = vld [vmem:[#allocation60_spill] sm:$0xff] }
 0x7ef   :  { %v6442_v43 = vpop.eup %6441 }
 0x7f0   :  { %v7894_v33 = vmul.f32 %v6442_v43, %v6440_v52  ;;  %v8711_v52 = vld [vmem:[#allocation53_spill] sm:$0xff]  ;;  %v8714_v43 = vld [vmem:[#allocation56_spill] sm:$0xff] }
 0x7f2   :  { %v6444_v15 = vpop.eup %6443  ;;  %v4391_v28 = vrot.slane %v7894_v33, 3  ;;  %v4421_v7 = vrot.slane %v7894_v33, 4 }
 0x7f3   :  { %v6446_v56 = vpop.eup %6445  ;;  %v3497_v60 = vadd.f32 1.0, %v6444_v15  ;;  %v8720_v15 = vld [vmem:[#allocation62_spill] sm:$0xff] }
 0x7f4   :  { %v3503_v58 = vadd.f32 1.0, %v6446_v56  ;;  %v7899_v21 = vsel %vm4406_vm4, %v7755_v62, %v4391_v28  ;;  %v7902_v24 = vsel %vm4406_vm4, %v7758_v34, %v4421_v7  ;;  %v6448_v40 = vpop.eup %6447  ;;  %v8709_v34 = vld [vmem:[#allocation51_spill] sm:$0xff]  ;;  %v8722_v7 = vld [vmem:[#allocation64_spill] sm:$0xff]  ;;  %v8723_v56 = vld [vmem:[#allocation65_spill] sm:$0xff] }
 0x7f5   :  { %6451 = vrcp.f32 %v3497_v60  ;;  %v6450_v37 = vpop.eup %6449  ;;  %v3510_v30 = vadd.f32 1.0, %v6448_v40  ;;  %v8721_v28 = vld [vmem:[#allocation63_spill] sm:$0xff]  ;;  %v8724_v60 = vld [vmem:[#allocation66_spill] sm:$0xff]  ;;  %v8726_v40 = vld [vmem:[#allocation68_spill] sm:$0xff] }
 0x7f6   :  { %6453 = vrcp.f32 %v3503_v58  ;;  %v8725_v58 = vld [vmem:[#allocation67_spill] sm:$0xff] }
 0x7f7   :  { %6455 = vrcp.f32 %v3510_v30  ;;  %v8731_v30 = vld [vmem:[#allocation73_spill] sm:$0xff] }
 0x7ff   :  { %v6452_v55 = vpop.eup %6451 }
 0x800   :  { %v6454_v26 = vpop.eup %6453  ;;  %v3514_v8 = vmul.f32 %v6452_v55, %v6450_v37  ;;  %v8727_v37 = vld [vmem:[#allocation69_spill] sm:$0xff]  ;;  %v8728_v55 = vld [vmem:[#allocation70_spill] sm:$0xff] }
 0x801   :  { %v3513_v45 = vmul.f32 %v6454_v26, %v7761_v9  ;;  %v6456_v62 = vpop.eup %6455  ;;  %v8710_v9 = vld [vmem:[#allocation52_spill] sm:$0xff]  ;;  %v8729_v26 = vld [vmem:[#allocation71_spill] sm:$0xff] }
 0x803   :  { %v7905_v20 = vadd.f32 %v3514_v8, %v3513_v45  ;;  %v8730_v8 = vld [vmem:[#allocation72_spill] sm:$0xff]  ;;  %v8732_v45 = vld [vmem:[#allocation74_spill] sm:$0xff] }
 0x805   :  { %6457 = vtanh.f32 %v7905_v20 }
 0x80f   :  { %v6458_v41 = vpop.eup %6457 }
 0x810   :  { %v7908_v16 = vmul.f32 %v6458_v41, %v6456_v62  ;;  %v8733_v62 = vld [vmem:[#allocation75_spill] sm:$0xff]  ;;  %v8734_v41 = vld [vmem:[#allocation76_spill] sm:$0xff] }
 0x812   :  { %3583 = vmatmul.mubr.f32.vlgmr.msra.gmra.mrb[24].mxu0 %v7908_v16  ;;  %3654 = vmatmul.mubr.f32.vlgmr.msra.gmra.mrb[24].mxu1 %v7908_v16 }
 0x813   :  { %5907 = vmatpush1.bf16.msra.mxu0 %v8440_v50  ;;  %5939 = vmatpush1.bf16.msra.mxu1 %v8441_v25 }
 0x814   :  { %5909 = vmatprep.subr.bf16.mxu0 %v8442_v54  ;;  %5941 = vmatprep.subr.bf16.mxu1 %v8443_v5 }
 0x815   :  { %3724 = vmatprep.mubr.f32.mxu0 %v8374_v49  ;;  %3795 = vmatprep.mubr.f32.mxu1 %v8374_v49 }
 0x817   :  { %5911 = vmatpush1.bf16.msra.mxu0 %v8444_v10  ;;  %5943 = vmatpush1.bf16.msra.mxu1 %v8445_v44 }
 0x818   :  { %5913 = vmatprep.subr.bf16.mxu0 %v8446_v12  ;;  %5945 = vmatprep.subr.bf16.mxu1 %v8447_v17 }
 0x81b   :  { %5915 = vmatpush1.bf16.msra.mxu0 %v8448_v22  ;;  %5947 = vmatpush1.bf16.msra.mxu1 %v8449_v57 }
 0x81c   :  { %5917 = vmatprep.subr.bf16.mxu0 %v8450_v4  ;;  %5949 = vmatprep.subr.bf16.mxu1 %v8451_v51 }
 0x81f   :  { %5919 = vmatpush1.bf16.msra.mxu0 %v8452_v38  ;;  %5951 = vmatpush1.bf16.msra.mxu1 %v8453_v47 }
 0x820   :  { %5921 = vmatprep.subr.bf16.mxu0 %v7168_v23  ;;  %5953 = vmatprep.subr.bf16.mxu1 %v8454_v48 }
 0x823   :  { %5923 = vmatpush1.bf16.msra.mxu0 %v8455_v27  ;;  %5955 = vmatpush1.bf16.msra.mxu1 %v8456_v46 }
 0x824   :  { %5925 = vmatprep.subr.bf16.mxu0 %v7180_v6  ;;  %5957 = vmatprep.subr.bf16.mxu1 %v7182_v32 }
 0x827   :  { %5927 = vmatpush1.bf16.msra.mxu0 %v7187_v3  ;;  %5959 = vmatpush1.bf16.msra.mxu1 %v7189_v39 }
 0x828   :  { %5929 = vmatprep.subr.bf16.mxu0 %v7193_v19  ;;  %5961 = vmatprep.subr.bf16.mxu1 %v7195_v35 }
 0x82b   :  { %5931 = vmatpush1.bf16.msra.mxu0 %v7199_v29  ;;  %5963 = vmatpush1.bf16.msra.mxu1 %v7201_v53 }
 0x82c   :  { %5933 = vmatprep.subr.bf16.mxu0 %v8506_v14  ;;  %5965 = vmatprep.subr.bf16.mxu1 %v8507_v36 }
 0x82f   :  { %5935 = vmatpush1.bf16.msra.mxu0 %v7211_v0  ;;  %5967 = vmatpush1.bf16.msra.mxu1 %v7213_v61 }
 0x830   :  { %5969 = vmatprep.subr.bf16.mxu0 %v6918_v13  ;;  %6001 = vmatprep.subr.bf16.mxu1 %v8508_v2  ;;  %v8712_v13 = vld [vmem:[#allocation54_spill] sm:$0xff]  ;;  %v8713_v2 = vld [vmem:[#allocation55_spill] sm:$0xff] }
 0x832   :  { %3725 = vmatmul.mubr.f32.vlgmr.msra.gmra.mrb[24].mxu0 %v7894_v33  ;;  %3796 = vmatmul.mubr.f32.vlgmr.msra.gmra.mrb[24].mxu1 %v7894_v33  ;;  %v8719_v33 = vld [vmem:[#allocation61_spill] sm:$0xff] }
 0x833   :  { %5971 = vmatpush1.bf16.msra.mxu0 %v6940_v63  ;;  %6003 = vmatpush1.bf16.msra.mxu1 %v8457_v31  ;;  %v8716_v63 = vld [vmem:[#allocation58_spill] sm:$0xff]  ;;  %v8717_v31 = vld [vmem:[#allocation59_spill] sm:$0xff] }
 0x834   :  { %5973 = vmatprep.subr.bf16.mxu0 %v8709_v34  ;;  %6005 = vmatprep.subr.bf16.mxu1 %v8710_v9  ;;  %v8735_v34 = vld [vmem:[#allocation77_spill] sm:$0xff]  ;;  %v8736_v9 = vld [vmem:[#allocation78_spill] sm:$0xff] }
 0x835   :  { %3960 = vmatprep.mubr.f32.mxu0 %v8374_v49  ;;  %4031 = vmatprep.mubr.f32.mxu1 %v8374_v49 }
 0x837   :  { %5975 = vmatpush1.bf16.msra.mxu0 %v8711_v52  ;;  %6007 = vmatpush1.bf16.msra.mxu1 %v8712_v13  ;;  %v8737_v52 = vld [vmem:[#allocation16_spill] sm:$0xff]  ;;  %v8738_v13 = vld [vmem:[#allocation21_spill] sm:$0xff] }
 0x838   :  { %5977 = vmatprep.subr.bf16.mxu0 %v8713_v2  ;;  %6009 = vmatprep.subr.bf16.mxu1 %v8714_v43  ;;  %v8739_v2 = vld [vmem:[#allocation17_spill] sm:$0xff]  ;;  %v8740_v43 = vld [vmem:[#allocation22_spill] sm:$0xff] }
 0x83b   :  { %5979 = vmatpush1.bf16.msra.mxu0 %v8715_v59  ;;  %6011 = vmatpush1.bf16.msra.mxu1 %v8716_v63  ;;  %v8741_v59 = vld [vmem:[#allocation18_spill] sm:$0xff]  ;;  %v8742_v63 = vld [vmem:[#allocation25_spill] sm:$0xff] }
 0x83c   :  { %5981 = vmatprep.subr.bf16.mxu0 %v8717_v31  ;;  %6013 = vmatprep.subr.bf16.mxu1 %v8718_v18  ;;  %v8743_v31 = vld [vmem:[#allocation19_spill] sm:$0xff]  ;;  %v8744_v18 = vld [vmem:[#allocation26_spill] sm:$0xff] }
 0x83f   :  { %5983 = vmatpush1.bf16.msra.mxu0 %v8719_v33  ;;  %6015 = vmatpush1.bf16.msra.mxu1 %v8720_v15  ;;  %v8745_v33 = vld [vmem:[#allocation20_spill] sm:$0xff] }
 0x840   :  { %5985 = vmatprep.subr.bf16.mxu0 %v8721_v28  ;;  %6017 = vmatprep.subr.bf16.mxu1 %v8722_v7  ;;  %v8746_v15 = vld [vmem:[#allocation28_spill] sm:$0xff]  ;;  %v8748_v28 = vld [vmem:[#allocation30_spill] sm:$0xff] }
 0x841   :  { %v8749_v7 = vld [vmem:[#allocation24_spill] sm:$0xff] }
 0x843   :  { %5987 = vmatpush1.bf16.msra.mxu0 %v8723_v56  ;;  %6019 = vmatpush1.bf16.msra.mxu1 %v8724_v60  ;;  %v8750_v56 = vld [vmem:[#allocation31_spill] sm:$0xff] }
 0x844   :  { %5989 = vmatprep.subr.bf16.mxu0 %v8725_v58  ;;  %6021 = vmatprep.subr.bf16.mxu1 %v8726_v40  ;;  %v8751_v60 = vld [vmem:[#allocation27_spill] sm:$0xff]  ;;  %v8753_v40 = vld [vmem:[#allocation29_spill] sm:$0xff] }
 0x845   :  { %v8752_v58 = vld [vmem:[#allocation35_spill] sm:$0xff] }
 0x847   :  { %5991 = vmatpush1.bf16.msra.mxu0 %v8727_v37  ;;  %6023 = vmatpush1.bf16.msra.mxu1 %v8728_v55  ;;  %v8754_v37 = vld [vmem:[#allocation36_spill] sm:$0xff]  ;;  %v8755_v55 = vld [vmem:[#allocation33_spill] sm:$0xff] }
 0x848   :  { %5993 = vmatprep.subr.bf16.mxu0 %v8729_v26  ;;  %6025 = vmatprep.subr.bf16.mxu1 %v8730_v8  ;;  %v8756_v26 = vld [vmem:[#allocation39_spill] sm:$0xff]  ;;  %v8757_v8 = vld [vmem:[#allocation34_spill] sm:$0xff] }
 0x84b   :  { %5995 = vmatpush1.bf16.msra.mxu0 %v8731_v30  ;;  %6027 = vmatpush1.bf16.msra.mxu1 %v8732_v45  ;;  %v8758_v30 = vld [vmem:[#allocation40_spill] sm:$0xff]  ;;  %v8759_v45 = vld [vmem:[#allocation37_spill] sm:$0xff] }
 0x84c   :  { %5997 = vmatprep.subr.bf16.mxu0 %v8733_v62  ;;  %6029 = vmatprep.subr.bf16.mxu1 %v8734_v41  ;;  %v8760_v62 = vld [vmem:[#allocation43_spill] sm:$0xff]  ;;  %v8761_v41 = vld [vmem:[#allocation38_spill] sm:$0xff] }
 0x84f   :  { %5999 = vmatpush1.bf16.msra.mxu0 %v8735_v34  ;;  %6031 = vmatpush1.bf16.msra.mxu1 %v8736_v9  ;;  %v8762_v34 = vld [vmem:[#allocation44_spill] sm:$0xff]  ;;  %v8763_v9 = vld [vmem:[#allocation41_spill] sm:$0xff] }
 0x850   :  { %6033 = vmatprep.subr.bf16.mxu0 %v8737_v52  ;;  %6065 = vmatprep.subr.bf16.mxu1 %v8738_v13  ;;  %v8764_v52 = vld [vmem:[#allocation46_spill] sm:$0xff] }
 0x851   :  { %v8765_v13 = vld [vmem:[#allocation42_spill] sm:$0xff] }
 0x852   :  { %3961 = vmatmul.mubr.f32.vlgmr.msra.gmra.mrb[26].mxu0 %v7908_v16  ;;  %4032 = vmatmul.mubr.f32.vlgmr.msra.gmra.mrb[26].mxu1 %v7908_v16  ;;  %v8747_v16 = vld [vmem:[#allocation23_spill] sm:$0xff] }
 0x853   :  { %6035 = vmatpush1.bf16.msra.mxu0 %v8739_v2  ;;  %6067 = vmatpush1.bf16.msra.mxu1 %v8740_v43  ;;  %v8766_v2 = vld [vmem:[#allocation47_spill] sm:$0xff]  ;;  %v8767_v43 = vld [vmem:[#allocation45_spill] sm:$0xff] }
 0x854   :  { %6037 = vmatprep.subr.bf16.mxu0 %v8741_v59  ;;  %6069 = vmatprep.subr.bf16.mxu1 %v8742_v63  ;;  %v8768_v59 = vld [vmem:[#allocation48_spill] sm:$0xff]  ;;  %v8769_v63 = vld [vmem:[#allocation79_spill] sm:$0xff] }
 0x855   :  { %4130 = vmatprep.mubr.f32.mxu0 %v8374_v49  ;;  %4201 = vmatprep.mubr.f32.mxu1 %v8374_v49 }
 0x857   :  { %6039 = vmatpush1.bf16.msra.mxu0 %v8743_v31  ;;  %6071 = vmatpush1.bf16.msra.mxu1 %v8744_v18  ;;  %v8770_v31 = vld [vmem:[#allocation80_spill] sm:$0xff] }
 0x858   :  { %6041 = vmatprep.subr.bf16.mxu0 %v8745_v33  ;;  %6073 = vmatprep.subr.bf16.mxu1 %v8746_v15  ;;  %v8771_v15 = vld [vmem:[#allocation81_spill] sm:$0xff] }
 0x85b   :  { %6043 = vmatpush1.bf16.msra.mxu0 %v8747_v16  ;;  %6075 = vmatpush1.bf16.msra.mxu1 %v8748_v28 }
 0x85c   :  { %6045 = vmatprep.subr.bf16.mxu0 %v8749_v7  ;;  %6077 = vmatprep.subr.bf16.mxu1 %v8750_v56  ;;  %v8772_v56 = vld [vmem:[#allocation106_spill] sm:$0xff] }
 0x85f   :  { %6047 = vmatpush1.bf16.msra.mxu0 %v8751_v60  ;;  %6079 = vmatpush1.bf16.msra.mxu1 %v8752_v58 }
 0x860   :  { %6049 = vmatprep.subr.bf16.mxu0 %v8753_v40  ;;  %6081 = vmatprep.subr.bf16.mxu1 %v8754_v37  ;;  %v8773_v37 = vld [vmem:[#allocation85_spill] sm:$0xff] }
 0x863   :  { %6051 = vmatpush1.bf16.msra.mxu0 %v8755_v55  ;;  %6083 = vmatpush1.bf16.msra.mxu1 %v8756_v26 }
 0x864   :  { %6053 = vmatprep.subr.bf16.mxu0 %v8757_v8  ;;  %6085 = vmatprep.subr.bf16.mxu1 %v8758_v30  ;;  %v8774_v8 = vld [vmem:[#allocation82_spill] sm:$0xff] }
 0x867   :  { %6055 = vmatpush1.bf16.msra.mxu0 %v8759_v45  ;;  %6087 = vmatpush1.bf16.msra.mxu1 %v8760_v62 }
 0x868   :  { %6057 = vmatprep.subr.bf16.mxu0 %v8761_v41  ;;  %6089 = vmatprep.subr.bf16.mxu1 %v8762_v34 }
 0x86b   :  { %6059 = vmatpush1.bf16.msra.mxu0 %v8763_v9  ;;  %6091 = vmatpush1.bf16.msra.mxu1 %v8764_v52  ;;  %v3839_v9 = vld [vmem:[%s3838_s14] ss:$8 sm:$0xf] }
 0x86c   :  { %6061 = vmatprep.subr.bf16.mxu0 %v8765_v13  ;;  %6093 = vmatprep.subr.bf16.mxu1 %v8766_v2  ;;  %v3849_v52 = vld [vmem:[%s3848_s15] ss:$8 sm:$0xf] }
 0x86d   :  { %v8775_v2 = vld [vmem:[#allocation32_spill] sm:$0xff] }
 0x86f   :  { %6063 = vmatpush1.bf16.msra.mxu0 %v8767_v43  ;;  %6095 = vmatpush1.bf16.msra.mxu1 %v8768_v59  ;;  %v3854_v43 = vrot.slane %v3839_v9, %v8775_v2  ;;  %v3875_v59 = vrot.slane %v3849_v52, %v8775_v2  ;;  %v3887_v2 = vrot.slane %v3849_v52, %v6856_v1 }
 0x870   :  { %6097 = vmatprep.subr.bf16.mxu0 %v8769_v63  ;;  %6129 = vmatprep.subr.bf16.mxu1 %v8770_v31  ;;  %v8776_v31 = vld [vmem:[#allocation83_spill] sm:$0xff] }
 0x905   :  { %v3726_v18 = vpop.f32.mrb[24].mxu0  ;;  %v3797_v33 = vpop.f32.mrb[24].mxu1 }
 0x906   :  { %v6212_v16 = vadd.f32 %v3726_v18, %v8771_v15  ;;  %v3728_v28 = vpop.f32.mrb[25].mxu0  ;;  %v3799_v7 = vpop.f32.mrb[25].mxu1  ;;  %v6214_v30 = vadd.f32 %v3797_v33, %v8774_v8  ;;  %v3858_v18 = vrot.slane %v3839_v9, %v8776_v31  ;;  %v3879_v33 = vrot.slane %v3849_v52, %v8776_v31 }
 0x907   :  { %v6213_v60 = vadd.f32 %v3728_v28, %v8772_v56  ;;  %v6215_v55 = vadd.f32 %v3799_v7, %v8773_v37 }
 0x908   :  { %v4667_v58 = vmul.f32 -1.442695, %v6212_v16 }
 0x909   :  { %v4668_v40 = vmul.f32 -1.442695, %v6213_v60  ;;  %v4669_v26 = vmul.f32 -1.442695, %v6215_v55  ;;  %v3893_v55 = vsel %vm151_vm0, %v3858_v18, %v3879_v33  ;;  %v3883_v18 = vrot.slane %v3849_v52, %v6898_v42 }
 0x90a   :  { %6459 = vpow2.f32 %v4667_v58 }
 0x90b   :  { %6461 = vpow2.f32 %v4668_v40  ;;  %v3892_v40 = vsel %vm151_vm0, %v3854_v43, %v3875_v59  ;;  %v3862_v59 = vrot.slane %v3839_v9, %v6898_v42 }
 0x90c   :  { %6463 = vpow2.f32 %v4669_v26 }
 0x90d   :  { %6465 = vtanh.f32 %v6214_v30 }
 0x914   :  { %v6460_v45 = vpop.eup %6459 }
 0x915   :  { %v6462_v62 = vpop.eup %6461  ;;  %v3809_v41 = vadd.f32 1.0, %v6460_v45 }
 0x916   :  { %v3815_v34 = vadd.f32 1.0, %v6462_v62  ;;  %v6464_v13 = vpop.eup %6463 }
 0x917   :  { %6467 = vrcp.f32 %v3809_v41  ;;  %v6466_v63 = vpop.eup %6465  ;;  %v3822_v60 = vadd.f32 1.0, %v6464_v13 }
 0x918   :  { %6469 = vrcp.f32 %v3815_v34  ;;  %v3866_v34 = vrot.slane %v3839_v9, %v6856_v1 }
 0x919   :  { %6471 = vrcp.f32 %v3822_v60 }
 0x91a   :  { %v3895_v43 = vsel %vm151_vm0, %v3866_v34, %v3887_v2 }
 0x921   :  { %v6468_v16 = vpop.eup %6467 }
 0x922   :  { %v6470_v28 = vpop.eup %6469  ;;  %v3826_v7 = vmul.f32 %v6468_v16, %v6466_v63  ;;  %v3894_v16 = vsel %vm151_vm0, %v3862_v59, %v3883_v18 }
 0x923   :  { %v3825_v58 = vmul.f32 %v6470_v28, %v7885_v11  ;;  %v6472_v28 = vpop.eup %6471 }
 0x925   :  { %v8029_v26 = vadd.f32 %v3826_v7, %v3825_v58  ;;  %v3962_v30 = vpop.f32.mrb[26].mxu0  ;;  %v4033_v45 = vpop.f32.mrb[26].mxu1 }
 0x926   :  { %v4038_v62 = vadd.f32 %v3962_v30, %v3892_v40  ;;  %v3964_v41 = vpop.f32.mrb[27].mxu0  ;;  %v4035_v31 = vpop.f32.mrb[27].mxu1  ;;  %v4040_v60 = vadd.f32 %v4033_v45, %v3894_v16 }
 0x927   :  { %v4039_v63 = vadd.f32 %v3964_v41, %v3893_v55  ;;  %6473 = vtanh.f32 %v8029_v26  ;;  %v4041_v33 = vadd.f32 %v4035_v31, %v3895_v43 }
 0x928   :  { %v4676_v11 = vmul.f32 -1.442695, %v4038_v62 }
 0x929   :  { %v4677_v13 = vmul.f32 -1.442695, %v4039_v63  ;;  %v4678_v1 = vmul.f32 -1.442695, %v4041_v33 }
 0x92a   :  { %6475 = vpow2.f32 %v4676_v11 }
 0x92b   :  { %6477 = vpow2.f32 %v4677_v13 }
 0x92c   :  { %6479 = vpow2.f32 %v4678_v1 }
 0x92d   :  { %6481 = vtanh.f32 %v4040_v60 }
 0x931   :  { %v6474_v7 = vpop.eup %6473 }
 0x932   :  { %v3829_v58 = vmul.f32 %v6474_v7, %v6472_v28 }
 0x934   :  { %v6476_v40 = vpop.eup %6475  ;;  %v4394_v55 = vrot.slane %v3829_v58, 2  ;;  %v4423_v30 = vrot.slane %v3829_v58, 3 }
 0x935   :  { %v6478_v62 = vpop.eup %6477  ;;  %v4045_v41 = vadd.f32 1.0, %v6476_v40 }
 0x936   :  { %v4051_v9 = vadd.f32 1.0, %v6478_v62  ;;  %v8039_v42 = vsel %vm4408_vm5, %v7899_v21, %v4394_v55  ;;  %v8042_v52 = vsel %vm4408_vm5, %v7902_v24, %v4423_v30  ;;  %v6480_v34 = vpop.eup %6479 }
 0x937   :  { %6483 = vrcp.f32 %v4045_v41  ;;  %v6482_v45 = vpop.eup %6481  ;;  %v4058_v11 = vadd.f32 1.0, %v6480_v34 }
 0x938   :  { %6485 = vrcp.f32 %v4051_v9 }
 0x939   :  { %6487 = vrcp.f32 %v4058_v11 }
 0x941   :  { %v6484_v2 = vpop.eup %6483 }
 0x942   :  { %v6486_v31 = vpop.eup %6485  ;;  %v4062_v63 = vmul.f32 %v6484_v2, %v6482_v45 }
 0x943   :  { %v4061_v13 = vmul.f32 %v6486_v31, %v7905_v20  ;;  %v6488_v59 = vpop.eup %6487 }
 0x945   :  { %v4063_v43 = vadd.f32 %v4062_v63, %v4061_v13  ;;  %v4682_v63 = vld [vmem:[%s8100_s7] ss:$0 sm:$0xff] }
 0x947   :  { %6489 = vtanh.f32 %v4063_v43 }
 0x951   :  { %v6490_v18 = vpop.eup %6489 }
 0x952   :  { %v4065_v21 = vmul.f32 %v6490_v18, %v6488_v59 }
 0x954   :  { %4131 = vmatmul.mubr.f32.vlgmr.msra.gmra.mrb[28].mxu0 %v4065_v21  ;;  %4202 = vmatmul.mubr.f32.vlgmr.msra.gmra.mrb[28].mxu1 %v4065_v21 }
 0x955   :  { %6099 = vmatpush1.bf16.msra.mxu0 %v8440_v50  ;;  %6131 = vmatpush1.bf16.msra.mxu1 %v8441_v25  ;;  %v4442_v50 = vld [vmem:[#allocation11 + $0x40] sm:$0xff]  ;;  %v4443_v25 = vld [vmem:[#allocation11 + $0x48] sm:$0xff] }
 0x956   :  { %6101 = vmatprep.subr.bf16.mxu0 %v8442_v54  ;;  %6133 = vmatprep.subr.bf16.mxu1 %v8443_v5  ;;  %v6176_v54 = vpack.c.bf16 %v4443_v25, %v4442_v50  ;;  %v4444_v5 = vld [vmem:[#allocation11 + $0x50] sm:$0xff] }
 0x957   :  { %4272 = vmatprep.mubr.f32.mxu0 %v8374_v49  ;;  %4343 = vmatprep.mubr.f32.mxu1 %v8374_v49  ;;  %v4434_v49 = vld [vmem:[#allocation11] sm:$0xff] }
 0x959   :  { %6103 = vmatpush1.bf16.msra.mxu0 %v8444_v10  ;;  %6135 = vmatpush1.bf16.msra.mxu1 %v8445_v44  ;;  %v4445_v10 = vld [vmem:[#allocation11 + $0x58] sm:$0xff] }
 0x95a   :  { %6105 = vmatprep.subr.bf16.mxu0 %v8446_v12  ;;  %6137 = vmatprep.subr.bf16.mxu1 %v8447_v17  ;;  %v6180_v44 = vpack.c.bf16 %v4445_v10, %v4444_v5  ;;  %v4446_v12 = vld [vmem:[#allocation11 + $0x60] sm:$0xff]  ;;  %v4447_v17 = vld [vmem:[#allocation11 + $0x68] sm:$0xff] }
 0x95d   :  { %6107 = vmatpush1.bf16.msra.mxu0 %v8448_v22  ;;  %6139 = vmatpush1.bf16.msra.mxu1 %v8449_v57  ;;  %v6184_v22 = vpack.c.bf16 %v4447_v17, %v4446_v12  ;;  %v4448_v57 = vld [vmem:[#allocation11 + $0x70] sm:$0xff] }
 0x95e   :  { %6109 = vmatprep.subr.bf16.mxu0 %v8450_v4  ;;  %6141 = vmatprep.subr.bf16.mxu1 %v8451_v51  ;;  %v4449_v4 = vld [vmem:[#allocation11 + $0x78] sm:$0xff] }
 0x95f   :  { %v6188_v51 = vpack.c.bf16 %v4449_v4, %v4448_v57 }
 0x961   :  { %6111 = vmatpush1.bf16.msra.mxu0 %v8452_v38  ;;  %6143 = vmatpush1.bf16.msra.mxu1 %v8453_v47 }
 0x962   :  { %6113 = vmatprep.subr.bf16.mxu0 %v7168_v23  ;;  %6145 = vmatprep.subr.bf16.mxu1 %v8454_v48  ;;  %v4435_v23 = vld [vmem:[#allocation11 + $0x8] sm:$0xff] }
 0x965   :  { %6115 = vmatpush1.bf16.msra.mxu0 %v8455_v27  ;;  %6147 = vmatpush1.bf16.msra.mxu1 %v8456_v46 }
 0x966   :  { %6117 = vmatprep.subr.bf16.mxu0 %v7180_v6  ;;  %6149 = vmatprep.subr.bf16.mxu1 %v7182_v32  ;;  %v6160_v6 = vpack.c.bf16 %v4435_v23, %v4434_v49  ;;  %v4436_v32 = vld [vmem:[#allocation11 + $0x10] sm:$0xff] }
 0x969   :  { %6119 = vmatpush1.bf16.msra.mxu0 %v7187_v3  ;;  %6151 = vmatpush1.bf16.msra.mxu1 %v7189_v39  ;;  %v4437_v3 = vld [vmem:[#allocation11 + $0x18] sm:$0xff] }
 0x96a   :  { %6121 = vmatprep.subr.bf16.mxu0 %v7193_v19  ;;  %6153 = vmatprep.subr.bf16.mxu1 %v7195_v35  ;;  %v6164_v39 = vpack.c.bf16 %v4437_v3, %v4436_v32  ;;  %v4438_v19 = vld [vmem:[#allocation11 + $0x20] sm:$0xff]  ;;  %v4439_v35 = vld [vmem:[#allocation11 + $0x28] sm:$0xff] }
 0x96d   :  { %6123 = vmatpush1.bf16.msra.mxu0 %v7199_v29  ;;  %6155 = vmatpush1.bf16.msra.mxu1 %v7201_v53  ;;  %v6168_v29 = vpack.c.bf16 %v4439_v35, %v4438_v19  ;;  %v4440_v53 = vld [vmem:[#allocation11 + $0x30] sm:$0xff] }
 0x96e   :  { %6125 = vmatprep.subr.bf16.mxu0 %v8506_v14  ;;  %6157 = vmatprep.subr.bf16.mxu1 %v8507_v36 }
 0x971   :  { %6127 = vmatpush1.bf16.msra.mxu0 %v7211_v0  ;;  %6159 = vmatpush1.bf16.msra.mxu1 %v7213_v61  ;;  %v4441_v0 = vld [vmem:[#allocation11 + $0x38] sm:$0xff] }
 0x972   :  { %6161 = vmatprep.subr.bf16.mxu0 %v6160_v6  ;;  %v6172_v61 = vpack.c.bf16 %v4441_v0, %v4440_v53 }
 0x974   :  { %4273 = vmatmul.mubr.f32.vlgmr.msra.gmra.mrb[28].mxu0 %v3829_v58  ;;  %4344 = vmatmul.mubr.f32.vlgmr.msra.gmra.mrb[28].mxu1 %v3829_v58 }
 0x975   :  { %6163 = vmatpush3.bf16.msra.mxu0 %v6160_v6 }
 0x976   :  { %6165 = vmatprep.subr.bf16.mxu0 %v6164_v39 }
 0x979   :  { %6167 = vmatpush3.bf16.msra.mxu0 %v6164_v39 }
 0x97a   :  { %6169 = vmatprep.subr.bf16.mxu0 %v6168_v29 }
 0x97d   :  { %6171 = vmatpush3.bf16.msra.mxu0 %v6168_v29 }
 0x97e   :  { %6173 = vmatprep.subr.bf16.mxu0 %v6172_v61 }
 0x981   :  { %6175 = vmatpush3.bf16.msra.mxu0 %v6172_v61 }
 0x982   :  { %6177 = vmatprep.subr.bf16.mxu0 %v6176_v54 }
 0x985   :  { %6179 = vmatpush3.bf16.msra.mxu0 %v6176_v54 }
 0x986   :  { %6181 = vmatprep.subr.bf16.mxu0 %v6180_v44 }
 0x989   :  { %6183 = vmatpush3.bf16.msra.mxu0 %v6180_v44 }
 0x98a   :  { %6185 = vmatprep.subr.bf16.mxu0 %v6184_v22 }
 0x98d   :  { %6187 = vmatpush3.bf16.msra.mxu0 %v6184_v22 }
 0x98e   :  { %6189 = vmatprep.subr.bf16.mxu0 %v6188_v51 }
 0x991   :  { %6191 = vmatpush3.bf16.msra.mxu0 %v6188_v51 }
 0xa47   :  { %v4274_v38 = vpop.f32.mrb[28].mxu0  ;;  %v4345_v47 = vpop.f32.mrb[28].mxu1 }
 0xa48   :  { %v6216_v48 = vadd.f32 %v4274_v38, %v8771_v15  ;;  %v4276_v27 = vpop.f32.mrb[29].mxu0  ;;  %v4347_v46 = vpop.f32.mrb[29].mxu1  ;;  %v6218_v16 = vadd.f32 %v4345_v47, %v8774_v8 }
 0xa49   :  { %v6217_v14 = vadd.f32 %v4276_v27, %v8772_v56  ;;  %v6219_v20 = vadd.f32 %v4347_v46, %v8773_v37 }
 0xa4a   :  { %v4679_v36 = vmul.f32 -1.442695, %v6216_v48 }
 0xa4b   :  { %v4680_v24 = vmul.f32 -1.442695, %v6217_v14  ;;  %v4681_v33 = vmul.f32 -1.442695, %v6219_v20 }
 0xa4c   :  { %6491 = vpow2.f32 %v4679_v36 }
 0xa4d   :  { %6493 = vpow2.f32 %v4680_v24 }
 0xa4e   :  { %6495 = vpow2.f32 %v4681_v33 }
 0xa4f   :  { %6497 = vtanh.f32 %v6218_v16 }
 0xa56   :  { %v6492_v28 = vpop.eup %6491 }
 0xa57   :  { %v6494_v7 = vpop.eup %6493  ;;  %v4357_v1 = vadd.f32 1.0, %v6492_v28 }
 0xa58   :  { %v4363_v60 = vadd.f32 1.0, %v6494_v7  ;;  %v6496_v15 = vpop.eup %6495 }
 0xa59   :  { %6499 = vrcp.f32 %v4357_v1  ;;  %v6498_v58 = vpop.eup %6497  ;;  %v4370_v30 = vadd.f32 1.0, %v6496_v15 }
 0xa5a   :  { %6501 = vrcp.f32 %v4363_v60 }
 0xa5b   :  { %6503 = vrcp.f32 %v4370_v30 }
 0xa63   :  { %v6500_v56 = vpop.eup %6499 }
 0xa64   :  { %v6502_v40 = vpop.eup %6501  ;;  %v4374_v55 = vmul.f32 %v6500_v56, %v6498_v58 }
 0xa65   :  { %v4373_v62 = vmul.f32 %v6502_v40, %v8029_v26  ;;  %v6504_v8 = vpop.eup %6503 }
 0xa67   :  { %v4375_v37 = vadd.f32 %v4374_v55, %v4373_v62 }
 0xa69   :  { %6505 = vtanh.f32 %v4375_v37 }
 0xa73   :  { %v6506_v41 = vpop.eup %6505 }
 0xa74   :  { %v4377_v9 = vmul.f32 %v6506_v41, %v6504_v8 }
 0xa76   :  { %v4397_v34 = vrot.slane %v4377_v9, 1  ;;  %v4425_v45 = vrot.slane %v4377_v9, 2 }
 0xa78   :  { %v4411_v2 = vsel %vm4410_vm6, %v8039_v42, %v4397_v34  ;;  %v4433_v31 = vsel %vm4410_vm6, %v8042_v52, %v4425_v45 }
 0xa79   :  { %4749 = vmatprep.mubr.f32.mxu0 %v4411_v2 }
 0xa7a   :  { %4750 = vmatmul.mubr.f32.vlgmr.msra.gmra.mrb[30].mxu0 %v4433_v31 }
 0xb4d   :  { %v4751_v26 = vpop.f32.mrb[30].mxu0 }
 0xb4e   :  { %v4529_v11 = vadd.f32 %v4751_v26, %v4682_v63  ;;  %v4523_v13 = vpop.f32.mrb[31].mxu0 }
 0xb4f   :  { %v4524_v43 = vadd.f32 %v4682_v63, %v4523_v13 }
 0xb50   :  { %4533 = vst [vmem:[%s8101_s8 + $0x8] sm:$0xff] %v4529_v11 }
 0xb51   :  { %4532 = vst [vmem:[%s8101_s8] sm:$0xff] %v4524_v43 }
 0xb52   :  { %4538 = vsyncpa [#allocation5], 1 }
 0xb53   :  { %4539 = vsyncpa [#allocation7], 1 }
 0xb54   :  { %4540 = vsyncpa [#allocation10], 1 }

</bundles_post_ra>
